<compile_context>
chip_gen: v5e
topology: v5e:2x2
jax: 0.10.0
libtpu: 0.0.40
codegen_flags: <defaults>
</compile_context>

<pallas_src>
import numpy as np
import jax
import jax.numpy as jnp
from jax import lax
from jax.experimental import pallas as pl
from jax.experimental.pallas import tpu as pltpu

# ----------------------------- static geometry ------------------------------
IMG_C, IMG_HW = 3, 32
K = 5
C1_OUT, C1_HW = 6, IMG_HW - K + 1            # 6, 28
P1_HW = C1_HW // 2                           # 14
C2_OUT, C2_HW = 16, P1_HW - K + 1            # 16, 10
P2_HW = C2_HW // 2                           # 5

L1 = (C1_HW - 1) * IMG_HW + C1_HW            # 892  conv1 flat length (row stride 32)
L2 = (C2_HW - 1) * P1_HW + C2_HW             # 136  conv2 flat length (row stride 14)
U1 = L1 - 1 - IMG_HW                         # 859  after pairwise max (conv1)
U2 = L2 - 1 - P1_HW                          # 121  after pairwise max (conv2)

PATCH1_ROWS = IMG_C * K * K                  # 75   conv1 im2col rows
PATCH2_ROWS = C1_OUT * K * K                 # 150  conv2 im2col rows
PATCH_ROWS, PATCH_COLS = 152, 896            # shared f32 im2col scratch (VMEM)

CONVW_ROWS, CONVW_COLS = 32, PATCH2_ROWS     # packed conv weights (bf16)
CONV_W1_ROW, CONV_W2_ROW = 0, 16


def _pool_select_matrix(u_len, out_hw, row_stride):
    """0/1 matrix selecting flat index 2*rs*i + 2*j for pooled pixel (i, j)."""
    k = np.arange(u_len)[:, None]
    m = np.arange(out_hw * out_hw)[None, :]
    tgt = 2 * row_stride * (m // out_hw) + 2 * (m % out_hw)
    return (k == tgt).astype(np.float32)


S1_NP = _pool_select_matrix(U1, P1_HW, IMG_HW)    # (859, 196)
S2_NP = _pool_select_matrix(U2, P2_HW, P1_HW)     # (121, 25)

# ------------------------- packed head-parameter layout ----------------------
_HEAD_BLOCKS = [
    ("fc2_w",   (120, 84)),
    ("fc3_w",   (84, 16)),
    ("n2_w",    (9, 9)),
    ("c1w_img", (16, 16)),
    ("c1w_spd", (9, 16)),
    ("c2_w",    (16, 10)),
    ("s2",      (U2, P2_HW * P2_HW)),
    ("conv1_b", (C1_OUT, 1)),
    ("conv2_b", (C2_OUT, 1)),
    ("fc1_b",   (1, 120)),
    ("fc2_b",   (1, 84)),
    ("fc3_b",   (1, 16)),
    ("n1_w",    (1, 9)),
    ("n1_b",    (1, 9)),
    ("n2_b",    (1, 9)),
    ("c1_b",    (1, 16)),
    ("c2_b",    (1, 10)),
]


def _round_up(x, m):
    return (x + m - 1) // m * m


HEAD_OFF, HEAD_SHAPE = {}, {}
_row = 0
for _name, _shape in _HEAD_BLOCKS:
    HEAD_OFF[_name] = _row
    HEAD_SHAPE[_name] = _shape
    _row = _round_up(_row + _shape[0], 16)     # 16-row alignment (bf16 sublane tile)
HEAD_ROWS, HEAD_COLS = _round_up(_row, 16), 128


# --------------------------------- kernel ------------------------------------
def fused_forward_kernel(x_ref, spd_ref, convw_ref, s1_ref, w1blk_ref, head_ref,
                         o_ref, patch_ref):
    f32, bf16 = jnp.float32, jnp.bfloat16

    def hw(name):                           # bf16 block from packed head params
        r0 = HEAD_OFF[name]
        rows, cols = HEAD_SHAPE[name]
        return head_ref[r0:r0 + rows, 0:cols]

    def hb(name):                           # same block, upcast to f32 (biases)
        return hw(name).astype(f32)

    def mxu(a, b):                          # bf16 x bf16 -> f32-accumulated MXU matmul
        return jnp.dot(a.astype(bf16), b.astype(bf16),
                       preferred_element_type=f32)

    # ---------------- conv1 (3->6, 5x5): im2col scratch + one matmul ----------
    x = x_ref[...]                                              # (3, 1024) f32
    for kh in range(K):
        for kw in range(K):
            idx = kh * K + kw
            off = kh * IMG_HW + kw
            patch_ref[IMG_C * idx:IMG_C * (idx + 1), 0:L1] = x[:, off:off + L1]
    patch1 = patch_ref[0:PATCH1_ROWS, 0:L1]                     # (75, 892) f32
    w1 = convw_ref[CONV_W1_ROW:CONV_W1_ROW + C1_OUT, 0:PATCH1_ROWS]   # (6, 75) bf16
    acc1 = jnp.maximum(mxu(w1, patch1) + hb("conv1_b"), 0.0)    # (6, 892)

    # 2x2 max-pool: pairwise maxima + 0/1 select matmul (row stride 32 -> 14)
    t1 = jnp.maximum(acc1[:, :-1], acc1[:, 1:])
    u1 = jnp.maximum(t1[:, :-IMG_HW], t1[:, IMG_HW:])           # (6, 859)
    p1 = mxu(u1, s1_ref[...])                                   # (6, 196)

    # ---------------- conv2 (6->16, 5x5): im2col (reused scratch) -------------
    for kh in range(K):
        for kw in range(K):
            idx = kh * K + kw
            off = kh * P1_HW + kw
            patch_ref[C1_OUT * idx:C1_OUT * (idx + 1), 0:L2] = p1[:, off:off + L2]
    patch2 = patch_ref[0:PATCH2_ROWS, 0:L2]                     # (150, 136) f32
    w2 = convw_ref[CONV_W2_ROW:CONV_W2_ROW + C2_OUT, 0:PATCH2_ROWS]   # (16, 150) bf16
    acc2 = jnp.maximum(mxu(w2, patch2) + hb("conv2_b"), 0.0)    # (16, 136)

    # 2x2 max-pool -> (16, 25) in torch (C, H, W) flatten order
    t2 = jnp.maximum(acc2[:, :-1], acc2[:, 1:])
    u2 = jnp.maximum(t2[:, :-P1_HW], t2[:, P1_HW:])             # (16, 121)
    feat = mxu(u2, hw("s2"))                                    # (16, 25)

    # ---------------- image MLP head: 400 -> 120 -> 84 -> 16 ------------------
    # Flatten(0,2) folded into 16 per-channel (1,25)@(25,120) accumulating matmuls.
    h = hb("fc1_b")                                             # (1, 120)
    for c in range(C2_OUT):
        h = h + mxu(feat[c:c + 1, :], w1blk_ref[c])
    h = jnp.maximum(h, 0.0)
    h = jnp.maximum(mxu(h, hw("fc2_w")) + hb("fc2_b"), 0.0)     # (1, 84)
    imf = jnp.maximum(mxu(h, hw("fc3_w")) + hb("fc3_b"), 0.0)   # (1, 16)

    # ---------------- numeric branch: 1 -> 9 -> 9 -----------------------------
    s = jnp.maximum(spd_ref[...] * hb("n1_w") + hb("n1_b"), 0.0)       # (1, 9)
    s = jnp.maximum(mxu(s, hw("n2_w")) + hb("n2_b"), 0.0)              # (1, 9)

    # -------- combined: concat(16, 9) -> 16 -> 10 -> softmax (split W) --------
    z = jnp.maximum(mxu(imf, hw("c1w_img")) + mxu(s, hw("c1w_spd")) + hb("c1_b"),
                    0.0)                                               # (1, 16)
    z = mxu(z, hw("c2_w")) + hb("c2_b")                                # (1, 10)
    z = z - jnp.max(z, axis=-1, keepdims=True)
    e = jnp.exp(z)
    o_ref[...] = e * pl.reciprocal(jnp.sum(e, axis=-1, keepdims=True), approx=True)


# ------------------------------ pallas wrapper --------------------------------
def _fused_call(x_flat, spd2, convw, s1, w1blk, head):
    return pl.pallas_call(
        fused_forward_kernel,
        out_shape=jax.ShapeDtypeStruct((1, 10), jnp.float32),
        scratch_shapes=[pltpu.VMEM((PATCH_ROWS, PATCH_COLS), jnp.float32)],
    )(x_flat, spd2, convw, s1, w1blk, head)


def prepare_params(P):
    """One-time re-layout/packing of parameters (hoisted out of the hot path)."""
    bf16 = jnp.bfloat16
    # conv weights, im2col order: reduce index = (kh*5 + kw)*C_in + ci
    w1r = jnp.transpose(P["conv1_w"], (0, 2, 3, 1)).reshape(C1_OUT, PATCH1_ROWS)
    w2r = jnp.transpose(P["conv2_w"], (0, 2, 3, 1)).reshape(C2_OUT, PATCH2_ROWS)
    convw = jnp.zeros((CONVW_ROWS, CONVW_COLS), jnp.float32)
    convw = convw.at[CONV_W1_ROW:CONV_W1_ROW + C1_OUT, 0:PATCH1_ROWS].set(w1r)
    convw = convw.at[CONV_W2_ROW:CONV_W2_ROW + C2_OUT, 0:PATCH2_ROWS].set(w2r)

    head_blocks = {
        "fc2_w": P["fc2_w"].T,                       # (120, 84)
        "fc3_w": P["fc3_w"].T,                       # (84, 16)
        "n2_w": P["n2_w"].T,                         # (9, 9)
        "c1w_img": P["c1_w"][:, :16].T,              # (16, 16)
        "c1w_spd": P["c1_w"][:, 16:].T,              # (9, 16)
        "c2_w": P["c2_w"].T,                         # (16, 10)
        "s2": jnp.asarray(S2_NP),                    # (121, 25)
        "conv1_b": P["conv1_b"].reshape(C1_OUT, 1),
        "conv2_b": P["conv2_b"].reshape(C2_OUT, 1),
        "fc1_b": P["fc1_b"].reshape(1, 120),
        "fc2_b": P["fc2_b"].reshape(1, 84),
        "fc3_b": P["fc3_b"].reshape(1, 16),
        "n1_w": P["n1_w"].reshape(1, 9),
        "n1_b": P["n1_b"].reshape(1, 9),
        "n2_b": P["n2_b"].reshape(1, 9),
        "c1_b": P["c1_b"].reshape(1, 16),
        "c2_b": P["c2_b"].reshape(1, 10),
    }
    head = jnp.zeros((HEAD_ROWS, HEAD_COLS), jnp.float32)
    for name, arr in head_blocks.items():
        r0 = HEAD_OFF[name]
        rows, cols = HEAD_SHAPE[name]
        head = head.at[r0:r0 + rows, 0:cols].set(arr)

    return {
        "convw": convw.astype(bf16),
        "s1": jnp.asarray(S1_NP).astype(bf16),
        # fc1 weight split into per-channel (25,120) blocks -> folds Flatten(0,2)
        "w1blk": P["fc1_w"].T.reshape(C2_OUT, P2_HW * P2_HW, 120).astype(bf16),
        "head": head.astype(bf16),
    }


def forward_pallas(img, spd, prep):
    x_flat = img.reshape(IMG_C, IMG_HW * IMG_HW).astype(jnp.float32)
    spd2 = spd.reshape(1, 1).astype(jnp.float32)
    out = _fused_call(x_flat, spd2, prep["convw"], prep["s1"],
                      prep["w1blk"], prep["head"])
    return out.reshape(10)


# --------------------------- params & pure-JAX ref ---------------------------
def init_params(key):
    def linear(k, out_f, in_f):
        k1, k2 = jax.random.split(k)
        bound = 1.0 / np.sqrt(in_f)
        return (jax.random.uniform(k1, (out_f, in_f), jnp.float32, -bound, bound),
                jax.random.uniform(k2, (out_f,), jnp.float32, -bound, bound))

    def conv(k, out_c, in_c, ks):
        k1, k2 = jax.random.split(k)
        bound = 1.0 / np.sqrt(in_c * ks * ks)
        return (jax.random.uniform(k1, (out_c, in_c, ks, ks), jnp.float32, -bound, bound),
                jax.random.uniform(k2, (out_c,), jnp.float32, -bound, bound))

    ks = jax.random.split(key, 9)
    P = {}
    P["conv1_w"], P["conv1_b"] = conv(ks[0], 6, 3, 5)
    P["conv2_w"], P["conv2_b"] = conv(ks[1], 16, 6, 5)
    P["fc1_w"], P["fc1_b"] = linear(ks[2], 120, 400)
    P["fc2_w"], P["fc2_b"] = linear(ks[3], 84, 120)
    P["fc3_w"], P["fc3_b"] = linear(ks[4], 16, 84)
    P["n1_w"], P["n1_b"] = linear(ks[5], 9, 1)
    P["n2_w"], P["n2_b"] = linear(ks[6], 9, 9)
    P["c1_w"], P["c1_b"] = linear(ks[7], 16, 25)
    P["c2_w"], P["c2_b"] = linear(ks[8], 10, 16)
    return P


def forward_reference(img, spd, P):
    def conv2d(x, w, b):
        y = lax.conv_general_dilated(x[None], w, (1, 1), "VALID",
                                     dimension_numbers=("NCHW", "OIHW", "NCHW"))[0]
        return y + b[:, None, None]

    def maxpool2(x):
        c, h, w = x.shape
        return x.reshape(c, h // 2, 2, w // 2, 2).max(axis=(2, 4))

    x = maxpool2(jax.nn.relu(conv2d(img, P["conv1_w"], P["conv1_b"])))
    x = maxpool2(jax.nn.relu(conv2d(x, P["conv2_w"], P["conv2_b"])))
    v = x.reshape(-1)                                       # Flatten(0,2)
    v = jax.nn.relu(v @ P["fc1_w"].T + P["fc1_b"])
    v = jax.nn.relu(v @ P["fc2_w"].T + P["fc2_b"])
    v = jax.nn.relu(v @ P["fc3_w"].T + P["fc3_b"])
    s = jax.nn.relu(spd @ P["n1_w"].T + P["n1_b"])
    s = jax.nn.relu(s @ P["n2_w"].T + P["n2_b"])
    z = jnp.concatenate([v, s], axis=-1)
    z = jax.nn.relu(z @ P["c1_w"].T + P["c1_b"])
    z = z @ P["c2_w"].T + P["c2_b"]
    return jax.nn.softmax(z, axis=-1)


# ---------------------------------- main -------------------------------------
if __name__ == "__main__":
    key = jax.random.PRNGKey(0)
    k_img, k_spd, k_par = jax.random.split(key, 3)
    img = jax.random.normal(k_img, (IMG_C, IMG_HW, IMG_HW), jnp.float32)
    spd = jax.random.uniform(k_spd, (1,), jnp.float32)
    P = init_params(k_par)

    prep = prepare_params(P)                 # one-time param packing (hoisted)
    fwd = jax.jit(forward_pallas)
    out = jax.block_until_ready(fwd(img, spd, prep))

    ref = forward_reference(img, spd, P)
    assert out.shape == (10,)
    # approx softmax reciprocal -> tiny deviation from exactly 1.0
    assert jnp.allclose(jnp.sum(out), 1.0, atol=1e-2)
    # bf16 MXU operands (f32 accumulation) -> loosened tolerance vs f32 reference
    assert jnp.allclose(out, ref, atol=2e-2), (out, ref)
    print("KERNEL_OK")
</pallas_src>

<mosaic_0001>
module attributes {stable_mosaic.version = 11 : i64} {
  func.func @fused_forward_kernel(%arg0: memref<3x1024xf32, #tpu.memory_space<vmem>>, %arg1: memref<1x1xf32, #tpu.memory_space<vmem>>, %arg2: memref<32x150xbf16, #tpu.memory_space<vmem>>, %arg3: memref<859x196xbf16, #tpu.memory_space<vmem>>, %arg4: memref<16x25x120xbf16, #tpu.memory_space<vmem>>, %arg5: memref<576x128xbf16, #tpu.memory_space<vmem>>, %arg6: memref<1x10xf32, #tpu.memory_space<vmem>>, %arg7: memref<152x896xf32, #tpu.memory_space<vmem>>) attributes {dimension_semantics = [], scalar_prefetch = 0 : i64, scratch_operands = 1 : i64, tpu.core_type = #tpu.core_type<tc>} {
    %c0 = arith.constant 0 : index
    %c0_0 = arith.constant 0 : index
    %0 = vector.load %arg0[%c0, %c0_0] : memref<3x1024xf32, #tpu.memory_space<vmem>>, vector<3x1024xf32>
    %1 = vector.extract_strided_slice %0 {offsets = [0, 0], sizes = [3, 892], strides = [1, 1]} : vector<3x1024xf32> to vector<3x892xf32>
    %c0_1 = arith.constant 0 : index
    %c0_2 = arith.constant 0 : index
    %2 = vector.load %arg7[%c0_1, %c0_2] : memref<152x896xf32, #tpu.memory_space<vmem>>, vector<3x892xf32>
    tpu.vector_store %arg7[%c0_1, %c0_2], %1 {strides = array<i32>} : memref<152x896xf32, #tpu.memory_space<vmem>>, vector<3x892xf32>,
    %3 = vector.extract_strided_slice %0 {offsets = [0, 1], sizes = [3, 892], strides = [1, 1]} : vector<3x1024xf32> to vector<3x892xf32>
    %c3 = arith.constant 3 : index
    %c0_3 = arith.constant 0 : index
    %4 = vector.load %arg7[%c3, %c0_3] : memref<152x896xf32, #tpu.memory_space<vmem>>, vector<3x892xf32>
    tpu.vector_store %arg7[%c3, %c0_3], %3 {strides = array<i32>} : memref<152x896xf32, #tpu.memory_space<vmem>>, vector<3x892xf32>,
    %5 = vector.extract_strided_slice %0 {offsets = [0, 2], sizes = [3, 892], strides = [1, 1]} : vector<3x1024xf32> to vector<3x892xf32>
    %c6 = arith.constant 6 : index
    %c0_4 = arith.constant 0 : index
    %6 = vector.load %arg7[%c6, %c0_4] : memref<152x896xf32, #tpu.memory_space<vmem>>, vector<3x892xf32>
    tpu.vector_store %arg7[%c6, %c0_4], %5 {strides = array<i32>} : memref<152x896xf32, #tpu.memory_space<vmem>>, vector<3x892xf32>,
    %7 = vector.extract_strided_slice %0 {offsets = [0, 3], sizes = [3, 892], strides = [1, 1]} : vector<3x1024xf32> to vector<3x892xf32>
    %c9 = arith.constant 9 : index
    %c0_5 = arith.constant 0 : index
    %8 = vector.load %arg7[%c9, %c0_5] : memref<152x896xf32, #tpu.memory_space<vmem>>, vector<3x892xf32>
    tpu.vector_store %arg7[%c9, %c0_5], %7 {strides = array<i32>} : memref<152x896xf32, #tpu.memory_space<vmem>>, vector<3x892xf32>,
    %9 = vector.extract_strided_slice %0 {offsets = [0, 4], sizes = [3, 892], strides = [1, 1]} : vector<3x1024xf32> to vector<3x892xf32>
    %c12 = arith.constant 12 : index
    %c0_6 = arith.constant 0 : index
    %10 = vector.load %arg7[%c12, %c0_6] : memref<152x896xf32, #tpu.memory_space<vmem>>, vector<3x892xf32>
    tpu.vector_store %arg7[%c12, %c0_6], %9 {strides = array<i32>} : memref<152x896xf32, #tpu.memory_space<vmem>>, vector<3x892xf32>,
    %11 = vector.extract_strided_slice %0 {offsets = [0, 32], sizes = [3, 892], strides = [1, 1]} : vector<3x1024xf32> to vector<3x892xf32>
    %c15 = arith.constant 15 : index
    %c0_7 = arith.constant 0 : index
    %12 = vector.load %arg7[%c15, %c0_7] : memref<152x896xf32, #tpu.memory_space<vmem>>, vector<3x892xf32>
    tpu.vector_store %arg7[%c15, %c0_7], %11 {strides = array<i32>} : memref<152x896xf32, #tpu.memory_space<vmem>>, vector<3x892xf32>,
    %13 = vector.extract_strided_slice %0 {offsets = [0, 33], sizes = [3, 892], strides = [1, 1]} : vector<3x1024xf32> to vector<3x892xf32>
    %c18 = arith.constant 18 : index
    %c0_8 = arith.constant 0 : index
    %14 = vector.load %arg7[%c18, %c0_8] : memref<152x896xf32, #tpu.memory_space<vmem>>, vector<3x892xf32>
    tpu.vector_store %arg7[%c18, %c0_8], %13 {strides = array<i32>} : memref<152x896xf32, #tpu.memory_space<vmem>>, vector<3x892xf32>,
    %15 = vector.extract_strided_slice %0 {offsets = [0, 34], sizes = [3, 892], strides = [1, 1]} : vector<3x1024xf32> to vector<3x892xf32>
    %c21 = arith.constant 21 : index
    %c0_9 = arith.constant 0 : index
    %16 = vector.load %arg7[%c21, %c0_9] : memref<152x896xf32, #tpu.memory_space<vmem>>, vector<3x892xf32>
    tpu.vector_store %arg7[%c21, %c0_9], %15 {strides = array<i32>} : memref<152x896xf32, #tpu.memory_space<vmem>>, vector<3x892xf32>,
    %17 = vector.extract_strided_slice %0 {offsets = [0, 35], sizes = [3, 892], strides = [1, 1]} : vector<3x1024xf32> to vector<3x892xf32>
    %c24 = arith.constant 24 : index
    %c0_10 = arith.constant 0 : index
    %18 = vector.load %arg7[%c24, %c0_10] : memref<152x896xf32, #tpu.memory_space<vmem>>, vector<3x892xf32>
    tpu.vector_store %arg7[%c24, %c0_10], %17 {strides = array<i32>} : memref<152x896xf32, #tpu.memory_space<vmem>>, vector<3x892xf32>,
    %19 = vector.extract_strided_slice %0 {offsets = [0, 36], sizes = [3, 892], strides = [1, 1]} : vector<3x1024xf32> to vector<3x892xf32>
    %c27 = arith.constant 27 : index
    %c0_11 = arith.constant 0 : index
    %20 = vector.load %arg7[%c27, %c0_11] : memref<152x896xf32, #tpu.memory_space<vmem>>, vector<3x892xf32>
    tpu.vector_store %arg7[%c27, %c0_11], %19 {strides = array<i32>} : memref<152x896xf32, #tpu.memory_space<vmem>>, vector<3x892xf32>,
    %21 = vector.extract_strided_slice %0 {offsets = [0, 64], sizes = [3, 892], strides = [1, 1]} : vector<3x1024xf32> to vector<3x892xf32>
    %c30 = arith.constant 30 : index
    %c0_12 = arith.constant 0 : index
    %22 = vector.load %arg7[%c30, %c0_12] : memref<152x896xf32, #tpu.memory_space<vmem>>, vector<3x892xf32>
    tpu.vector_store %arg7[%c30, %c0_12], %21 {strides = array<i32>} : memref<152x896xf32, #tpu.memory_space<vmem>>, vector<3x892xf32>,
    %23 = vector.extract_strided_slice %0 {offsets = [0, 65], sizes = [3, 892], strides = [1, 1]} : vector<3x1024xf32> to vector<3x892xf32>
    %c33 = arith.constant 33 : index
    %c0_13 = arith.constant 0 : index
    %24 = vector.load %arg7[%c33, %c0_13] : memref<152x896xf32, #tpu.memory_space<vmem>>, vector<3x892xf32>
    tpu.vector_store %arg7[%c33, %c0_13], %23 {strides = array<i32>} : memref<152x896xf32, #tpu.memory_space<vmem>>, vector<3x892xf32>,
    %25 = vector.extract_strided_slice %0 {offsets = [0, 66], sizes = [3, 892], strides = [1, 1]} : vector<3x1024xf32> to vector<3x892xf32>
    %c36 = arith.constant 36 : index
    %c0_14 = arith.constant 0 : index
    %26 = vector.load %arg7[%c36, %c0_14] : memref<152x896xf32, #tpu.memory_space<vmem>>, vector<3x892xf32>
    tpu.vector_store %arg7[%c36, %c0_14], %25 {strides = array<i32>} : memref<152x896xf32, #tpu.memory_space<vmem>>, vector<3x892xf32>,
    %27 = vector.extract_strided_slice %0 {offsets = [0, 67], sizes = [3, 892], strides = [1, 1]} : vector<3x1024xf32> to vector<3x892xf32>
    %c39 = arith.constant 39 : index
    %c0_15 = arith.constant 0 : index
    %28 = vector.load %arg7[%c39, %c0_15] : memref<152x896xf32, #tpu.memory_space<vmem>>, vector<3x892xf32>
    tpu.vector_store %arg7[%c39, %c0_15], %27 {strides = array<i32>} : memref<152x896xf32, #tpu.memory_space<vmem>>, vector<3x892xf32>,
    %29 = vector.extract_strided_slice %0 {offsets = [0, 68], sizes = [3, 892], strides = [1, 1]} : vector<3x1024xf32> to vector<3x892xf32>
    %c42 = arith.constant 42 : index
    %c0_16 = arith.constant 0 : index
    %30 = vector.load %arg7[%c42, %c0_16] : memref<152x896xf32, #tpu.memory_space<vmem>>, vector<3x892xf32>
    tpu.vector_store %arg7[%c42, %c0_16], %29 {strides = array<i32>} : memref<152x896xf32, #tpu.memory_space<vmem>>, vector<3x892xf32>,
    %31 = vector.extract_strided_slice %0 {offsets = [0, 96], sizes = [3, 892], strides = [1, 1]} : vector<3x1024xf32> to vector<3x892xf32>
    %c45 = arith.constant 45 : index
    %c0_17 = arith.constant 0 : index
    %32 = vector.load %arg7[%c45, %c0_17] : memref<152x896xf32, #tpu.memory_space<vmem>>, vector<3x892xf32>
    tpu.vector_store %arg7[%c45, %c0_17], %31 {strides = array<i32>} : memref<152x896xf32, #tpu.memory_space<vmem>>, vector<3x892xf32>,
    %33 = vector.extract_strided_slice %0 {offsets = [0, 97], sizes = [3, 892], strides = [1, 1]} : vector<3x1024xf32> to vector<3x892xf32>
    %c48 = arith.constant 48 : index
    %c0_18 = arith.constant 0 : index
    %34 = vector.load %arg7[%c48, %c0_18] : memref<152x896xf32, #tpu.memory_space<vmem>>, vector<3x892xf32>
    tpu.vector_store %arg7[%c48, %c0_18], %33 {strides = array<i32>} : memref<152x896xf32, #tpu.memory_space<vmem>>, vector<3x892xf32>,
    %35 = vector.extract_strided_slice %0 {offsets = [0, 98], sizes = [3, 892], strides = [1, 1]} : vector<3x1024xf32> to vector<3x892xf32>
    %c51 = arith.constant 51 : index
    %c0_19 = arith.constant 0 : index
    %36 = vector.load %arg7[%c51, %c0_19] : memref<152x896xf32, #tpu.memory_space<vmem>>, vector<3x892xf32>
    tpu.vector_store %arg7[%c51, %c0_19], %35 {strides = array<i32>} : memref<152x896xf32, #tpu.memory_space<vmem>>, vector<3x892xf32>,
    %37 = vector.extract_strided_slice %0 {offsets = [0, 99], sizes = [3, 892], strides = [1, 1]} : vector<3x1024xf32> to vector<3x892xf32>
    %c54 = arith.constant 54 : index
    %c0_20 = arith.constant 0 : index
    %38 = vector.load %arg7[%c54, %c0_20] : memref<152x896xf32, #tpu.memory_space<vmem>>, vector<3x892xf32>
    tpu.vector_store %arg7[%c54, %c0_20], %37 {strides = array<i32>} : memref<152x896xf32, #tpu.memory_space<vmem>>, vector<3x892xf32>,
    %39 = vector.extract_strided_slice %0 {offsets = [0, 100], sizes = [3, 892], strides = [1, 1]} : vector<3x1024xf32> to vector<3x892xf32>
    %c57 = arith.constant 57 : index
    %c0_21 = arith.constant 0 : index
    %40 = vector.load %arg7[%c57, %c0_21] : memref<152x896xf32, #tpu.memory_space<vmem>>, vector<3x892xf32>
    tpu.vector_store %arg7[%c57, %c0_21], %39 {strides = array<i32>} : memref<152x896xf32, #tpu.memory_space<vmem>>, vector<3x892xf32>,
    %41 = vector.extract_strided_slice %0 {offsets = [0, 128], sizes = [3, 892], strides = [1, 1]} : vector<3x1024xf32> to vector<3x892xf32>
    %c60 = arith.constant 60 : index
    %c0_22 = arith.constant 0 : index
    %42 = vector.load %arg7[%c60, %c0_22] : memref<152x896xf32, #tpu.memory_space<vmem>>, vector<3x892xf32>
    tpu.vector_store %arg7[%c60, %c0_22], %41 {strides = array<i32>} : memref<152x896xf32, #tpu.memory_space<vmem>>, vector<3x892xf32>,
    %43 = vector.extract_strided_slice %0 {offsets = [0, 129], sizes = [3, 892], strides = [1, 1]} : vector<3x1024xf32> to vector<3x892xf32>
    %c63 = arith.constant 63 : index
    %c0_23 = arith.constant 0 : index
    %44 = vector.load %arg7[%c63, %c0_23] : memref<152x896xf32, #tpu.memory_space<vmem>>, vector<3x892xf32>
    tpu.vector_store %arg7[%c63, %c0_23], %43 {strides = array<i32>} : memref<152x896xf32, #tpu.memory_space<vmem>>, vector<3x892xf32>,
    %45 = vector.extract_strided_slice %0 {offsets = [0, 130], sizes = [3, 892], strides = [1, 1]} : vector<3x1024xf32> to vector<3x892xf32>
    %c66 = arith.constant 66 : index
    %c0_24 = arith.constant 0 : index
    %46 = vector.load %arg7[%c66, %c0_24] : memref<152x896xf32, #tpu.memory_space<vmem>>, vector<3x892xf32>
    tpu.vector_store %arg7[%c66, %c0_24], %45 {strides = array<i32>} : memref<152x896xf32, #tpu.memory_space<vmem>>, vector<3x892xf32>,
    %47 = vector.extract_strided_slice %0 {offsets = [0, 131], sizes = [3, 892], strides = [1, 1]} : vector<3x1024xf32> to vector<3x892xf32>
    %c69 = arith.constant 69 : index
    %c0_25 = arith.constant 0 : index
    %48 = vector.load %arg7[%c69, %c0_25] : memref<152x896xf32, #tpu.memory_space<vmem>>, vector<3x892xf32>
    tpu.vector_store %arg7[%c69, %c0_25], %47 {strides = array<i32>} : memref<152x896xf32, #tpu.memory_space<vmem>>, vector<3x892xf32>,
    %49 = vector.extract_strided_slice %0 {offsets = [0, 132], sizes = [3, 892], strides = [1, 1]} : vector<3x1024xf32> to vector<3x892xf32>
    %c72 = arith.constant 72 : index
    %c0_26 = arith.constant 0 : index
    %50 = vector.load %arg7[%c72, %c0_26] : memref<152x896xf32, #tpu.memory_space<vmem>>, vector<3x892xf32>
    tpu.vector_store %arg7[%c72, %c0_26], %49 {strides = array<i32>} : memref<152x896xf32, #tpu.memory_space<vmem>>, vector<3x892xf32>,
    %c0_27 = arith.constant 0 : index
    %c0_28 = arith.constant 0 : index
    %51 = vector.load %arg7[%c0_27, %c0_28] : memref<152x896xf32, #tpu.memory_space<vmem>>, vector<75x892xf32>
    %c0_29 = arith.constant 0 : index
    %c0_30 = arith.constant 0 : index
    %52 = vector.load %arg2[%c0_29, %c0_30] : memref<32x150xbf16, #tpu.memory_space<vmem>>, vector<6x75xbf16>
    %53 = arith.truncf %51 : vector<75x892xf32> to vector<75x892xbf16>
    %cst = arith.constant dense<0.000000e+00> : vector<6x892xf32>
    %54 = tpu.matmul %52, %53, %cst {dimension_numbers = #tpu.dot_dimension_numbers<[1], [0], [0], [1], [0, 0, 1, 1], [], []>} : vector<6x75xbf16>, vector<75x892xbf16>, vector<6x892xf32> -> vector<6x892xf32>
    %c416 = arith.constant 416 : index
    %c0_31 = arith.constant 0 : index
    %55 = vector.load %arg5[%c416, %c0_31] : memref<576x128xbf16, #tpu.memory_space<vmem>>, vector<6x1xbf16>
    %56 = arith.extf %55 : vector<6x1xbf16> to vector<6x1xf32>
    %57 = vector.broadcast %56 : vector<6x1xf32> to vector<6x892xf32>
    %58 = arith.addf %54, %57 : vector<6x892xf32>
    %cst_32 = arith.constant 0.000000e+00 : f32
    %59 = vector.broadcast %cst_32 : f32 to vector<6x892xf32>
    %60 = arith.maximumf %58, %59 : vector<6x892xf32>
    %61 = vector.extract_strided_slice %60 {offsets = [0, 0], sizes = [6, 891], strides = [1, 1]} : vector<6x892xf32> to vector<6x891xf32>
    %62 = vector.extract_strided_slice %60 {offsets = [0, 1], sizes = [6, 891], strides = [1, 1]} : vector<6x892xf32> to vector<6x891xf32>
    %63 = arith.maximumf %61, %62 : vector<6x891xf32>
    %64 = vector.extract_strided_slice %63 {offsets = [0, 0], sizes = [6, 859], strides = [1, 1]} : vector<6x891xf32> to vector<6x859xf32>
    %65 = vector.extract_strided_slice %63 {offsets = [0, 32], sizes = [6, 859], strides = [1, 1]} : vector<6x891xf32> to vector<6x859xf32>
    %66 = arith.maximumf %64, %65 : vector<6x859xf32>
    %c0_33 = arith.constant 0 : index
    %c0_34 = arith.constant 0 : index
    %67 = vector.load %arg3[%c0_33, %c0_34] : memref<859x196xbf16, #tpu.memory_space<vmem>>, vector<859x196xbf16>
    %68 = arith.truncf %66 : vector<6x859xf32> to vector<6x859xbf16>
    %cst_35 = arith.constant dense<0.000000e+00> : vector<6x196xf32>
    %69 = tpu.matmul %68, %67, %cst_35 {dimension_numbers = #tpu.dot_dimension_numbers<[1], [0], [0], [1], [0, 0, 1, 1], [], []>} : vector<6x859xbf16>, vector<859x196xbf16>, vector<6x196xf32> -> vector<6x196xf32>
    %70 = vector.extract_strided_slice %69 {offsets = [0, 0], sizes = [6, 136], strides = [1, 1]} : vector<6x196xf32> to vector<6x136xf32>
    %c0_36 = arith.constant 0 : index
    %c0_37 = arith.constant 0 : index
    %71 = vector.load %arg7[%c0_36, %c0_37] : memref<152x896xf32, #tpu.memory_space<vmem>>, vector<6x136xf32>
    tpu.vector_store %arg7[%c0_36, %c0_37], %70 {strides = array<i32>} : memref<152x896xf32, #tpu.memory_space<vmem>>, vector<6x136xf32>,
    %72 = vector.extract_strided_slice %69 {offsets = [0, 1], sizes = [6, 136], strides = [1, 1]} : vector<6x196xf32> to vector<6x136xf32>
    %c6_38 = arith.constant 6 : index
    %c0_39 = arith.constant 0 : index
    %73 = vector.load %arg7[%c6_38, %c0_39] : memref<152x896xf32, #tpu.memory_space<vmem>>, vector<6x136xf32>
    tpu.vector_store %arg7[%c6_38, %c0_39], %72 {strides = array<i32>} : memref<152x896xf32, #tpu.memory_space<vmem>>, vector<6x136xf32>,
    %74 = vector.extract_strided_slice %69 {offsets = [0, 2], sizes = [6, 136], strides = [1, 1]} : vector<6x196xf32> to vector<6x136xf32>
    %c12_40 = arith.constant 12 : index
    %c0_41 = arith.constant 0 : index
    %75 = vector.load %arg7[%c12_40, %c0_41] : memref<152x896xf32, #tpu.memory_space<vmem>>, vector<6x136xf32>
    tpu.vector_store %arg7[%c12_40, %c0_41], %74 {strides = array<i32>} : memref<152x896xf32, #tpu.memory_space<vmem>>, vector<6x136xf32>,
    %76 = vector.extract_strided_slice %69 {offsets = [0, 3], sizes = [6, 136], strides = [1, 1]} : vector<6x196xf32> to vector<6x136xf32>
    %c18_42 = arith.constant 18 : index
    %c0_43 = arith.constant 0 : index
    %77 = vector.load %arg7[%c18_42, %c0_43] : memref<152x896xf32, #tpu.memory_space<vmem>>, vector<6x136xf32>
    tpu.vector_store %arg7[%c18_42, %c0_43], %76 {strides = array<i32>} : memref<152x896xf32, #tpu.memory_space<vmem>>, vector<6x136xf32>,
    %78 = vector.extract_strided_slice %69 {offsets = [0, 4], sizes = [6, 136], strides = [1, 1]} : vector<6x196xf32> to vector<6x136xf32>
    %c24_44 = arith.constant 24 : index
    %c0_45 = arith.constant 0 : index
    %79 = vector.load %arg7[%c24_44, %c0_45] : memref<152x896xf32, #tpu.memory_space<vmem>>, vector<6x136xf32>
    tpu.vector_store %arg7[%c24_44, %c0_45], %78 {strides = array<i32>} : memref<152x896xf32, #tpu.memory_space<vmem>>, vector<6x136xf32>,
    %80 = vector.extract_strided_slice %69 {offsets = [0, 14], sizes = [6, 136], strides = [1, 1]} : vector<6x196xf32> to vector<6x136xf32>
    %c30_46 = arith.constant 30 : index
    %c0_47 = arith.constant 0 : index
    %81 = vector.load %arg7[%c30_46, %c0_47] : memref<152x896xf32, #tpu.memory_space<vmem>>, vector<6x136xf32>
    tpu.vector_store %arg7[%c30_46, %c0_47], %80 {strides = array<i32>} : memref<152x896xf32, #tpu.memory_space<vmem>>, vector<6x136xf32>,
    %82 = vector.extract_strided_slice %69 {offsets = [0, 15], sizes = [6, 136], strides = [1, 1]} : vector<6x196xf32> to vector<6x136xf32>
    %c36_48 = arith.constant 36 : index
    %c0_49 = arith.constant 0 : index
    %83 = vector.load %arg7[%c36_48, %c0_49] : memref<152x896xf32, #tpu.memory_space<vmem>>, vector<6x136xf32>
    tpu.vector_store %arg7[%c36_48, %c0_49], %82 {strides = array<i32>} : memref<152x896xf32, #tpu.memory_space<vmem>>, vector<6x136xf32>,
    %84 = vector.extract_strided_slice %69 {offsets = [0, 16], sizes = [6, 136], strides = [1, 1]} : vector<6x196xf32> to vector<6x136xf32>
    %c42_50 = arith.constant 42 : index
    %c0_51 = arith.constant 0 : index
    %85 = vector.load %arg7[%c42_50, %c0_51] : memref<152x896xf32, #tpu.memory_space<vmem>>, vector<6x136xf32>
    tpu.vector_store %arg7[%c42_50, %c0_51], %84 {strides = array<i32>} : memref<152x896xf32, #tpu.memory_space<vmem>>, vector<6x136xf32>,
    %86 = vector.extract_strided_slice %69 {offsets = [0, 17], sizes = [6, 136], strides = [1, 1]} : vector<6x196xf32> to vector<6x136xf32>
    %c48_52 = arith.constant 48 : index
    %c0_53 = arith.constant 0 : index
    %87 = vector.load %arg7[%c48_52, %c0_53] : memref<152x896xf32, #tpu.memory_space<vmem>>, vector<6x136xf32>
    tpu.vector_store %arg7[%c48_52, %c0_53], %86 {strides = array<i32>} : memref<152x896xf32, #tpu.memory_space<vmem>>, vector<6x136xf32>,
    %88 = vector.extract_strided_slice %69 {offsets = [0, 18], sizes = [6, 136], strides = [1, 1]} : vector<6x196xf32> to vector<6x136xf32>
    %c54_54 = arith.constant 54 : index
    %c0_55 = arith.constant 0 : index
    %89 = vector.load %arg7[%c54_54, %c0_55] : memref<152x896xf32, #tpu.memory_space<vmem>>, vector<6x136xf32>
    tpu.vector_store %arg7[%c54_54, %c0_55], %88 {strides = array<i32>} : memref<152x896xf32, #tpu.memory_space<vmem>>, vector<6x136xf32>,
    %90 = vector.extract_strided_slice %69 {offsets = [0, 28], sizes = [6, 136], strides = [1, 1]} : vector<6x196xf32> to vector<6x136xf32>
    %c60_56 = arith.constant 60 : index
    %c0_57 = arith.constant 0 : index
    %91 = vector.load %arg7[%c60_56, %c0_57] : memref<152x896xf32, #tpu.memory_space<vmem>>, vector<6x136xf32>
    tpu.vector_store %arg7[%c60_56, %c0_57], %90 {strides = array<i32>} : memref<152x896xf32, #tpu.memory_space<vmem>>, vector<6x136xf32>,
    %92 = vector.extract_strided_slice %69 {offsets = [0, 29], sizes = [6, 136], strides = [1, 1]} : vector<6x196xf32> to vector<6x136xf32>
    %c66_58 = arith.constant 66 : index
    %c0_59 = arith.constant 0 : index
    %93 = vector.load %arg7[%c66_58, %c0_59] : memref<152x896xf32, #tpu.memory_space<vmem>>, vector<6x136xf32>
    tpu.vector_store %arg7[%c66_58, %c0_59], %92 {strides = array<i32>} : memref<152x896xf32, #tpu.memory_space<vmem>>, vector<6x136xf32>,
    %94 = vector.extract_strided_slice %69 {offsets = [0, 30], sizes = [6, 136], strides = [1, 1]} : vector<6x196xf32> to vector<6x136xf32>
    %c72_60 = arith.constant 72 : index
    %c0_61 = arith.constant 0 : index
    %95 = vector.load %arg7[%c72_60, %c0_61] : memref<152x896xf32, #tpu.memory_space<vmem>>, vector<6x136xf32>
    tpu.vector_store %arg7[%c72_60, %c0_61], %94 {strides = array<i32>} : memref<152x896xf32, #tpu.memory_space<vmem>>, vector<6x136xf32>,
    %96 = vector.extract_strided_slice %69 {offsets = [0, 31], sizes = [6, 136], strides = [1, 1]} : vector<6x196xf32> to vector<6x136xf32>
    %c78 = arith.constant 78 : index
    %c0_62 = arith.constant 0 : index
    %97 = vector.load %arg7[%c78, %c0_62] : memref<152x896xf32, #tpu.memory_space<vmem>>, vector<6x136xf32>
    tpu.vector_store %arg7[%c78, %c0_62], %96 {strides = array<i32>} : memref<152x896xf32, #tpu.memory_space<vmem>>, vector<6x136xf32>,
    %98 = vector.extract_strided_slice %69 {offsets = [0, 32], sizes = [6, 136], strides = [1, 1]} : vector<6x196xf32> to vector<6x136xf32>
    %c84 = arith.constant 84 : index
    %c0_63 = arith.constant 0 : index
    %99 = vector.load %arg7[%c84, %c0_63] : memref<152x896xf32, #tpu.memory_space<vmem>>, vector<6x136xf32>
    tpu.vector_store %arg7[%c84, %c0_63], %98 {strides = array<i32>} : memref<152x896xf32, #tpu.memory_space<vmem>>, vector<6x136xf32>,
    %100 = vector.extract_strided_slice %69 {offsets = [0, 42], sizes = [6, 136], strides = [1, 1]} : vector<6x196xf32> to vector<6x136xf32>
    %c90 = arith.constant 90 : index
    %c0_64 = arith.constant 0 : index
    %101 = vector.load %arg7[%c90, %c0_64] : memref<152x896xf32, #tpu.memory_space<vmem>>, vector<6x136xf32>
    tpu.vector_store %arg7[%c90, %c0_64], %100 {strides = array<i32>} : memref<152x896xf32, #tpu.memory_space<vmem>>, vector<6x136xf32>,
    %102 = vector.extract_strided_slice %69 {offsets = [0, 43], sizes = [6, 136], strides = [1, 1]} : vector<6x196xf32> to vector<6x136xf32>
    %c96 = arith.constant 96 : index
    %c0_65 = arith.constant 0 : index
    %103 = vector.load %arg7[%c96, %c0_65] : memref<152x896xf32, #tpu.memory_space<vmem>>, vector<6x136xf32>
    tpu.vector_store %arg7[%c96, %c0_65], %102 {strides = array<i32>} : memref<152x896xf32, #tpu.memory_space<vmem>>, vector<6x136xf32>,
    %104 = vector.extract_strided_slice %69 {offsets = [0, 44], sizes = [6, 136], strides = [1, 1]} : vector<6x196xf32> to vector<6x136xf32>
    %c102 = arith.constant 102 : index
    %c0_66 = arith.constant 0 : index
    %105 = vector.load %arg7[%c102, %c0_66] : memref<152x896xf32, #tpu.memory_space<vmem>>, vector<6x136xf32>
    tpu.vector_store %arg7[%c102, %c0_66], %104 {strides = array<i32>} : memref<152x896xf32, #tpu.memory_space<vmem>>, vector<6x136xf32>,
    %106 = vector.extract_strided_slice %69 {offsets = [0, 45], sizes = [6, 136], strides = [1, 1]} : vector<6x196xf32> to vector<6x136xf32>
    %c108 = arith.constant 108 : index
    %c0_67 = arith.constant 0 : index
    %107 = vector.load %arg7[%c108, %c0_67] : memref<152x896xf32, #tpu.memory_space<vmem>>, vector<6x136xf32>
    tpu.vector_store %arg7[%c108, %c0_67], %106 {strides = array<i32>} : memref<152x896xf32, #tpu.memory_space<vmem>>, vector<6x136xf32>,
    %108 = vector.extract_strided_slice %69 {offsets = [0, 46], sizes = [6, 136], strides = [1, 1]} : vector<6x196xf32> to vector<6x136xf32>
    %c114 = arith.constant 114 : index
    %c0_68 = arith.constant 0 : index
    %109 = vector.load %arg7[%c114, %c0_68] : memref<152x896xf32, #tpu.memory_space<vmem>>, vector<6x136xf32>
    tpu.vector_store %arg7[%c114, %c0_68], %108 {strides = array<i32>} : memref<152x896xf32, #tpu.memory_space<vmem>>, vector<6x136xf32>,
    %110 = vector.extract_strided_slice %69 {offsets = [0, 56], sizes = [6, 136], strides = [1, 1]} : vector<6x196xf32> to vector<6x136xf32>
    %c120 = arith.constant 120 : index
    %c0_69 = arith.constant 0 : index
    %111 = vector.load %arg7[%c120, %c0_69] : memref<152x896xf32, #tpu.memory_space<vmem>>, vector<6x136xf32>
    tpu.vector_store %arg7[%c120, %c0_69], %110 {strides = array<i32>} : memref<152x896xf32, #tpu.memory_space<vmem>>, vector<6x136xf32>,
    %112 = vector.extract_strided_slice %69 {offsets = [0, 57], sizes = [6, 136], strides = [1, 1]} : vector<6x196xf32> to vector<6x136xf32>
    %c126 = arith.constant 126 : index
    %c0_70 = arith.constant 0 : index
    %113 = vector.load %arg7[%c126, %c0_70] : memref<152x896xf32, #tpu.memory_space<vmem>>, vector<6x136xf32>
    tpu.vector_store %arg7[%c126, %c0_70], %112 {strides = array<i32>} : memref<152x896xf32, #tpu.memory_space<vmem>>, vector<6x136xf32>,
    %114 = vector.extract_strided_slice %69 {offsets = [0, 58], sizes = [6, 136], strides = [1, 1]} : vector<6x196xf32> to vector<6x136xf32>
    %c132 = arith.constant 132 : index
    %c0_71 = arith.constant 0 : index
    %115 = vector.load %arg7[%c132, %c0_71] : memref<152x896xf32, #tpu.memory_space<vmem>>, vector<6x136xf32>
    tpu.vector_store %arg7[%c132, %c0_71], %114 {strides = array<i32>} : memref<152x896xf32, #tpu.memory_space<vmem>>, vector<6x136xf32>,
    %116 = vector.extract_strided_slice %69 {offsets = [0, 59], sizes = [6, 136], strides = [1, 1]} : vector<6x196xf32> to vector<6x136xf32>
    %c138 = arith.constant 138 : index
    %c0_72 = arith.constant 0 : index
    %117 = vector.load %arg7[%c138, %c0_72] : memref<152x896xf32, #tpu.memory_space<vmem>>, vector<6x136xf32>
    tpu.vector_store %arg7[%c138, %c0_72], %116 {strides = array<i32>} : memref<152x896xf32, #tpu.memory_space<vmem>>, vector<6x136xf32>,
    %118 = vector.extract_strided_slice %69 {offsets = [0, 60], sizes = [6, 136], strides = [1, 1]} : vector<6x196xf32> to vector<6x136xf32>
    %c144 = arith.constant 144 : index
    %c0_73 = arith.constant 0 : index
    %119 = vector.load %arg7[%c144, %c0_73] : memref<152x896xf32, #tpu.memory_space<vmem>>, vector<6x136xf32>
    tpu.vector_store %arg7[%c144, %c0_73], %118 {strides = array<i32>} : memref<152x896xf32, #tpu.memory_space<vmem>>, vector<6x136xf32>,
    %c0_74 = arith.constant 0 : index
    %c0_75 = arith.constant 0 : index
    %120 = vector.load %arg7[%c0_74, %c0_75] : memref<152x896xf32, #tpu.memory_space<vmem>>, vector<150x136xf32>
    %c16 = arith.constant 16 : index
    %c0_76 = arith.constant 0 : index
    %121 = vector.load %arg2[%c16, %c0_76] : memref<32x150xbf16, #tpu.memory_space<vmem>>, vector<16x150xbf16>
    %122 = arith.truncf %120 : vector<150x136xf32> to vector<150x136xbf16>
    %cst_77 = arith.constant dense<0.000000e+00> : vector<16x136xf32>
    %123 = tpu.matmul %121, %122, %cst_77 {dimension_numbers = #tpu.dot_dimension_numbers<[1], [0], [0], [1], [0, 0, 1, 1], [], []>} : vector<16x150xbf16>, vector<150x136xbf16>, vector<16x136xf32> -> vector<16x136xf32>
    %c432 = arith.constant 432 : index
    %c0_78 = arith.constant 0 : index
    %124 = vector.load %arg5[%c432, %c0_78] : memref<576x128xbf16, #tpu.memory_space<vmem>>, vector<16x1xbf16>
    %125 = arith.extf %124 : vector<16x1xbf16> to vector<16x1xf32>
    %126 = vector.broadcast %125 : vector<16x1xf32> to vector<16x136xf32>
    %127 = arith.addf %123, %126 : vector<16x136xf32>
    %cst_79 = arith.constant 0.000000e+00 : f32
    %128 = vector.broadcast %cst_79 : f32 to vector<16x136xf32>
    %129 = arith.maximumf %127, %128 : vector<16x136xf32>
    %130 = vector.extract_strided_slice %129 {offsets = [0, 0], sizes = [16, 135], strides = [1, 1]} : vector<16x136xf32> to vector<16x135xf32>
    %131 = vector.extract_strided_slice %129 {offsets = [0, 1], sizes = [16, 135], strides = [1, 1]} : vector<16x136xf32> to vector<16x135xf32>
    %132 = arith.maximumf %130, %131 : vector<16x135xf32>
    %133 = vector.extract_strided_slice %132 {offsets = [0, 0], sizes = [16, 121], strides = [1, 1]} : vector<16x135xf32> to vector<16x121xf32>
    %134 = vector.extract_strided_slice %132 {offsets = [0, 14], sizes = [16, 121], strides = [1, 1]} : vector<16x135xf32> to vector<16x121xf32>
    %135 = arith.maximumf %133, %134 : vector<16x121xf32>
    %c288 = arith.constant 288 : index
    %c0_80 = arith.constant 0 : index
    %136 = vector.load %arg5[%c288, %c0_80] : memref<576x128xbf16, #tpu.memory_space<vmem>>, vector<121x25xbf16>
    %137 = arith.truncf %135 : vector<16x121xf32> to vector<16x121xbf16>
    %cst_81 = arith.constant dense<0.000000e+00> : vector<16x25xf32>
    %138 = tpu.matmul %137, %136, %cst_81 {dimension_numbers = #tpu.dot_dimension_numbers<[1], [0], [0], [1], [0, 0, 1, 1], [], []>} : vector<16x121xbf16>, vector<121x25xbf16>, vector<16x25xf32> -> vector<16x25xf32>
    %c448 = arith.constant 448 : index
    %c0_82 = arith.constant 0 : index
    %139 = vector.load %arg5[%c448, %c0_82] : memref<576x128xbf16, #tpu.memory_space<vmem>>, vector<1x120xbf16>
    %140 = arith.extf %139 : vector<1x120xbf16> to vector<1x120xf32>
    %141 = vector.extract_strided_slice %138 {offsets = [0, 0], sizes = [1, 25], strides = [1, 1]} : vector<16x25xf32> to vector<1x25xf32>
    %c0_83 = arith.constant 0 : index
    %c0_84 = arith.constant 0 : index
    %c0_85 = arith.constant 0 : index
    %142 = vector.load %arg4[%c0_83, %c0_84, %c0_85] : memref<16x25x120xbf16, #tpu.memory_space<vmem>>, vector<1x25x120xbf16>
    %143 = vector.shape_cast %142 : vector<1x25x120xbf16> to vector<25x120xbf16>
    %144 = arith.truncf %141 : vector<1x25xf32> to vector<1x25xbf16>
    %cst_86 = arith.constant dense<0.000000e+00> : vector<1x120xf32>
    %145 = tpu.matmul %144, %143, %cst_86 {dimension_numbers = #tpu.dot_dimension_numbers<[1], [0], [0], [1], [0, 0, 1, 1], [], []>} : vector<1x25xbf16>, vector<25x120xbf16>, vector<1x120xf32> -> vector<1x120xf32>
    %146 = arith.addf %140, %145 : vector<1x120xf32>
    %147 = vector.extract_strided_slice %138 {offsets = [1, 0], sizes = [1, 25], strides = [1, 1]} : vector<16x25xf32> to vector<1x25xf32>
    %c1 = arith.constant 1 : index
    %c0_87 = arith.constant 0 : index
    %c0_88 = arith.constant 0 : index
    %148 = vector.load %arg4[%c1, %c0_87, %c0_88] : memref<16x25x120xbf16, #tpu.memory_space<vmem>>, vector<1x25x120xbf16>
    %149 = vector.shape_cast %148 : vector<1x25x120xbf16> to vector<25x120xbf16>
    %150 = arith.truncf %147 : vector<1x25xf32> to vector<1x25xbf16>
    %cst_89 = arith.constant dense<0.000000e+00> : vector<1x120xf32>
    %151 = tpu.matmul %150, %149, %cst_89 {dimension_numbers = #tpu.dot_dimension_numbers<[1], [0], [0], [1], [0, 0, 1, 1], [], []>} : vector<1x25xbf16>, vector<25x120xbf16>, vector<1x120xf32> -> vector<1x120xf32>
    %152 = arith.addf %146, %151 : vector<1x120xf32>
    %153 = vector.extract_strided_slice %138 {offsets = [2, 0], sizes = [1, 25], strides = [1, 1]} : vector<16x25xf32> to vector<1x25xf32>
    %c2 = arith.constant 2 : index
    %c0_90 = arith.constant 0 : index
    %c0_91 = arith.constant 0 : index
    %154 = vector.load %arg4[%c2, %c0_90, %c0_91] : memref<16x25x120xbf16, #tpu.memory_space<vmem>>, vector<1x25x120xbf16>
    %155 = vector.shape_cast %154 : vector<1x25x120xbf16> to vector<25x120xbf16>
    %156 = arith.truncf %153 : vector<1x25xf32> to vector<1x25xbf16>
    %cst_92 = arith.constant dense<0.000000e+00> : vector<1x120xf32>
    %157 = tpu.matmul %156, %155, %cst_92 {dimension_numbers = #tpu.dot_dimension_numbers<[1], [0], [0], [1], [0, 0, 1, 1], [], []>} : vector<1x25xbf16>, vector<25x120xbf16>, vector<1x120xf32> -> vector<1x120xf32>
    %158 = arith.addf %152, %157 : vector<1x120xf32>
    %159 = vector.extract_strided_slice %138 {offsets = [3, 0], sizes = [1, 25], strides = [1, 1]} : vector<16x25xf32> to vector<1x25xf32>
    %c3_93 = arith.constant 3 : index
    %c0_94 = arith.constant 0 : index
    %c0_95 = arith.constant 0 : index
    %160 = vector.load %arg4[%c3_93, %c0_94, %c0_95] : memref<16x25x120xbf16, #tpu.memory_space<vmem>>, vector<1x25x120xbf16>
    %161 = vector.shape_cast %160 : vector<1x25x120xbf16> to vector<25x120xbf16>
    %162 = arith.truncf %159 : vector<1x25xf32> to vector<1x25xbf16>
    %cst_96 = arith.constant dense<0.000000e+00> : vector<1x120xf32>
    %163 = tpu.matmul %162, %161, %cst_96 {dimension_numbers = #tpu.dot_dimension_numbers<[1], [0], [0], [1], [0, 0, 1, 1], [], []>} : vector<1x25xbf16>, vector<25x120xbf16>, vector<1x120xf32> -> vector<1x120xf32>
    %164 = arith.addf %158, %163 : vector<1x120xf32>
    %165 = vector.extract_strided_slice %138 {offsets = [4, 0], sizes = [1, 25], strides = [1, 1]} : vector<16x25xf32> to vector<1x25xf32>
    %c4 = arith.constant 4 : index
    %c0_97 = arith.constant 0 : index
    %c0_98 = arith.constant 0 : index
    %166 = vector.load %arg4[%c4, %c0_97, %c0_98] : memref<16x25x120xbf16, #tpu.memory_space<vmem>>, vector<1x25x120xbf16>
    %167 = vector.shape_cast %166 : vector<1x25x120xbf16> to vector<25x120xbf16>
    %168 = arith.truncf %165 : vector<1x25xf32> to vector<1x25xbf16>
    %cst_99 = arith.constant dense<0.000000e+00> : vector<1x120xf32>
    %169 = tpu.matmul %168, %167, %cst_99 {dimension_numbers = #tpu.dot_dimension_numbers<[1], [0], [0], [1], [0, 0, 1, 1], [], []>} : vector<1x25xbf16>, vector<25x120xbf16>, vector<1x120xf32> -> vector<1x120xf32>
    %170 = arith.addf %164, %169 : vector<1x120xf32>
    %171 = vector.extract_strided_slice %138 {offsets = [5, 0], sizes = [1, 25], strides = [1, 1]} : vector<16x25xf32> to vector<1x25xf32>
    %c5 = arith.constant 5 : index
    %c0_100 = arith.constant 0 : index
    %c0_101 = arith.constant 0 : index
    %172 = vector.load %arg4[%c5, %c0_100, %c0_101] : memref<16x25x120xbf16, #tpu.memory_space<vmem>>, vector<1x25x120xbf16>
    %173 = vector.shape_cast %172 : vector<1x25x120xbf16> to vector<25x120xbf16>
    %174 = arith.truncf %171 : vector<1x25xf32> to vector<1x25xbf16>
    %cst_102 = arith.constant dense<0.000000e+00> : vector<1x120xf32>
    %175 = tpu.matmul %174, %173, %cst_102 {dimension_numbers = #tpu.dot_dimension_numbers<[1], [0], [0], [1], [0, 0, 1, 1], [], []>} : vector<1x25xbf16>, vector<25x120xbf16>, vector<1x120xf32> -> vector<1x120xf32>
    %176 = arith.addf %170, %175 : vector<1x120xf32>
    %177 = vector.extract_strided_slice %138 {offsets = [6, 0], sizes = [1, 25], strides = [1, 1]} : vector<16x25xf32> to vector<1x25xf32>
    %c6_103 = arith.constant 6 : index
    %c0_104 = arith.constant 0 : index
    %c0_105 = arith.constant 0 : index
    %178 = vector.load %arg4[%c6_103, %c0_104, %c0_105] : memref<16x25x120xbf16, #tpu.memory_space<vmem>>, vector<1x25x120xbf16>
    %179 = vector.shape_cast %178 : vector<1x25x120xbf16> to vector<25x120xbf16>
    %180 = arith.truncf %177 : vector<1x25xf32> to vector<1x25xbf16>
    %cst_106 = arith.constant dense<0.000000e+00> : vector<1x120xf32>
    %181 = tpu.matmul %180, %179, %cst_106 {dimension_numbers = #tpu.dot_dimension_numbers<[1], [0], [0], [1], [0, 0, 1, 1], [], []>} : vector<1x25xbf16>, vector<25x120xbf16>, vector<1x120xf32> -> vector<1x120xf32>
    %182 = arith.addf %176, %181 : vector<1x120xf32>
    %183 = vector.extract_strided_slice %138 {offsets = [7, 0], sizes = [1, 25], strides = [1, 1]} : vector<16x25xf32> to vector<1x25xf32>
    %c7 = arith.constant 7 : index
    %c0_107 = arith.constant 0 : index
    %c0_108 = arith.constant 0 : index
    %184 = vector.load %arg4[%c7, %c0_107, %c0_108] : memref<16x25x120xbf16, #tpu.memory_space<vmem>>, vector<1x25x120xbf16>
    %185 = vector.shape_cast %184 : vector<1x25x120xbf16> to vector<25x120xbf16>
    %186 = arith.truncf %183 : vector<1x25xf32> to vector<1x25xbf16>
    %cst_109 = arith.constant dense<0.000000e+00> : vector<1x120xf32>
    %187 = tpu.matmul %186, %185, %cst_109 {dimension_numbers = #tpu.dot_dimension_numbers<[1], [0], [0], [1], [0, 0, 1, 1], [], []>} : vector<1x25xbf16>, vector<25x120xbf16>, vector<1x120xf32> -> vector<1x120xf32>
    %188 = arith.addf %182, %187 : vector<1x120xf32>
    %189 = vector.extract_strided_slice %138 {offsets = [8, 0], sizes = [1, 25], strides = [1, 1]} : vector<16x25xf32> to vector<1x25xf32>
    %c8 = arith.constant 8 : index
    %c0_110 = arith.constant 0 : index
    %c0_111 = arith.constant 0 : index
    %190 = vector.load %arg4[%c8, %c0_110, %c0_111] : memref<16x25x120xbf16, #tpu.memory_space<vmem>>, vector<1x25x120xbf16>
    %191 = vector.shape_cast %190 : vector<1x25x120xbf16> to vector<25x120xbf16>
    %192 = arith.truncf %189 : vector<1x25xf32> to vector<1x25xbf16>
    %cst_112 = arith.constant dense<0.000000e+00> : vector<1x120xf32>
    %193 = tpu.matmul %192, %191, %cst_112 {dimension_numbers = #tpu.dot_dimension_numbers<[1], [0], [0], [1], [0, 0, 1, 1], [], []>} : vector<1x25xbf16>, vector<25x120xbf16>, vector<1x120xf32> -> vector<1x120xf32>
    %194 = arith.addf %188, %193 : vector<1x120xf32>
    %195 = vector.extract_strided_slice %138 {offsets = [9, 0], sizes = [1, 25], strides = [1, 1]} : vector<16x25xf32> to vector<1x25xf32>
    %c9_113 = arith.constant 9 : index
    %c0_114 = arith.constant 0 : index
    %c0_115 = arith.constant 0 : index
    %196 = vector.load %arg4[%c9_113, %c0_114, %c0_115] : memref<16x25x120xbf16, #tpu.memory_space<vmem>>, vector<1x25x120xbf16>
    %197 = vector.shape_cast %196 : vector<1x25x120xbf16> to vector<25x120xbf16>
    %198 = arith.truncf %195 : vector<1x25xf32> to vector<1x25xbf16>
    %cst_116 = arith.constant dense<0.000000e+00> : vector<1x120xf32>
    %199 = tpu.matmul %198, %197, %cst_116 {dimension_numbers = #tpu.dot_dimension_numbers<[1], [0], [0], [1], [0, 0, 1, 1], [], []>} : vector<1x25xbf16>, vector<25x120xbf16>, vector<1x120xf32> -> vector<1x120xf32>
    %200 = arith.addf %194, %199 : vector<1x120xf32>
    %201 = vector.extract_strided_slice %138 {offsets = [10, 0], sizes = [1, 25], strides = [1, 1]} : vector<16x25xf32> to vector<1x25xf32>
    %c10 = arith.constant 10 : index
    %c0_117 = arith.constant 0 : index
    %c0_118 = arith.constant 0 : index
    %202 = vector.load %arg4[%c10, %c0_117, %c0_118] : memref<16x25x120xbf16, #tpu.memory_space<vmem>>, vector<1x25x120xbf16>
    %203 = vector.shape_cast %202 : vector<1x25x120xbf16> to vector<25x120xbf16>
    %204 = arith.truncf %201 : vector<1x25xf32> to vector<1x25xbf16>
    %cst_119 = arith.constant dense<0.000000e+00> : vector<1x120xf32>
    %205 = tpu.matmul %204, %203, %cst_119 {dimension_numbers = #tpu.dot_dimension_numbers<[1], [0], [0], [1], [0, 0, 1, 1], [], []>} : vector<1x25xbf16>, vector<25x120xbf16>, vector<1x120xf32> -> vector<1x120xf32>
    %206 = arith.addf %200, %205 : vector<1x120xf32>
    %207 = vector.extract_strided_slice %138 {offsets = [11, 0], sizes = [1, 25], strides = [1, 1]} : vector<16x25xf32> to vector<1x25xf32>
    %c11 = arith.constant 11 : index
    %c0_120 = arith.constant 0 : index
    %c0_121 = arith.constant 0 : index
    %208 = vector.load %arg4[%c11, %c0_120, %c0_121] : memref<16x25x120xbf16, #tpu.memory_space<vmem>>, vector<1x25x120xbf16>
    %209 = vector.shape_cast %208 : vector<1x25x120xbf16> to vector<25x120xbf16>
    %210 = arith.truncf %207 : vector<1x25xf32> to vector<1x25xbf16>
    %cst_122 = arith.constant dense<0.000000e+00> : vector<1x120xf32>
    %211 = tpu.matmul %210, %209, %cst_122 {dimension_numbers = #tpu.dot_dimension_numbers<[1], [0], [0], [1], [0, 0, 1, 1], [], []>} : vector<1x25xbf16>, vector<25x120xbf16>, vector<1x120xf32> -> vector<1x120xf32>
    %212 = arith.addf %206, %211 : vector<1x120xf32>
    %213 = vector.extract_strided_slice %138 {offsets = [12, 0], sizes = [1, 25], strides = [1, 1]} : vector<16x25xf32> to vector<1x25xf32>
    %c12_123 = arith.constant 12 : index
    %c0_124 = arith.constant 0 : index
    %c0_125 = arith.constant 0 : index
    %214 = vector.load %arg4[%c12_123, %c0_124, %c0_125] : memref<16x25x120xbf16, #tpu.memory_space<vmem>>, vector<1x25x120xbf16>
    %215 = vector.shape_cast %214 : vector<1x25x120xbf16> to vector<25x120xbf16>
    %216 = arith.truncf %213 : vector<1x25xf32> to vector<1x25xbf16>
    %cst_126 = arith.constant dense<0.000000e+00> : vector<1x120xf32>
    %217 = tpu.matmul %216, %215, %cst_126 {dimension_numbers = #tpu.dot_dimension_numbers<[1], [0], [0], [1], [0, 0, 1, 1], [], []>} : vector<1x25xbf16>, vector<25x120xbf16>, vector<1x120xf32> -> vector<1x120xf32>
    %218 = arith.addf %212, %217 : vector<1x120xf32>
    %219 = vector.extract_strided_slice %138 {offsets = [13, 0], sizes = [1, 25], strides = [1, 1]} : vector<16x25xf32> to vector<1x25xf32>
    %c13 = arith.constant 13 : index
    %c0_127 = arith.constant 0 : index
    %c0_128 = arith.constant 0 : index
    %220 = vector.load %arg4[%c13, %c0_127, %c0_128] : memref<16x25x120xbf16, #tpu.memory_space<vmem>>, vector<1x25x120xbf16>
    %221 = vector.shape_cast %220 : vector<1x25x120xbf16> to vector<25x120xbf16>
    %222 = arith.truncf %219 : vector<1x25xf32> to vector<1x25xbf16>
    %cst_129 = arith.constant dense<0.000000e+00> : vector<1x120xf32>
    %223 = tpu.matmul %222, %221, %cst_129 {dimension_numbers = #tpu.dot_dimension_numbers<[1], [0], [0], [1], [0, 0, 1, 1], [], []>} : vector<1x25xbf16>, vector<25x120xbf16>, vector<1x120xf32> -> vector<1x120xf32>
    %224 = arith.addf %218, %223 : vector<1x120xf32>
    %225 = vector.extract_strided_slice %138 {offsets = [14, 0], sizes = [1, 25], strides = [1, 1]} : vector<16x25xf32> to vector<1x25xf32>
    %c14 = arith.constant 14 : index
    %c0_130 = arith.constant 0 : index
    %c0_131 = arith.constant 0 : index
    %226 = vector.load %arg4[%c14, %c0_130, %c0_131] : memref<16x25x120xbf16, #tpu.memory_space<vmem>>, vector<1x25x120xbf16>
    %227 = vector.shape_cast %226 : vector<1x25x120xbf16> to vector<25x120xbf16>
    %228 = arith.truncf %225 : vector<1x25xf32> to vector<1x25xbf16>
    %cst_132 = arith.constant dense<0.000000e+00> : vector<1x120xf32>
    %229 = tpu.matmul %228, %227, %cst_132 {dimension_numbers = #tpu.dot_dimension_numbers<[1], [0], [0], [1], [0, 0, 1, 1], [], []>} : vector<1x25xbf16>, vector<25x120xbf16>, vector<1x120xf32> -> vector<1x120xf32>
    %230 = arith.addf %224, %229 : vector<1x120xf32>
    %231 = vector.extract_strided_slice %138 {offsets = [15, 0], sizes = [1, 25], strides = [1, 1]} : vector<16x25xf32> to vector<1x25xf32>
    %c15_133 = arith.constant 15 : index
    %c0_134 = arith.constant 0 : index
    %c0_135 = arith.constant 0 : index
    %232 = vector.load %arg4[%c15_133, %c0_134, %c0_135] : memref<16x25x120xbf16, #tpu.memory_space<vmem>>, vector<1x25x120xbf16>
    %233 = vector.shape_cast %232 : vector<1x25x120xbf16> to vector<25x120xbf16>
    %234 = arith.truncf %231 : vector<1x25xf32> to vector<1x25xbf16>
    %cst_136 = arith.constant dense<0.000000e+00> : vector<1x120xf32>
    %235 = tpu.matmul %234, %233, %cst_136 {dimension_numbers = #tpu.dot_dimension_numbers<[1], [0], [0], [1], [0, 0, 1, 1], [], []>} : vector<1x25xbf16>, vector<25x120xbf16>, vector<1x120xf32> -> vector<1x120xf32>
    %236 = arith.addf %230, %235 : vector<1x120xf32>
    %cst_137 = arith.constant 0.000000e+00 : f32
    %237 = vector.broadcast %cst_137 : f32 to vector<1x120xf32>
    %238 = arith.maximumf %236, %237 : vector<1x120xf32>
    %c0_138 = arith.constant 0 : index
    %c0_139 = arith.constant 0 : index
    %239 = vector.load %arg5[%c0_138, %c0_139] : memref<576x128xbf16, #tpu.memory_space<vmem>>, vector<120x84xbf16>
    %240 = arith.truncf %238 : vector<1x120xf32> to vector<1x120xbf16>
    %cst_140 = arith.constant dense<0.000000e+00> : vector<1x84xf32>
    %241 = tpu.matmul %240, %239, %cst_140 {dimension_numbers = #tpu.dot_dimension_numbers<[1], [0], [0], [1], [0, 0, 1, 1], [], []>} : vector<1x120xbf16>, vector<120x84xbf16>, vector<1x84xf32> -> vector<1x84xf32>
    %c464 = arith.constant 464 : index
    %c0_141 = arith.constant 0 : index
    %242 = vector.load %arg5[%c464, %c0_141] : memref<576x128xbf16, #tpu.memory_space<vmem>>, vector<1x84xbf16>
    %243 = arith.extf %242 : vector<1x84xbf16> to vector<1x84xf32>
    %244 = arith.addf %241, %243 : vector<1x84xf32>
    %cst_142 = arith.constant 0.000000e+00 : f32
    %245 = vector.broadcast %cst_142 : f32 to vector<1x84xf32>
    %246 = arith.maximumf %244, %245 : vector<1x84xf32>
    %c128 = arith.constant 128 : index
    %c0_143 = arith.constant 0 : index
    %247 = vector.load %arg5[%c128, %c0_143] : memref<576x128xbf16, #tpu.memory_space<vmem>>, vector<84x16xbf16>
    %248 = arith.truncf %246 : vector<1x84xf32> to vector<1x84xbf16>
    %cst_144 = arith.constant dense<0.000000e+00> : vector<1x16xf32>
    %249 = tpu.matmul %248, %247, %cst_144 {dimension_numbers = #tpu.dot_dimension_numbers<[1], [0], [0], [1], [0, 0, 1, 1], [], []>} : vector<1x84xbf16>, vector<84x16xbf16>, vector<1x16xf32> -> vector<1x16xf32>
    %c480 = arith.constant 480 : index
    %c0_145 = arith.constant 0 : index
    %250 = vector.load %arg5[%c480, %c0_145] : memref<576x128xbf16, #tpu.memory_space<vmem>>, vector<1x16xbf16>
    %251 = arith.extf %250 : vector<1x16xbf16> to vector<1x16xf32>
    %252 = arith.addf %249, %251 : vector<1x16xf32>
    %cst_146 = arith.constant 0.000000e+00 : f32
    %253 = vector.broadcast %cst_146 : f32 to vector<1x16xf32>
    %254 = arith.maximumf %252, %253 : vector<1x16xf32>
    %c0_147 = arith.constant 0 : index
    %c0_148 = arith.constant 0 : index
    %255 = vector.load %arg1[%c0_147, %c0_148] : memref<1x1xf32, #tpu.memory_space<vmem>>, vector<1x1xf32>
    %c496 = arith.constant 496 : index
    %c0_149 = arith.constant 0 : index
    %256 = vector.load %arg5[%c496, %c0_149] : memref<576x128xbf16, #tpu.memory_space<vmem>>, vector<1x9xbf16>
    %257 = arith.extf %256 : vector<1x9xbf16> to vector<1x9xf32>
    %258 = vector.broadcast %255 : vector<1x1xf32> to vector<1x9xf32>
    %259 = arith.mulf %258, %257 : vector<1x9xf32>
    %c512 = arith.constant 512 : index
    %c0_150 = arith.constant 0 : index
    %260 = vector.load %arg5[%c512, %c0_150] : memref<576x128xbf16, #tpu.memory_space<vmem>>, vector<1x9xbf16>
    %261 = arith.extf %260 : vector<1x9xbf16> to vector<1x9xf32>
    %262 = arith.addf %259, %261 : vector<1x9xf32>
    %cst_151 = arith.constant 0.000000e+00 : f32
    %263 = vector.broadcast %cst_151 : f32 to vector<1x9xf32>
    %264 = arith.maximumf %262, %263 : vector<1x9xf32>
    %c224 = arith.constant 224 : index
    %c0_152 = arith.constant 0 : index
    %265 = vector.load %arg5[%c224, %c0_152] : memref<576x128xbf16, #tpu.memory_space<vmem>>, vector<9x9xbf16>
    %266 = arith.truncf %264 : vector<1x9xf32> to vector<1x9xbf16>
    %cst_153 = arith.constant dense<0.000000e+00> : vector<1x9xf32>
    %267 = tpu.matmul %266, %265, %cst_153 {dimension_numbers = #tpu.dot_dimension_numbers<[1], [0], [0], [1], [0, 0, 1, 1], [], []>} : vector<1x9xbf16>, vector<9x9xbf16>, vector<1x9xf32> -> vector<1x9xf32>
    %c528 = arith.constant 528 : index
    %c0_154 = arith.constant 0 : index
    %268 = vector.load %arg5[%c528, %c0_154] : memref<576x128xbf16, #tpu.memory_space<vmem>>, vector<1x9xbf16>
    %269 = arith.extf %268 : vector<1x9xbf16> to vector<1x9xf32>
    %270 = arith.addf %267, %269 : vector<1x9xf32>
    %cst_155 = arith.constant 0.000000e+00 : f32
    %271 = vector.broadcast %cst_155 : f32 to vector<1x9xf32>
    %272 = arith.maximumf %270, %271 : vector<1x9xf32>
    %c240 = arith.constant 240 : index
    %c0_156 = arith.constant 0 : index
    %273 = vector.load %arg5[%c240, %c0_156] : memref<576x128xbf16, #tpu.memory_space<vmem>>, vector<16x16xbf16>
    %274 = arith.truncf %254 : vector<1x16xf32> to vector<1x16xbf16>
    %cst_157 = arith.constant dense<0.000000e+00> : vector<1x16xf32>
    %275 = tpu.matmul %274, %273, %cst_157 {dimension_numbers = #tpu.dot_dimension_numbers<[1], [0], [0], [1], [0, 0, 1, 1], [], []>} : vector<1x16xbf16>, vector<16x16xbf16>, vector<1x16xf32> -> vector<1x16xf32>
    %c256 = arith.constant 256 : index
    %c0_158 = arith.constant 0 : index
    %276 = vector.load %arg5[%c256, %c0_158] : memref<576x128xbf16, #tpu.memory_space<vmem>>, vector<9x16xbf16>
    %277 = arith.truncf %272 : vector<1x9xf32> to vector<1x9xbf16>
    %cst_159 = arith.constant dense<0.000000e+00> : vector<1x16xf32>
    %278 = tpu.matmul %277, %276, %cst_159 {dimension_numbers = #tpu.dot_dimension_numbers<[1], [0], [0], [1], [0, 0, 1, 1], [], []>} : vector<1x9xbf16>, vector<9x16xbf16>, vector<1x16xf32> -> vector<1x16xf32>
    %279 = arith.addf %275, %278 : vector<1x16xf32>
    %c544 = arith.constant 544 : index
    %c0_160 = arith.constant 0 : index
    %280 = vector.load %arg5[%c544, %c0_160] : memref<576x128xbf16, #tpu.memory_space<vmem>>, vector<1x16xbf16>
    %281 = arith.extf %280 : vector<1x16xbf16> to vector<1x16xf32>
    %282 = arith.addf %279, %281 : vector<1x16xf32>
    %cst_161 = arith.constant 0.000000e+00 : f32
    %283 = vector.broadcast %cst_161 : f32 to vector<1x16xf32>
    %284 = arith.maximumf %282, %283 : vector<1x16xf32>
    %c272 = arith.constant 272 : index
    %c0_162 = arith.constant 0 : index
    %285 = vector.load %arg5[%c272, %c0_162] : memref<576x128xbf16, #tpu.memory_space<vmem>>, vector<16x10xbf16>
    %286 = arith.truncf %284 : vector<1x16xf32> to vector<1x16xbf16>
    %cst_163 = arith.constant dense<0.000000e+00> : vector<1x10xf32>
    %287 = tpu.matmul %286, %285, %cst_163 {dimension_numbers = #tpu.dot_dimension_numbers<[1], [0], [0], [1], [0, 0, 1, 1], [], []>} : vector<1x16xbf16>, vector<16x10xbf16>, vector<1x10xf32> -> vector<1x10xf32>
    %c560 = arith.constant 560 : index
    %c0_164 = arith.constant 0 : index
    %288 = vector.load %arg5[%c560, %c0_164] : memref<576x128xbf16, #tpu.memory_space<vmem>>, vector<1x10xbf16>
    %289 = arith.extf %288 : vector<1x10xbf16> to vector<1x10xf32>
    %290 = arith.addf %287, %289 : vector<1x10xf32>
    %cst_165 = arith.constant dense<0xFF800000> : vector<1xf32>
    %291 = vector.multi_reduction <maximumf>, %290, %cst_165 [1] : vector<1x10xf32> to vector<1xf32>
    %292 = vector.shape_cast %291 : vector<1xf32> to vector<1x1xf32>
    %293 = vector.broadcast %292 : vector<1x1xf32> to vector<1x10xf32>
    %294 = arith.subf %290, %293 : vector<1x10xf32>
    %295 = math.exp %294 : vector<1x10xf32>
    %cst_166 = arith.constant dense<0.000000e+00> : vector<1xf32>
    %296 = vector.multi_reduction <add>, %295, %cst_166 [1] : vector<1x10xf32> to vector<1xf32>
    %297 = vector.shape_cast %296 : vector<1xf32> to vector<1x1xf32>
    %298 = tpu.reciprocal %297 {approx = true} : vector<1x1xf32> -> vector<1x1xf32>
    %299 = vector.broadcast %298 : vector<1x1xf32> to vector<1x10xf32>
    %300 = arith.mulf %295, %299 : vector<1x10xf32>
    %c0_167 = arith.constant 0 : index
    %c0_168 = arith.constant 0 : index
    %301 = vector.load %arg6[%c0_167, %c0_168] : memref<1x10xf32, #tpu.memory_space<vmem>>, vector<1x10xf32>
    tpu.vector_store %arg6[%c0_167, %c0_168], %300 {strides = array<i32>} : memref<1x10xf32, #tpu.memory_space<vmem>>, vector<1x10xf32>,
    return
  }
}

</mosaic_0001>

<bundles_post_ra>
// kernel: forward_pallas.1
= control target key start
LH: loop header
LB: loop body
LE: loop exit
PB: predicated region body
PF: predicated region fallthrough
CT: control target
= control target key end

     0   :  { %s7636_s0 = inlined_call_operand.vmem [shape: f32[3,1024], index: 0, kind: input, shape index: {}]   ;;  %s7637_s1 = inlined_call_operand.<no memory space> [shape: f32[1,1], index: 1, kind: input, shape index: {}]   ;;  %s7638_s2 = inlined_call_operand.vmem [shape: bf16[32,150], index: 2, kind: input, shape index: {}]   ;;  %s7639_s3 = inlined_call_operand.vmem [shape: bf16[859,196], index: 3, kind: input, shape index: {}]   ;;  %s7640_s4 = inlined_call_operand.vmem [shape: bf16[16,25,120], index: 4, kind: input, shape index: {}]   ;;  %s7641_s5 = inlined_call_operand.vmem [shape: bf16[576,128], index: 5, kind: input, shape index: {}]   ;;  %s7642_s6 = inlined_call_operand.hbm [shape: f32[1,10], index: 6, kind: output, shape index: {}]  }
   0x1   :  { %v11_v0 = vstv %s7637_s1 }
   0x2   :  { %12 = vst [vmem:[#allocation3] sm:$0x1] %v11_v0 }
   0x3   :  { %v5240_v1 = vld [vmem:[%s7636_s0 + $0x8] sm:$0x77]  ;;  %v5245_v2 = vld [vmem:[%s7636_s0] sm:$0x77] }
   0x4   :  { %37 = vst [vmem:[#allocation1 + $0x10] ss:$2 sm:$0xff] %v5240_v1 }
   0x5   :  { %13 = vsyncpa [#allocation5], 0  ;;  %35 = vst [vmem:[#allocation1] ss:$2 sm:$0xff] %v5245_v2  ;;  %v5254_v7 = vld [vmem:[%s7636_s0 + $0x10] sm:$0x77] }
   0x6   :  { %39 = vst [vmem:[#allocation1 + $0x20] ss:$2 sm:$0xff] %v5254_v7  ;;  %s5158_s28 = smov 96   ;;  %v5322_v42 = vld [vmem:[%s7636_s0 + $0x18] sm:$0x77]  ;;  %s5159_s7 = smov 95  }
   0x7   :  { %41 = vst [vmem:[#allocation1 + $0x30] ss:$2 sm:$0xff] %v5322_v42  ;;  %s5160_s0 = smov 94   ;;  %s5161_s8 = smov 93   ;;  %vm7651_vm0 = vcmask 769024   ;;  %vm7653_vm1 = vcmask 785408  }
   0x8   :  { %s5162_s9 = smov 92   ;;  %s5163_s10 = smov 64   ;;  %vm7661_vm2 = vcmask 777216   ;;  %vm7652_vm3 = vcmask 760832   ;;  %vm7663_vm4 = vcmask 752640   ;;  %vm709_vm5 = vcmask 515072  }
   0x9   :  { %s5164_s11 = smov 63   ;;  %s5165_s12 = smov 62   ;;  %vm641_vm6 = vcmask 523264   ;;  %vm763_vm7 = vcmask 506880   ;;  %vm892_vm8 = vcmask 490496   ;;  %vm7656_vm9 = vcmask 498688  }
   0xa   :  { %s5166_s13 = smov 61   ;;  %s5167_s14 = smov 60   ;;  %vm953_vm10 = vcmask 261120   ;;  %vm7655_vm11 = vcmask 252928   ;;  %vm7659_vm12 = vcmask 244736   ;;  %vm1128_vm13 = vcmask 236544  }
   0xb   :  { %v44_v3 = vld.sshfl [vmem:[#allocation1 + $0x10] sm:$0xff pattern:$0x75316420]  ;;  %v45_v4 = vld.sshfl [vmem:[#allocation1 + $0x18] sm:$0xff pattern:$0x75316420] }
   0xc   :  { %66 = vst [vmem:[#allocation1 + $0x10] ss:$2 sm:$0xff] %v5240_v1  ;;  %v42_v5 = vld.sshfl [vmem:[#allocation1] sm:$0xff pattern:$0x75316420]  ;;  %s5168_s15 = smov 32  }
   0xd   :  { %58 = vst [vmem:[#allocation2 + $0x10] sm:$0x7] %v44_v3  ;;  %v43_v6 = vld.sshfl [vmem:[#allocation1 + $0x8] sm:$0xff pattern:$0x75316420]  ;;  %s5169_s16 = smov 31  }
   0xe   :  { %59 = vst [vmem:[#allocation2 + $0x18] sm:$0x7] %v45_v4  ;;  %v46_v12 = vld.sshfl [vmem:[#allocation1 + $0x20] sm:$0xff pattern:$0x75316420]  ;;  %s5170_s17 = smov 30  }
   0xf   :  { %64 = vst [vmem:[#allocation1] ss:$2 sm:$0xff] %v5245_v2  ;;  %v47_v13 = vld.sshfl [vmem:[#allocation1 + $0x28] sm:$0xff pattern:$0x75316420]  ;;  %s5171_s18 = smov 29  }
  0x10   :  { %56 = vst [vmem:[#allocation2] sm:$0x7] %v42_v5  ;;  %v5343_v58 = vld.sshfl [vmem:[#allocation1 + $0x30] sm:$0xff pattern:$0x75316420]  ;;  %s5172_s19 = smov 28  }
  0x11   :  { %57 = vst [vmem:[#allocation2 + $0x8] sm:$0x7] %v43_v6  ;;  %s5173_s20 = smov 127   ;;  %s5174_s21 = smov 126   ;;  %vm7654_vm14 = vcmask 228352   ;;  %vm221_vm15 = vcmask 1022976  }
  0x12   :  { %68 = vst [vmem:[#allocation1 + $0x20] ss:$2 sm:$0xff] %v5254_v7  ;;  %s5175_s22 = smov 125   ;;  %s5176_s23 = smov 124  }
  0x13   :  { %v5257_v8 = vld.sshfl [vmem:[#allocation1 + $0x10] sm:$0xff pattern:$0x75316420]  ;;  %v5259_v9 = vld.sshfl [vmem:[#allocation1 + $0x18] sm:$0xff pattern:$0x75316420] }
  0x14   :  { %123 = vst [vmem:[#allocation1 + $0x10] ss:$2 sm:$0xff] %v5240_v1  ;;  %s5185_s24 = smov 71   ;;  %s5186_s25 = smov 84  }
  0x15   :  { %60 = vst [vmem:[#allocation2 + $0x20] sm:$0x7] %v46_v12  ;;  %s5187_s26 = smov 82   ;;  %s5188_s1 = smov 97  }
  0x16   :  { %v5262_v10 = vld.sshfl [vmem:[#allocation1] sm:$0xff pattern:$0x75316420]  ;;  %v5264_v11 = vld.sshfl [vmem:[#allocation1 + $0x8] sm:$0xff pattern:$0x75316420] }
  0x17   :  { %121 = vst [vmem:[#allocation1] ss:$2 sm:$0xff] %v5245_v2  ;;  %s5189_s27 = smov 86   ;;  %s5190_s29 = smov 99  }
  0x18   :  { %61 = vst [vmem:[#allocation2 + $0x28] sm:$0x7] %v47_v13  ;;  %s5191_s30 = smov 100  }
  0x19   :  { %v5278_v18 = vld.sshfl [vmem:[#allocation1 + $0x20] sm:$0xff pattern:$0x75316420]  ;;  %v5280_v19 = vld.sshfl [vmem:[#allocation1 + $0x28] sm:$0xff pattern:$0x75316420] }
  0x1a   :  { %7667 = vst [vmem:[#allocation7_spill] sm:$0xff] %v5278_v18 }
  0x1b   :  { %v5268_v14 = vld.sshfl [vmem:[#allocation1 + $0x10] sm:$0xff pattern:$0x75316420]  ;;  %v5270_v15 = vld.sshfl [vmem:[#allocation1 + $0x18] sm:$0xff pattern:$0x75316420] }
  0x1c   :  { %188 = vst [vmem:[#allocation1 + $0x10] ss:$2 sm:$0xff] %v5240_v1 }
  0x1d   :  { %7668 = vst [vmem:[#allocation8_spill] sm:$0xff] %v5280_v19 }
  0x1e   :  { %v5273_v16 = vld.sshfl [vmem:[#allocation1] sm:$0xff pattern:$0x75316420]  ;;  %v5275_v17 = vld.sshfl [vmem:[#allocation1 + $0x8] sm:$0xff pattern:$0x75316420] }
  0x1f   :  { %186 = vst [vmem:[#allocation1] ss:$2 sm:$0xff] %v5245_v2 }
  0x20   :  { %125 = vst [vmem:[#allocation1 + $0x20] ss:$2 sm:$0xff] %v5254_v7 }
  0x21   :  { %7676 = vst [vmem:[#allocation16_spill] sm:$0xff] %v5343_v58 }
  0x22   :  { %70 = vst [vmem:[#allocation1 + $0x30] ss:$2 sm:$0xff] %v5322_v42 }
  0x23   :  { %v5283_v20 = vld.sshfl [vmem:[#allocation1 + $0x10] sm:$0xff pattern:$0x75316420]  ;;  %v5285_v21 = vld.sshfl [vmem:[#allocation1 + $0x18] sm:$0xff pattern:$0x75316420] }
  0x24   :  { %246 = vst [vmem:[#allocation1 + $0x11] ss:$2 sm:$0xff] %v5240_v1 }
  0x26   :  { %v5288_v22 = vld.sshfl [vmem:[#allocation1] sm:$0xff pattern:$0x75316420]  ;;  %v5290_v23 = vld.sshfl [vmem:[#allocation1 + $0x8] sm:$0xff pattern:$0x75316420] }
  0x27   :  { %244 = vst [vmem:[#allocation1 + $0x1] ss:$2 sm:$0xff] %v5245_v2  ;;  %v5293_v24 = vld.sshfl [vmem:[#allocation1 + $0x20] sm:$0xff pattern:$0x75316420] }
  0x28   :  { %7669 = vst [vmem:[#allocation9_spill] sm:$0xff] %v5293_v24  ;;  %v5295_v25 = vld.sshfl [vmem:[#allocation1 + $0x28] sm:$0xff pattern:$0x75316420] }
  0x29   :  { %7670 = vst [vmem:[#allocation10_spill] sm:$0xff] %v5295_v25  ;;  %v5356_v6 = vld.sshfl [vmem:[#allocation1 + $0x30] sm:$0xff pattern:$0x75316420] }
  0x2a   :  { %190 = vst [vmem:[#allocation1 + $0x20] ss:$2 sm:$0xff] %v5254_v7 }
  0x2b   :  { %v5298_v26 = vld.sshfl [vmem:[#allocation1 + $0x10] sm:$0xff pattern:$0x75316420]  ;;  %v5300_v27 = vld.sshfl [vmem:[#allocation1 + $0x18] sm:$0xff pattern:$0x75316420] }
  0x2c   :  { %296 = vst [vmem:[#allocation1 + $0x10] ss:$2 sm:$0xff] %v5240_v1 }
  0x2d   :  { %7678 = vst [vmem:[#allocation18_spill] sm:$0xff] %v5356_v6 }
  0x2e   :  { %v5303_v28 = vld.sshfl [vmem:[#allocation1] sm:$0xff pattern:$0x75316420]  ;;  %v5305_v29 = vld.sshfl [vmem:[#allocation1 + $0x8] sm:$0xff pattern:$0x75316420] }
  0x2f   :  { %294 = vst [vmem:[#allocation1] ss:$2 sm:$0xff] %v5245_v2 }
  0x30   :  { %127 = vst [vmem:[#allocation1 + $0x30] ss:$2 sm:$0xff] %v5322_v42 }
  0x31   :  { %v5308_v30 = vld.sshfl [vmem:[#allocation1 + $0x20] sm:$0xff pattern:$0x75316420]  ;;  %v5310_v31 = vld.sshfl [vmem:[#allocation1 + $0x28] sm:$0xff pattern:$0x75316420] }
  0x32   :  { %7671 = vst [vmem:[#allocation11_spill] sm:$0xff] %v5308_v30 }
  0x33   :  { %7672 = vst [vmem:[#allocation12_spill] sm:$0xff] %v5310_v31  ;;  %v304_v32 = vld.sshfl [vmem:[#allocation1 + $0x18] sm:$0xff pattern:$0x75316420] }
  0x34   :  { %v303_v33 = vld.sshfl [vmem:[#allocation1 + $0x10] sm:$0xff pattern:$0x75316420]  ;;  %v312_v34 = vrot.slane %v304_v32, 1  ;;  %248 = vst [vmem:[#allocation1 + $0x21] ss:$2 sm:$0xff] %v5254_v7 }
  0x35   :  { %366 = vst [vmem:[#allocation1 + $0x10] ss:$2 sm:$0xff] %v5240_v1  ;;  %v311_v41 = vrot.slane %v303_v33, 1 }
  0x36   :  { %323 = vrot.lane.b32.xlu2 %v312_v34, %s5158_s28  ;;  %v302_v35 = vld.sshfl [vmem:[#allocation1 + $0x8] sm:$0xff pattern:$0x75316420]  ;;  %v301_v36 = vld.sshfl [vmem:[#allocation1] sm:$0xff pattern:$0x75316420] }
  0x37   :  { %v310_v37 = vrot.slane %v302_v35, 1  ;;  %v309_v38 = vrot.slane %v301_v36, 1  ;;  %364 = vst [vmem:[#allocation1] ss:$2 sm:$0xff] %v5245_v2 }
  0x38   :  { %v5374_v36 = vld.sshfl [vmem:[#allocation1 + $0x30] sm:$0xff pattern:$0x75316420] }
  0x39   :  { %319 = vrot.lane.b32.xlu1 %v310_v37, %s5158_s28  ;;  %317 = vrot.lane.b32.xlu0 %v309_v38, %s5158_s28  ;;  %7680 = vst [vmem:[#allocation20_spill] sm:$0xff] %v5374_v36 }
  0x3a   :  { %192 = vst [vmem:[#allocation1 + $0x30] ss:$2 sm:$0xff] %v5322_v42 }
  0x3b   :  { %v5324_v43 = vld.sshfl [vmem:[#allocation1 + $0x20] sm:$0xff pattern:$0x75316420]  ;;  %v5326_v44 = vld.sshfl [vmem:[#allocation1 + $0x28] sm:$0xff pattern:$0x75316420] }
  0x3c   :  { %v374_v39 = vld.sshfl [vmem:[#allocation1 + $0x18] sm:$0xff pattern:$0x75316420]  ;;  %v373_v40 = vld.sshfl [vmem:[#allocation1 + $0x10] sm:$0xff pattern:$0x75316420] }
  0x3d   :  { %428 = vst [vmem:[#allocation1 + $0x10] ss:$2 sm:$0xff] %v5240_v1  ;;  %v382_v51 = vrot.slane %v374_v39, 6  ;;  %v381_v52 = vrot.slane %v373_v40, 6 }
  0x3e   :  { %7673 = vst [vmem:[#allocation13_spill] sm:$0xff] %v5324_v43  ;;  %v371_v45 = vld.sshfl [vmem:[#allocation1] sm:$0xff pattern:$0x75316420] }
  0x3f   :  { %7674 = vst [vmem:[#allocation14_spill] sm:$0xff] %v5326_v44  ;;  %v372_v46 = vld.sshfl [vmem:[#allocation1 + $0x8] sm:$0xff pattern:$0x75316420]  ;;  %v379_v47 = vrot.slane %v371_v45, 6 }
  0x40   :  { %v380_v48 = vrot.slane %v372_v46, 6  ;;  %426 = vst [vmem:[#allocation1] ss:$2 sm:$0xff] %v5245_v2 }
  0x41   :  { %298 = vst [vmem:[#allocation1 + $0x20] ss:$2 sm:$0xff] %v5254_v7  ;;  %321 = vrot.lane.b32.xlu1 %v311_v41, %s5158_s28  ;;  %387 = vrot.lane.b32.xlu2 %v379_v47, %s5159_s7 }
  0x42   :  { %389 = vrot.lane.b32.xlu0 %v380_v48, %s5159_s7 }
  0x44   :  { %v435_v49 = vld.sshfl [vmem:[#allocation1 + $0x10] sm:$0xff pattern:$0x75316420]  ;;  %v436_v50 = vld.sshfl [vmem:[#allocation1 + $0x18] sm:$0xff pattern:$0x75316420] }
  0x45   :  { %490 = vst [vmem:[#allocation1 + $0x10] ss:$2 sm:$0xff] %v5240_v1  ;;  %v443_v62 = vrot.slane %v435_v49, 3  ;;  %v444_v63 = vrot.slane %v436_v50, 3 }
  0x47   :  { %v434_v53 = vld.sshfl [vmem:[#allocation1 + $0x8] sm:$0xff pattern:$0x75316420]  ;;  %v433_v54 = vld.sshfl [vmem:[#allocation1] sm:$0xff pattern:$0x75316420] }
  0x48   :  { %v442_v55 = vrot.slane %v434_v53, 3  ;;  %488 = vst [vmem:[#allocation1] ss:$2 sm:$0xff] %v5245_v2  ;;  %v5336_v56 = vld.sshfl [vmem:[#allocation1 + $0x20] sm:$0xff pattern:$0x75316420] }
  0x49   :  { %v5338_v57 = vld.sshfl [vmem:[#allocation1 + $0x28] sm:$0xff pattern:$0x75316420]  ;;  %393 = vrot.lane.b32.xlu1 %v382_v51, %s5159_s7  ;;  %v441_v61 = vrot.slane %v433_v54, 3 }
  0x4a   :  { %7675 = vst [vmem:[#allocation15_spill] sm:$0xff] %v5338_v57  ;;  %451 = vrot.lane.b32.xlu2 %v442_v55, %s5160_s0  ;;  %391 = vrot.lane.b32.xlu0 %v381_v52, %s5159_s7  ;;  %v5388_v53 = vld.sshfl [vmem:[#allocation1 + $0x30] sm:$0xff pattern:$0x75316420] }
  0x4b   :  { %368 = vst [vmem:[#allocation1 + $0x20] ss:$2 sm:$0xff] %v5254_v7 }
  0x4c   :  { %v498_v59 = vld.sshfl [vmem:[#allocation1 + $0x18] sm:$0xff pattern:$0x75316420]  ;;  %v497_v60 = vld.sshfl [vmem:[#allocation1 + $0x10] sm:$0xff pattern:$0x75316420] }
  0x4d   :  { %543 = vst [vmem:[#allocation1 + $0x10] ss:$2 sm:$0xff] %v5240_v1 }
  0x4e   :  { %7682 = vst [vmem:[#allocation22_spill] sm:$0xff] %v5388_v53 }
  0x4f   :  { %v496_v0 = vld.sshfl [vmem:[#allocation1 + $0x8] sm:$0xff pattern:$0x75316420]  ;;  %v495_v3 = vld.sshfl [vmem:[#allocation1] sm:$0xff pattern:$0x75316420] }
  0x50   :  { %541 = vst [vmem:[#allocation1] ss:$2 sm:$0xff] %v5245_v2 }
  0x51   :  { %449 = vrot.lane.b32.xlu1 %v441_v61, %s5160_s0  ;;  %250 = vst [vmem:[#allocation1 + $0x31] ss:$2 sm:$0xff] %v5322_v42 }
  0x52   :  { %v5349_v4 = vld.sshfl [vmem:[#allocation1 + $0x20] sm:$0xff pattern:$0x75316420]  ;;  %v5351_v5 = vld.sshfl [vmem:[#allocation1 + $0x28] sm:$0xff pattern:$0x75316420]  ;;  %453 = vrot.lane.b32.xlu2 %v443_v62, %s5160_s0  ;;  %455 = vrot.lane.b32.xlu0 %v444_v63, %s5160_s0 }
  0x53   :  { %7677 = vst [vmem:[#allocation17_spill] sm:$0xff] %v5351_v5 }
  0x54   :  { %430 = vst [vmem:[#allocation1 + $0x20] ss:$2 sm:$0xff] %v5254_v7  ;;  %v5360_v12 = vld.sshfl [vmem:[#allocation1 + $0x10] sm:$0xff pattern:$0x75316420] }
  0x55   :  { %v5362_v13 = vld.sshfl [vmem:[#allocation1 + $0x18] sm:$0xff pattern:$0x75316420] }
  0x56   :  { %604 = vst [vmem:[#allocation1 + $0x10] ss:$2 sm:$0xff] %v5240_v1 }
  0x57   :  { %v548_v32 = vld.sshfl [vmem:[#allocation1] sm:$0xff pattern:$0x75316420]  ;;  %v549_v33 = vld.sshfl [vmem:[#allocation1 + $0x8] sm:$0xff pattern:$0x75316420] }
  0x58   :  { %602 = vst [vmem:[#allocation1] ss:$2 sm:$0xff] %v5245_v2  ;;  %v556_v39 = vrot.slane %v548_v32, 5  ;;  %v557_v40 = vrot.slane %v549_v33, 5 }
  0x59   :  { %505 = vrot.lane.b32.xlu1 %v496_v0, %s5161_s8 }
  0x5a   :  { %509 = vrot.lane.b32.xlu2 %v498_v59, %s5161_s8  ;;  %503 = vrot.lane.b32.xlu0 %v495_v3, %s5161_s8 }
  0x5b   :  { %v5366_v34 = vld.sshfl [vmem:[#allocation1 + $0x20] sm:$0xff pattern:$0x75316420]  ;;  %v5370_v35 = vld.sshfl [vmem:[#allocation1 + $0x28] sm:$0xff pattern:$0x75316420] }
  0x5c   :  { %7679 = vst [vmem:[#allocation19_spill] sm:$0xff] %v5370_v35 }
  0x5d   :  { %492 = vst [vmem:[#allocation1 + $0x20] ss:$2 sm:$0xff] %v5254_v7  ;;  %v612_v37 = vld.sshfl [vmem:[#allocation1 + $0x18] sm:$0xff pattern:$0x75316420] }
  0x5e   :  { %v611_v38 = vld.sshfl [vmem:[#allocation1 + $0x10] sm:$0xff pattern:$0x75316420]  ;;  %v620_v50 = vrot.slane %v612_v37, 2 }
  0x5f   :  { %672 = vst [vmem:[#allocation1 + $0x10] ss:$2 sm:$0xff] %v5240_v1  ;;  %v609_v41 = vld.sshfl [vmem:[#allocation1] sm:$0xff pattern:$0x75316420]  ;;  %v619_v3 = vrot.slane %v611_v38, 2 }
  0x60   :  { %v610_v45 = vld.sshfl [vmem:[#allocation1 + $0x8] sm:$0xff pattern:$0x75316420]  ;;  %v617_v51 = vrot.slane %v609_v41, 2 }
  0x61   :  { %670 = vst [vmem:[#allocation1] ss:$2 sm:$0xff] %v5245_v2  ;;  %507 = vrot.lane.b32.xlu1 %v497_v60, %s5161_s8  ;;  %v618_v52 = vrot.slane %v610_v45, 2  ;;  %v5402_v37 = vld.sshfl [vmem:[#allocation1 + $0x30] sm:$0xff pattern:$0x75316420] }
  0x62   :  { %564 = vrot.lane.b32.xlu2 %v556_v39, %s5162_s9  ;;  %566 = vrot.lane.b32.xlu0 %v557_v40, %s5162_s9  ;;  %7684 = vst [vmem:[#allocation24_spill] sm:$0xff] %v5402_v37 }
  0x63   :  { %300 = vst [vmem:[#allocation1 + $0x30] ss:$2 sm:$0xff] %v5322_v42 }
  0x64   :  { %v5381_v46 = vld.sshfl [vmem:[#allocation1 + $0x20] sm:$0xff pattern:$0x75316420]  ;;  %v5383_v47 = vld.sshfl [vmem:[#allocation1 + $0x28] sm:$0xff pattern:$0x75316420] }
  0x65   :  { %7681 = vst [vmem:[#allocation21_spill] sm:$0xff] %v5383_v47 }
  0x66   :  { %545 = vst [vmem:[#allocation1 + $0x20] ss:$2 sm:$0xff] %v5254_v7  ;;  %v679_v48 = vld.sshfl [vmem:[#allocation1 + $0x10] sm:$0xff pattern:$0x75316420] }
  0x67   :  { %v680_v49 = vld.sshfl [vmem:[#allocation1 + $0x18] sm:$0xff pattern:$0x75316420]  ;;  %v687_v45 = vrot.slane %v679_v48, 7 }
  0x68   :  { %734 = vst [vmem:[#allocation1 + $0x11] ss:$2 sm:$0xff] %v5240_v1  ;;  %v677_v54 = vld.sshfl [vmem:[#allocation1] sm:$0xff pattern:$0x75316420] }
  0x69   :  { %v678_v55 = vld.sshfl [vmem:[#allocation1 + $0x8] sm:$0xff pattern:$0x75316420]  ;;  %631 = vrot.lane.b32.xlu1 %v620_v50, %s5163_s10  ;;  %v685_v63 = vrot.slane %v677_v54, 7  ;;  %v688_v50 = vrot.slane %v680_v49, 7 }
  0x6a   :  { %732 = vst [vmem:[#allocation1 + $0x1] ss:$2 sm:$0xff] %v5245_v2  ;;  %625 = vrot.lane.b32.xlu2 %v617_v51, %s5163_s10  ;;  %627 = vrot.lane.b32.xlu0 %v618_v52, %s5163_s10  ;;  %v686_v0 = vrot.slane %v678_v55, 7  ;;  %v5417_v54 = vld.sshfl [vmem:[#allocation1 + $0x30] sm:$0xff pattern:$0x75316420] }
  0x6b   :  { %7685 = vst [vmem:[#allocation25_spill] sm:$0xff] %v5417_v54  ;;  %v5427_v48 = vld.sshfl [vmem:[#allocation1 + $0x38] sm:$0xff pattern:$0x75316420] }
  0x6c   :  { %7687 = vst [vmem:[#allocation27_spill] sm:$0xff] %v5427_v48 }
  0x6d   :  { %v5394_v59 = vld.sshfl [vmem:[#allocation1 + $0x20] sm:$0xff pattern:$0x75316420]  ;;  %v5396_v60 = vld.sshfl [vmem:[#allocation1 + $0x28] sm:$0xff pattern:$0x75316420] }
  0x6e   :  { %7683 = vst [vmem:[#allocation23_spill] sm:$0xff] %v5396_v60 }
  0x6f   :  { %606 = vst [vmem:[#allocation1 + $0x20] ss:$2 sm:$0xff] %v5254_v7  ;;  %v741_v61 = vld.sshfl [vmem:[#allocation1 + $0x10] sm:$0xff pattern:$0x75316420] }
  0x70   :  { %v742_v62 = vld.sshfl [vmem:[#allocation1 + $0x18] sm:$0xff pattern:$0x75316420]  ;;  %370 = vst [vmem:[#allocation1 + $0x30] ss:$2 sm:$0xff] %v5322_v42 }
  0x71   :  { %787 = vst [vmem:[#allocation1 + $0x10] ss:$2 sm:$0xff] %v5240_v1  ;;  %v740_v32 = vld.sshfl [vmem:[#allocation1 + $0x8] sm:$0xff pattern:$0x75316420]  ;;  %693 = vrot.lane.b32.xlu1 %v685_v63, %s5164_s11 }
  0x72   :  { %v739_v33 = vld.sshfl [vmem:[#allocation1] sm:$0xff pattern:$0x75316420]  ;;  %695 = vrot.lane.b32.xlu2 %v686_v0, %s5164_s11  ;;  %629 = vrot.lane.b32.xlu0 %v619_v3, %s5163_s10 }
  0x73   :  { %785 = vst [vmem:[#allocation1] ss:$2 sm:$0xff] %v5245_v2 }
  0x76   :  { %v5407_v39 = vld.sshfl [vmem:[#allocation1 + $0x20] sm:$0xff pattern:$0x75316420]  ;;  %v5409_v40 = vld.sshfl [vmem:[#allocation1 + $0x28] sm:$0xff pattern:$0x75316420] }
  0x77   :  { %674 = vst [vmem:[#allocation1 + $0x20] ss:$2 sm:$0xff] %v5254_v7 }
  0x78   :  { %v795_v38 = vld.sshfl [vmem:[#allocation1 + $0x18] sm:$0xff pattern:$0x75316420]  ;;  %v5413_v41 = vld.sshfl [vmem:[#allocation1 + $0x10] sm:$0xff pattern:$0x75316420] }
  0x79   :  { %855 = vst [vmem:[#allocation1 + $0x10] ss:$2 sm:$0xff] %v5240_v1  ;;  %749 = vrot.lane.b32.xlu1 %v740_v32, %s5165_s12  ;;  %v803_v44 = vrot.slane %v795_v38, 1  ;;  %v802_v48 = vrot.slane %v5413_v41, 1 }
  0x7a   :  { %v792_v51 = vld.sshfl [vmem:[#allocation1] sm:$0xff pattern:$0x75316420]  ;;  %v793_v52 = vld.sshfl [vmem:[#allocation1 + $0x8] sm:$0xff pattern:$0x75316420]  ;;  %697 = vrot.lane.b32.xlu2 %v687_v45, %s5164_s11  ;;  %699 = vrot.lane.b32.xlu0 %v688_v50, %s5164_s11 }
  0x7b   :  { %853 = vst [vmem:[#allocation1] ss:$2 sm:$0xff] %v5245_v2  ;;  %v800_v36 = vrot.slane %v792_v51, 1  ;;  %v801_v6 = vrot.slane %v793_v52, 1 }
  0x7e   :  { %v5421_v55 = vld.sshfl [vmem:[#allocation1 + $0x20] sm:$0xff pattern:$0x75316420]  ;;  %v5423_v63 = vld.sshfl [vmem:[#allocation1 + $0x28] sm:$0xff pattern:$0x75316420] }
  0x7f   :  { %7686 = vst [vmem:[#allocation26_spill] sm:$0xff] %v5423_v63 }
  0x80   :  { %736 = vst [vmem:[#allocation1 + $0x21] ss:$2 sm:$0xff] %v5254_v7  ;;  %v5429_v49 = vld.sshfl [vmem:[#allocation1 + $0x10] sm:$0xff pattern:$0x75316420] }
  0x81   :  { %v5431_v0 = vld.sshfl [vmem:[#allocation1 + $0x18] sm:$0xff pattern:$0x75316420]  ;;  %751 = vrot.lane.b32.xlu1 %v741_v61, %s5165_s12  ;;  %v5449_v61 = vld.sshfl [vmem:[#allocation1 + $0x30] sm:$0xff pattern:$0x75316420] }
  0x82   :  { %916 = vst [vmem:[#allocation1 + $0x10] ss:$2 sm:$0xff] %v5240_v1  ;;  %v860_v3 = vld.sshfl [vmem:[#allocation1] sm:$0xff pattern:$0x75316420]  ;;  %753 = vrot.lane.b32.xlu2 %v742_v62, %s5165_s12  ;;  %747 = vrot.lane.b32.xlu0 %v739_v33, %s5165_s12 }
  0x83   :  { %v861_v32 = vld.sshfl [vmem:[#allocation1 + $0x8] sm:$0xff pattern:$0x75316420]  ;;  %7689 = vst [vmem:[#allocation29_spill] sm:$0xff] %v5449_v61  ;;  %v868_v25 = vrot.slane %v860_v3, 6 }
  0x84   :  { %914 = vst [vmem:[#allocation1] ss:$2 sm:$0xff] %v5245_v2  ;;  %v5451_v62 = vld.sshfl [vmem:[#allocation1 + $0x38] sm:$0xff pattern:$0x75316420] }
  0x85   :  { %7690 = vst [vmem:[#allocation30_spill] sm:$0xff] %v5451_v62  ;;  %v869_v62 = vrot.slane %v861_v32, 6 }
  0x86   :  { %432 = vst [vmem:[#allocation1 + $0x30] ss:$2 sm:$0xff] %v5322_v42 }
  0x87   :  { %v5438_v45 = vld.sshfl [vmem:[#allocation1 + $0x20] sm:$0xff pattern:$0x75316420]  ;;  %v5440_v50 = vld.sshfl [vmem:[#allocation1 + $0x28] sm:$0xff pattern:$0x75316420] }
  0x88   :  { %7688 = vst [vmem:[#allocation28_spill] sm:$0xff] %v5440_v50 }
  0x89   :  { %789 = vst [vmem:[#allocation1 + $0x20] ss:$2 sm:$0xff] %v5254_v7  ;;  %v5444_v53 = vld.sshfl [vmem:[#allocation1 + $0x10] sm:$0xff pattern:$0x75316420]  ;;  %814 = vrot.lane.b32.xlu1 %v803_v44, %s5166_s13 }
  0x8a   :  { %v5446_v37 = vld.sshfl [vmem:[#allocation1 + $0x18] sm:$0xff pattern:$0x75316420]  ;;  %808 = vrot.lane.b32.xlu2 %v800_v36, %s5166_s13  ;;  %810 = vrot.lane.b32.xlu0 %v801_v6, %s5166_s13 }
  0x8b   :  { %977 = vst [vmem:[#allocation1 + $0x10] ss:$2 sm:$0xff] %v5240_v1  ;;  %v922_v31 = vld.sshfl [vmem:[#allocation1 + $0x8] sm:$0xff pattern:$0x75316420] }
  0x8c   :  { %v921_v19 = vld.sshfl [vmem:[#allocation1] sm:$0xff pattern:$0x75316420] }
  0x8d   :  { %975 = vst [vmem:[#allocation1] ss:$2 sm:$0xff] %v5245_v2  ;;  %v5470_v47 = vld.sshfl [vmem:[#allocation1 + $0x30] sm:$0xff pattern:$0x75316420] }
  0x8e   :  { %7692 = vst [vmem:[#allocation32_spill] sm:$0xff] %v5470_v47  ;;  %v5472_v61 = vld.sshfl [vmem:[#allocation1 + $0x38] sm:$0xff pattern:$0x75316420] }
  0x8f   :  { %7693 = vst [vmem:[#allocation33_spill] sm:$0xff] %v5472_v61  ;;  %v930_v61 = vrot.slane %v922_v31, 3 }
  0x90   :  { %v5457_v33 = vld.sshfl [vmem:[#allocation1 + $0x20] sm:$0xff pattern:$0x75316420]  ;;  %v5459_v38 = vld.sshfl [vmem:[#allocation1 + $0x28] sm:$0xff pattern:$0x75316420]  ;;  %v5476_v6 = vpop.permute.xlu2 %323 }
  0x91   :  { %7691 = vst [vmem:[#allocation31_spill] sm:$0xff] %v5459_v38  ;;  %876 = vrot.lane.b32.xlu1 %v868_v25, %s5167_s14  ;;  %v870_v25 = vrot.slane %v5429_v49, 6 }
  0x92   :  { %857 = vst [vmem:[#allocation1 + $0x20] ss:$2 sm:$0xff] %v5254_v7  ;;  %v5463_v51 = vld.sshfl [vmem:[#allocation1 + $0x10] sm:$0xff pattern:$0x75316420]  ;;  %878 = vrot.lane.b32.xlu2 %v869_v62, %s5167_s14  ;;  %812 = vrot.lane.b32.xlu0 %v802_v48, %s5166_s13  ;;  %v871_v62 = vrot.slane %v5431_v0, 6 }
  0x93   :  { %v5465_v52 = vld.sshfl [vmem:[#allocation1 + $0x18] sm:$0xff pattern:$0x75316420]  ;;  %7694 = vst [vmem:[#allocation34_spill] sm:$0xff] %v5476_v6 }
  0x94   :  { %1030 = vst [vmem:[#allocation1 + $0x10] ss:$2 sm:$0xff] %v5240_v1  ;;  %v982_v44 = vld.sshfl [vmem:[#allocation1] sm:$0xff pattern:$0x75316420] }
  0x95   :  { %v983_v36 = vld.sshfl [vmem:[#allocation1 + $0x8] sm:$0xff pattern:$0x75316420]  ;;  %494 = vst [vmem:[#allocation1 + $0x30] ss:$2 sm:$0xff] %v5322_v42 }
  0x96   :  { %1028 = vst [vmem:[#allocation1] ss:$2 sm:$0xff] %v5245_v2 }
  0x99   :  { %v5478_v3 = vld.sshfl [vmem:[#allocation1 + $0x20] sm:$0xff pattern:$0x75316420]  ;;  %v5480_v41 = vld.sshfl [vmem:[#allocation1 + $0x28] sm:$0xff pattern:$0x75316420]  ;;  %939 = vrot.lane.b32.xlu1 %v930_v61, %s5168_s15 }
  0x9a   :  { %7695 = vst [vmem:[#allocation35_spill] sm:$0xff] %v5480_v41  ;;  %880 = vrot.lane.b32.xlu2 %v870_v25, %s5167_s14  ;;  %882 = vrot.lane.b32.xlu0 %v871_v62, %s5167_s14  ;;  %v931_v61 = vrot.slane %v5444_v53, 3  ;;  %v932_v25 = vrot.slane %v5446_v37, 3  ;;  %v929_v62 = vrot.slane %v921_v19, 3 }
  0x9b   :  { %918 = vst [vmem:[#allocation1 + $0x20] ss:$2 sm:$0xff] %v5254_v7  ;;  %v5485_v32 = vld.sshfl [vmem:[#allocation1 + $0x10] sm:$0xff pattern:$0x75316420]  ;;  %v5506_v0 = vpop.permute.xlu2 %387 }
  0x9c   :  { %v5487_v47 = vld.sshfl [vmem:[#allocation1 + $0x18] sm:$0xff pattern:$0x75316420]  ;;  %v5504_v49 = vld.sshfl [vmem:[#allocation1 + $0x30] sm:$0xff pattern:$0x75316420] }
  0x9d   :  { %1091 = vst [vmem:[#allocation1 + $0x10] ss:$2 sm:$0xff] %v5240_v1  ;;  %v5492_v54 = vld.sshfl [vmem:[#allocation1] sm:$0xff pattern:$0x75316420] }
  0x9e   :  { %v5494_v60 = vld.sshfl [vmem:[#allocation1 + $0x8] sm:$0xff pattern:$0x75316420]  ;;  %7697 = vst [vmem:[#allocation37_spill] sm:$0xff] %v5504_v49  ;;  %v1043_v63 = vrot.slane %v5492_v54, 5 }
  0x9f   :  { %1089 = vst [vmem:[#allocation1] ss:$2 sm:$0xff] %v5245_v2  ;;  %v5509_v35 = vld.sshfl [vmem:[#allocation1 + $0x38] sm:$0xff pattern:$0x75316420] }
  0xa0   :  { %7698 = vst [vmem:[#allocation38_spill] sm:$0xff] %v5509_v35 }
  0xa1   :  { %547 = vst [vmem:[#allocation1 + $0x30] ss:$2 sm:$0xff] %v5322_v42  ;;  %941 = vrot.lane.b32.xlu1 %v931_v61, %s5168_s15 }
  0xa2   :  { %v5499_v48 = vld.sshfl [vmem:[#allocation1 + $0x20] sm:$0xff pattern:$0x75316420]  ;;  %v5502_v31 = vld.sshfl [vmem:[#allocation1 + $0x28] sm:$0xff pattern:$0x75316420]  ;;  %943 = vrot.lane.b32.xlu2 %v932_v25, %s5168_s15  ;;  %937 = vrot.lane.b32.xlu0 %v929_v62, %s5168_s15 }
  0xa3   :  { %7696 = vst [vmem:[#allocation36_spill] sm:$0xff] %v5502_v31 }
  0xa4   :  { %979 = vst [vmem:[#allocation1 + $0x20] ss:$2 sm:$0xff] %v5254_v7  ;;  %v5511_v57 = vld.sshfl [vmem:[#allocation1 + $0x10] sm:$0xff pattern:$0x75316420]  ;;  %v5531_v35 = vpop.permute.xlu2 %451 }
  0xa5   :  { %v5513_v5 = vld.sshfl [vmem:[#allocation1 + $0x18] sm:$0xff pattern:$0x75316420] }
  0xa6   :  { %1159 = vst [vmem:[#allocation1 + $0x10] ss:$2 sm:$0xff] %v5240_v1  ;;  %v5519_v49 = vld.sshfl [vmem:[#allocation1] sm:$0xff pattern:$0x75316420] }
  0xa7   :  { %v5521_v43 = vld.sshfl [vmem:[#allocation1 + $0x8] sm:$0xff pattern:$0x75316420] }
  0xa8   :  { %1157 = vst [vmem:[#allocation1] ss:$2 sm:$0xff] %v5245_v2  ;;  %v5539_v61 = vld.sshfl [vmem:[#allocation1 + $0x30] sm:$0xff pattern:$0x75316420] }
  0xa9   :  { %7699 = vst [vmem:[#allocation39_spill] sm:$0xff] %v5539_v61  ;;  %v5541_v25 = vld.sshfl [vmem:[#allocation1 + $0x38] sm:$0xff pattern:$0x75316420]  ;;  %990 = vrot.lane.b32.xlu1 %v982_v44, %s5169_s16 }
  0xaa   :  { %7700 = vst [vmem:[#allocation40_spill] sm:$0xff] %v5541_v25  ;;  %992 = vrot.lane.b32.xlu2 %v983_v36, %s5169_s16  ;;  %994 = vrot.lane.b32.xlu0 %v5463_v51, %s5169_s16  ;;  %v1045_v51 = vrot.slane %v5485_v32, 5 }
  0xab   :  { %v5527_v53 = vld.sshfl [vmem:[#allocation1 + $0x20] sm:$0xff pattern:$0x75316420]  ;;  %v5529_v37 = vld.sshfl [vmem:[#allocation1 + $0x28] sm:$0xff pattern:$0x75316420]  ;;  %v320_v18 = vpop.permute.xlu1 %319  ;;  %v318_v36 = vpop.permute.xlu0 %317 }
  0xac   :  { %1032 = vst [vmem:[#allocation1 + $0x20] ss:$2 sm:$0xff] %v5254_v7  ;;  %v5557_v41 = vpop.permute.xlu2 %453  ;;  %v334_v31 = vsel %vm7653_vm1, %v318_v36, %v320_v18 }
  0xad   :  { %v5534_v19 = vld.sshfl [vmem:[#allocation1 + $0x10] sm:$0xff pattern:$0x75316420]  ;;  %v5536_v24 = vld.sshfl [vmem:[#allocation1 + $0x18] sm:$0xff pattern:$0x75316420]  ;;  %v467_v44 = vsel %vm7651_vm0, %v5531_v35, %v5557_v41 }
  0xae   :  { %1221 = vst [vmem:[#allocation1 + $0x11] ss:$2 sm:$0xff] %v5240_v1 }
  0xaf   :  { %608 = vst [vmem:[#allocation1 + $0x30] ss:$2 sm:$0xff] %v5322_v42  ;;  %v5544_v62 = vld.sshfl [vmem:[#allocation1] sm:$0xff pattern:$0x75316420] }
  0xb0   :  { %v5546_v30 = vld.sshfl [vmem:[#allocation1 + $0x8] sm:$0xff pattern:$0x75316420]  ;;  %481 = vst [vmem:[#allocation2 + $0x78] sm:$0xe0] %v467_v44 }
  0xb1   :  { %1219 = vst [vmem:[#allocation1 + $0x1] ss:$2 sm:$0xff] %v5245_v2  ;;  %996 = vrot.lane.b32.xlu1 %v5465_v52, %s5169_s16  ;;  %v1044_v52 = vrot.slane %v5494_v60, 5 }
  0xb2   :  { %348 = vst [vmem:[#allocation2 + $0x38] sm:$0x80] %v334_v31  ;;  %1055 = vrot.lane.b32.xlu2 %v1045_v51, %s5170_s17  ;;  %1051 = vrot.lane.b32.xlu0 %v1043_v63, %s5170_s17 }
  0xb3   :  { %v5553_v61 = vld.sshfl [vmem:[#allocation1 + $0x20] sm:$0xff pattern:$0x75316420]  ;;  %v5555_v25 = vld.sshfl [vmem:[#allocation1 + $0x28] sm:$0xff pattern:$0x75316420]  ;;  %v322_v44 = vpop.permute.xlu1 %321 }
  0xb4   :  { %1093 = vst [vmem:[#allocation1 + $0x20] ss:$2 sm:$0xff] %v5254_v7  ;;  %v5571_v32 = vpop.permute.xlu2 %509  ;;  %v335_v54 = vsel %vm7653_vm1, %v320_v18, %v322_v44  ;;  %v390_v36 = vpop.permute.xlu0 %389 }
  0xb5   :  { %v1227_v58 = vld.sshfl [vmem:[#allocation1 + $0x10] sm:$0xff pattern:$0x75316420]  ;;  %v1228_v38 = vld.sshfl [vmem:[#allocation1 + $0x18] sm:$0xff pattern:$0x75316420]  ;;  %v404_v63 = vsel %vm7661_vm2, %v5506_v0, %v390_v36 }
  0xb6   :  { %356 = vst [vmem:[#allocation2 + $0x70] sm:$0x3] %v334_v31  ;;  %v336_v31 = vsel %vm7653_vm1, %v322_v44, %v5476_v6  ;;  %v5586_v44 = vld.sshfl [vmem:[#allocation1 + $0x30] sm:$0xff pattern:$0x75316420]  ;;  %v1105_v6 = vrot.slane %v5521_v43, 2 }
  0xb7   :  { %1249 = vst [vmem:[#allocation1 + $0x10] ss:$2 sm:$0xff] %v5240_v1  ;;  %vm272_vm1 = vcmask 1014784  }
  0xb8   :  { %v1226_v50 = vld.sshfl [vmem:[#allocation1 + $0x8] sm:$0xff pattern:$0x75316420]  ;;  %1241 = vst [vmem:[#allocation2 + $0x190] sm:$0x70] %v1227_v58  ;;  %v1104_v58 = vrot.slane %v5519_v49, 2 }
  0xb9   :  { %1242 = vst [vmem:[#allocation2 + $0x198] sm:$0x70] %v1228_v38  ;;  %v1046_v38 = vrot.slane %v5487_v47, 5  ;;  %1053 = vrot.lane.b32.xlu1 %v1044_v52, %s5170_s17 }
  0xba   :  { %7701 = vst [vmem:[#allocation41_spill] sm:$0xff] %v5571_v32  ;;  %1112 = vrot.lane.b32.xlu2 %v1104_v58, %s5171_s18 }
  0xbb   :  { %1247 = vst [vmem:[#allocation1] ss:$2 sm:$0xff] %v5245_v2  ;;  %v5582_v51 = vld.sshfl [vmem:[#allocation1 + $0x20] sm:$0xff pattern:$0x75316420]  ;;  %1057 = vrot.lane.b32.xlu0 %v1046_v38, %s5170_s17  ;;  %v5598_v49 = vpop.permute.xlu1 %393  ;;  %v1107_v38 = vrot.slane %v5513_v5, 2 }
  0xbc   :  { %1240 = vst [vmem:[#allocation2 + $0x188] sm:$0x70] %v1226_v50  ;;  %v5584_v18 = vld.sshfl [vmem:[#allocation1 + $0x28] sm:$0xff pattern:$0x75316420]  ;;  %v5600_v0 = vpop.permute.xlu2 %564 }
  0xbd   :  { %349 = vst [vmem:[#allocation2 + $0x40] sm:$0x80] %v335_v54  ;;  %v5588_v50 = vld.sshfl [vmem:[#allocation1 + $0x38] sm:$0xff pattern:$0x75316420] }
  0xbe   :  { %350 = vst [vmem:[#allocation2 + $0x48] sm:$0x80] %v336_v31  ;;  %v5592_v60 = vld.sshfl [vmem:[#allocation1 + $0x10] sm:$0xff pattern:$0x75316420] }
  0xbf   :  { %357 = vst [vmem:[#allocation2 + $0x78] sm:$0x3] %v335_v54  ;;  %v1256_v54 = vld.sshfl [vmem:[#allocation1 + $0x18] sm:$0xff pattern:$0x75316420] }
  0xc0   :  { %358 = vst [vmem:[#allocation2 + $0x80] sm:$0x3] %v336_v31  ;;  %v392_v31 = vpop.permute.xlu0 %391 }
  0xc1   :  { %7702 = vst [vmem:[#allocation42_spill] sm:$0xff] %v5586_v44  ;;  %v405_v52 = vsel %vm7661_vm2, %v390_v36, %v392_v31  ;;  %v406_v58 = vsel %vm7661_vm2, %v392_v31, %v5598_v49 }
  0xc2   :  { %7703 = vst [vmem:[#allocation43_spill] sm:$0xff] %v5588_v50  ;;  %v5595_v47 = vld.sshfl [vmem:[#allocation1 + $0x8] sm:$0xff pattern:$0x75316420]  ;;  %1118 = vrot.lane.b32.xlu2 %v1107_v38, %s5171_s18  ;;  %v1173_v38 = vrot.slane %v5546_v30, 7  ;;  %v1174_v50 = vrot.slane %v5534_v19, 7 }
  0xc3   :  { %418 = vst [vmem:[#allocation2 + $0x70] sm:$0x1c] %v404_v63  ;;  %v1106_v63 = vrot.slane %v5511_v57, 2  ;;  %1114 = vrot.lane.b32.xlu0 %v1105_v6, %s5171_s18  ;;  %v450_v57 = vpop.permute.xlu1 %449 }
  0xc4   :  { %1161 = vst [vmem:[#allocation1 + $0x20] ss:$2 sm:$0xff] %v5254_v7  ;;  %v5621_v5 = vpop.permute.xlu2 %625  ;;  %v466_v43 = vsel %vm7651_vm0, %v450_v57, %v5531_v35 }
  0xc5   :  { %7704 = vst [vmem:[#allocation44_spill] sm:$0xff] %v5598_v49  ;;  %1116 = vrot.lane.b32.xlu1 %v1106_v63, %s5171_s18 }
  0xc6   :  { %1309 = vst [vmem:[#allocation1] ss:$2 sm:$0xff] %v5245_v2 }
  0xc7   :  { %1311 = vst [vmem:[#allocation1 + $0x10] ss:$2 sm:$0xff] %v5240_v1 }
  0xc8   :  { %676 = vst [vmem:[#allocation1 + $0x30] ss:$2 sm:$0xff] %v5322_v42 }
  0xc9   :  { %419 = vst [vmem:[#allocation2 + $0x78] sm:$0x1c] %v405_v52  ;;  %v5626_v52 = vpop.permute.xlu0 %455 }
  0xca   :  { %420 = vst [vmem:[#allocation2 + $0x80] sm:$0x1c] %v406_v58  ;;  %v1172_v58 = vrot.slane %v5544_v62, 7  ;;  %v468_v6 = vsel %vm7651_vm0, %v5557_v41, %v5626_v52  ;;  %1182 = vrot.lane.b32.xlu2 %v1173_v38, %s5172_s19  ;;  %v1263_v38 = vrot.slane %v1256_v54, 1  ;;  %vm99_vm0 = vcmask 1039360  }
  0xcb   :  { %v5613_v44 = vld.sshfl [vmem:[#allocation1 + $0x20] sm:$0xff pattern:$0x75316420]  ;;  %v5615_v36 = vld.sshfl [vmem:[#allocation1 + $0x28] sm:$0xff pattern:$0x75316420]  ;;  %1184 = vrot.lane.b32.xlu0 %v1174_v50, %s5172_s19  ;;  %v506_v41 = vpop.permute.xlu1 %505 }
  0xcc   :  { %1223 = vst [vmem:[#allocation1 + $0x21] ss:$2 sm:$0xff] %v5254_v7  ;;  %v5645_v57 = vpop.permute.xlu2 %695 }
  0xcd   :  { %v5618_v31 = vld.sshfl [vmem:[#allocation1 + $0x8] sm:$0xff pattern:$0x75316420]  ;;  %7705 = vst [vmem:[#allocation45_spill] sm:$0xff] %v5626_v52  ;;  %1180 = vrot.lane.b32.xlu1 %v1172_v58, %s5172_s19  ;;  %v1261_v52 = vrot.slane %v5595_v47, 1 }
  0xce   :  { %1364 = vst [vmem:[#allocation1] ss:$2 sm:$0xff] %v5245_v2  ;;  %v5643_v30 = vld.sshfl [vmem:[#allocation1 + $0x18] sm:$0xff pattern:$0x75316420] }
  0xcf   :  { %v5629_v63 = vld.sshfl [vmem:[#allocation1 + $0x30] sm:$0xff pattern:$0x75316420]  ;;  %480 = vst [vmem:[#allocation2 + $0x70] sm:$0xe0] %v466_v43  ;;  %v1175_v43 = vrot.slane %v5536_v24, 7 }
  0xd0   :  { %v5635_v49 = vld.sshfl [vmem:[#allocation1 + $0x38] sm:$0xff pattern:$0x75316420]  ;;  %482 = vst [vmem:[#allocation2 + $0x80] sm:$0xe0] %v468_v6 }
  0xd1   :  { %7706 = vst [vmem:[#allocation46_spill] sm:$0xff] %v5635_v49  ;;  %v504_v19 = vpop.permute.xlu0 %503  ;;  %v1317_v58 = vld.sshfl [vmem:[#allocation1 + $0x10] sm:$0xff pattern:$0x75316420] }
  0xd2   :  { %738 = vst [vmem:[#allocation1 + $0x31] ss:$2 sm:$0xff] %v5322_v42  ;;  %v520_v6 = vsel %vm7652_vm3, %v504_v19, %v506_v41  ;;  %1272 = vrot.lane.b32.xlu2 %v1263_v38, %s5173_s20  ;;  %v1323_v38 = vrot.slane %v5618_v31, 6 }
  0xd3   :  { %v1229_v35 = vld.sshfl [vmem:[#allocation1 + $0x20] sm:$0xff pattern:$0x75316420]  ;;  %v1230_v62 = vld.sshfl [vmem:[#allocation1 + $0x28] sm:$0xff pattern:$0x75316420]  ;;  %1268 = vrot.lane.b32.xlu0 %v1261_v52, %s5173_s20  ;;  %v508_v47 = vpop.permute.xlu1 %507 }
  0xd4   :  { %1251 = vst [vmem:[#allocation1 + $0x20] ss:$2 sm:$0xff] %v5254_v7  ;;  %v522_v19 = vsel %vm7652_vm3, %v508_v47, %v5571_v32 }
  0xd5   :  { %1243 = vst [vmem:[#allocation2 + $0x1a0] sm:$0x70] %v1229_v35  ;;  %v5650_v50 = vld.sshfl [vmem:[#allocation1 + $0x8] sm:$0xff pattern:$0x75316420]  ;;  %1186 = vrot.lane.b32.xlu1 %v1175_v43, %s5172_s19 }
  0xd6   :  { %1244 = vst [vmem:[#allocation2 + $0x1a8] sm:$0x70] %v1230_v62  ;;  %v5663_v62 = vpop.permute.xlu2 %697 }
  0xd7   :  { %1366 = vst [vmem:[#allocation1 + $0x10] ss:$2 sm:$0xff] %v5240_v1  ;;  %v711_v43 = vsel %vm709_vm5, %v5645_v57, %v5663_v62 }
  0xd8   :  { %534 = vst [vmem:[#allocation2 + $0xa8] sm:$0x7] %v520_v6 }
  0xd9   :  { %v5653_v49 = vld.sshfl [vmem:[#allocation1 + $0x30] sm:$0xff pattern:$0x75316420]  ;;  %1419 = vst [vmem:[#allocation1] ss:$2 sm:$0xff] %v5245_v2  ;;  %v521_v2 = vsel %vm7652_vm3, %v506_v41, %v508_v47  ;;  %v5671_v6 = vpop.permute.xlu0 %566  ;;  %v1262_v41 = vrot.slane %v5592_v60, 1 }
  0xda   :  { %7707 = vst [vmem:[#allocation47_spill] sm:$0xff] %v5653_v49  ;;  %v5656_v35 = vld.sshfl [vmem:[#allocation1 + $0x38] sm:$0xff pattern:$0x75316420]  ;;  %v581_v52 = vsel %vm7663_vm4, %v5600_v0, %v5671_v6  ;;  %vm156_vm3 = vcmask 1031168  }
  0xdb   :  { %7708 = vst [vmem:[#allocation48_spill] sm:$0xff] %v5656_v35  ;;  %v1257_v24 = vld.sshfl [vmem:[#allocation1 + $0x20] sm:$0xff pattern:$0x75316420]  ;;  %1270 = vrot.lane.b32.xlu0 %v1262_v41, %s5173_s20  ;;  %v5686_v31 = vpop.permute.xlu1 %631 }
  0xdc   :  { %791 = vst [vmem:[#allocation1 + $0x30] ss:$2 sm:$0xff] %v5322_v42  ;;  %v1258_v54 = vld.sshfl [vmem:[#allocation1 + $0x28] sm:$0xff pattern:$0x75316420] }
  0xdd   :  { %1313 = vst [vmem:[#allocation1 + $0x20] ss:$2 sm:$0xff] %v5254_v7  ;;  %v1265_v35 = vrot.slane %v1258_v54, 1  ;;  %1330 = vrot.lane.b32.xlu1 %v1323_v38, %s5174_s21  ;;  %v1264_v38 = vrot.slane %v1257_v24, 1 }
  0xde   :  { %535 = vst [vmem:[#allocation2 + $0xb0] sm:$0x7] %v521_v2  ;;  %v1372_v47 = vld.sshfl [vmem:[#allocation1 + $0x10] sm:$0xff pattern:$0x75316420]  ;;  %v5688_v54 = vpop.permute.xlu2 %753 }
  0xdf   :  { %536 = vst [vmem:[#allocation2 + $0xb8] sm:$0x7] %v522_v19  ;;  %1276 = vrot.lane.b32.xlu2 %v1265_v35, %s5173_s20  ;;  %v1373_v60 = vld.sshfl [vmem:[#allocation1 + $0x18] sm:$0xff pattern:$0x75316420] }
  0xe0   :  { %725 = vst [vmem:[#allocation2 + $0xe8] sm:$0xe] %v711_v43  ;;  %v1324_v43 = vrot.slane %v1317_v58, 6 }
  0xe1   :  { %595 = vst [vmem:[#allocation2 + $0xa8] sm:$0x38] %v581_v52  ;;  %v628_v19 = vpop.permute.xlu0 %627 }
  0xe2   :  { %7711 = vst [vmem:[#allocation51_spill] sm:$0xff] %v5686_v31  ;;  %v642_v35 = vsel %vm641_vm6, %v5621_v5, %v628_v19 }
  0xe3   :  { %v5678_v49 = vld.sshfl [vmem:[#allocation1 + $0x30] sm:$0xff pattern:$0x75316420]  ;;  %v5680_v32 = vld.sshfl [vmem:[#allocation1 + $0x38] sm:$0xff pattern:$0x75316420]  ;;  %1274 = vrot.lane.b32.xlu0 %v1264_v38, %s5173_s20 }
  0xe4   :  { %7709 = vst [vmem:[#allocation49_spill] sm:$0xff] %v5678_v49  ;;  %v1319_v2 = vld.sshfl [vmem:[#allocation1 + $0x20] sm:$0xff pattern:$0x75316420] }
  0xe5   :  { %7710 = vst [vmem:[#allocation50_spill] sm:$0xff] %v5680_v32  ;;  %v1320_v0 = vld.sshfl [vmem:[#allocation1 + $0x28] sm:$0xff pattern:$0x75316420]  ;;  %v1326_v52 = vrot.slane %v1319_v2, 6  ;;  %1332 = vrot.lane.b32.xlu1 %v1324_v43, %s5174_s21  ;;  %v1378_v43 = vrot.slane %v5650_v50, 3 }
  0xe6   :  { %1368 = vst [vmem:[#allocation1 + $0x20] ss:$2 sm:$0xff] %v5254_v7  ;;  %v809_v32 = vpop.permute.xlu2 %808 }
  0xe7   :  { %1421 = vst [vmem:[#allocation1 + $0x10] ss:$2 sm:$0xff] %v5240_v1  ;;  %1336 = vrot.lane.b32.xlu2 %v1326_v52, %s5174_s21  ;;  %v694_v1 = vpop.permute.xlu1 %693  ;;  %v1327_v52 = vrot.slane %v1320_v0, 6 }
  0xe8   :  { %859 = vst [vmem:[#allocation1 + $0x30] ss:$2 sm:$0xff] %v5322_v42  ;;  %v710_v5 = vsel %vm709_vm5, %v694_v1, %v5645_v57  ;;  %v1379_v1 = vrot.slane %v1372_v47, 3 }
  0xe9   :  { %656 = vst [vmem:[#allocation2 + $0xa8] sm:$0xc0] %v642_v35  ;;  %v630_v58 = vpop.permute.xlu0 %629 }
  0xea   :  { %663 = vst [vmem:[#allocation2 + $0xe0] sm:$0x1] %v642_v35  ;;  %v643_v24 = vsel %vm641_vm6, %v628_v19, %v630_v58  ;;  %v644_v2 = vsel %vm641_vm6, %v630_v58, %v5686_v31  ;;  %v1325_v35 = vrot.slane %v5643_v30, 6 }
  0xeb   :  { %724 = vst [vmem:[#allocation2 + $0xe0] sm:$0xe] %v710_v5  ;;  %1338 = vrot.lane.b32.xlu0 %v1327_v52, %s5174_s21  ;;  %v1380_v5 = vrot.slane %v1373_v60, 3 }
  0xec   :  { %657 = vst [vmem:[#allocation2 + $0xb0] sm:$0xc0] %v643_v24 }
  0xed   :  { %v1374_v41 = vld.sshfl [vmem:[#allocation1 + $0x20] sm:$0xff pattern:$0x75316420]  ;;  %v1375_v49 = vld.sshfl [vmem:[#allocation1 + $0x28] sm:$0xff pattern:$0x75316420]  ;;  %1334 = vrot.lane.b32.xlu1 %v1325_v35, %s5174_s21 }
  0xee   :  { %1423 = vst [vmem:[#allocation1 + $0x20] ss:$2 sm:$0xff] %v5254_v7  ;;  %v879_v57 = vpop.permute.xlu2 %878  ;;  %v1381_v19 = vrot.slane %v1374_v41, 3  ;;  %v1382_v52 = vrot.slane %v1375_v49, 3 }
  0xef   :  { %v5705_v38 = vld.sshfl [vmem:[#allocation1 + $0x30] sm:$0xff pattern:$0x75316420]  ;;  %658 = vst [vmem:[#allocation2 + $0xb8] sm:$0xc0] %v644_v2  ;;  %1385 = vrot.lane.b32.xlu2 %v1378_v43, %s5175_s22  ;;  %v750_v30 = vpop.permute.xlu1 %749 }
  0xf0   :  { %7712 = vst [vmem:[#allocation52_spill] sm:$0xff] %v5705_v38  ;;  %v5707_v7 = vld.sshfl [vmem:[#allocation1 + $0x38] sm:$0xff pattern:$0x75316420] }
  0xf1   :  { %7713 = vst [vmem:[#allocation53_spill] sm:$0xff] %v5707_v7  ;;  %v5713_v50 = vpop.permute.xlu0 %699 }
  0xf2   :  { %664 = vst [vmem:[#allocation2 + $0xe8] sm:$0x1] %v643_v24  ;;  %v712_v0 = vsel %vm709_vm5, %v5663_v62, %v5713_v50 }
  0xf3   :  { %665 = vst [vmem:[#allocation2 + $0xf0] sm:$0x1] %v644_v2  ;;  %1389 = vrot.lane.b32.xlu0 %v1380_v5, %s5175_s22 }
  0xf4   :  { %920 = vst [vmem:[#allocation1 + $0x30] ss:$2 sm:$0xff] %v5322_v42 }
  0xf5   :  { %7714 = vst [vmem:[#allocation54_spill] sm:$0xff] %v5713_v50  ;;  %1391 = vrot.lane.b32.xlu1 %v1381_v19, %s5175_s22  ;;  %v1426_v19 = vld.sshfl [vmem:[#allocation1 + $0x8] sm:$0xff pattern:$0x75316420] }
  0xf6   :  { %726 = vst [vmem:[#allocation2 + $0xf0] sm:$0xe] %v712_v0  ;;  %v881_v35 = vpop.permute.xlu2 %880  ;;  %v1428_v0 = vld.sshfl [vmem:[#allocation1 + $0x18] sm:$0xff pattern:$0x75316420] }
  0xf7   :  { %1387 = vrot.lane.b32.xlu2 %v1379_v1, %s5175_s22  ;;  %v752_v2 = vpop.permute.xlu1 %751  ;;  %v894_v60 = vsel %vm892_vm8, %v879_v57, %v881_v35 }
  0xf8   :  { %v765_v62 = vsel %vm763_vm7, %v750_v30, %v752_v2  ;;  %v766_v47 = vsel %vm763_vm7, %v752_v2, %v5688_v54  ;;  %908 = vst [vmem:[#allocation2 + $0x120] sm:$0x1c] %v894_v60  ;;  %v1430_v60 = vld.sshfl [vmem:[#allocation1 + $0x28] sm:$0xff pattern:$0x75316420] }
  0xf9   :  { %v748_v41 = vpop.permute.xlu0 %747  ;;  %779 = vst [vmem:[#allocation2 + $0xe8] sm:$0x70] %v765_v62 }
  0xfa   :  { %v764_v43 = vsel %vm763_vm7, %v748_v41, %v750_v30  ;;  %780 = vst [vmem:[#allocation2 + $0xf0] sm:$0x70] %v766_v47  ;;  %v1427_v47 = vld.sshfl [vmem:[#allocation1 + $0x10] sm:$0xff pattern:$0x75316420] }
  0xfb   :  { %v5720_v58 = vld.sshfl [vmem:[#allocation1 + $0x30] sm:$0xff pattern:$0x75316420]  ;;  %v5723_v24 = vld.sshfl [vmem:[#allocation1 + $0x38] sm:$0xff pattern:$0x75316420]  ;;  %1433 = vrot.lane.b32.xlu0 %v1426_v19, %s5176_s23 }
  0xfc   :  { %7715 = vst [vmem:[#allocation55_spill] sm:$0xff] %v5720_v58  ;;  %v1429_v41 = vld.sshfl [vmem:[#allocation1 + $0x20] sm:$0xff pattern:$0x75316420] }
  0xfd   :  { %7716 = vst [vmem:[#allocation56_spill] sm:$0xff] %v5723_v24  ;;  %1393 = vrot.lane.b32.xlu1 %v1382_v52, %s5175_s22 }
  0xfe   :  { %981 = vst [vmem:[#allocation1 + $0x30] ss:$2 sm:$0xff] %v5322_v42  ;;  %v5740_v49 = vpop.permute.xlu2 %943 }
  0xff   :  { %778 = vst [vmem:[#allocation2 + $0xe0] sm:$0x70] %v764_v43  ;;  %1437 = vrot.lane.b32.xlu2 %v1428_v0, %s5176_s23  ;;  %v5738_v2 = vpop.permute.xlu1 %814 }
 0x100   :  { %7717 = vst [vmem:[#allocation57_spill] sm:$0xff] %v5738_v2 }
 0x101   :  { %v811_v30 = vpop.permute.xlu0 %810 }
 0x102   :  { %v825_v62 = vsel %vm7656_vm9, %v809_v32, %v811_v30 }
 0x103   :  { %839 = vst [vmem:[#allocation2 + $0xe0] sm:$0x80] %v825_v62  ;;  %1439 = vrot.lane.b32.xlu0 %v1429_v41, %s5176_s23  ;;  %v558_v41 = vrot.slane %v5360_v12, 5 }
 0x104   :  { %846 = vst [vmem:[#allocation2 + $0x118] sm:$0x3] %v825_v62 }
 0x105   :  { %v5734_v1 = vld.sshfl [vmem:[#allocation1 + $0x30] sm:$0xff pattern:$0x75316420]  ;;  %v5736_v5 = vld.sshfl [vmem:[#allocation1 + $0x38] sm:$0xff pattern:$0x75316420]  ;;  %1435 = vrot.lane.b32.xlu1 %v1427_v47, %s5176_s23 }
 0x106   :  { %1034 = vst [vmem:[#allocation1 + $0x30] ss:$2 sm:$0xff] %v5322_v42  ;;  %v993_v19 = vpop.permute.xlu2 %992 }
 0x107   :  { %1441 = vrot.lane.b32.xlu2 %v1430_v60, %s5176_s23  ;;  %v877_v0 = vpop.permute.xlu1 %876  ;;  %v559_v60 = vrot.slane %v5362_v13, 5 }
 0x108   :  { %v893_v32 = vsel %vm892_vm8, %v877_v0, %v879_v57 }
 0x109   :  { %v813_v31 = vpop.permute.xlu0 %812  ;;  %907 = vst [vmem:[#allocation2 + $0x118] sm:$0x1c] %v893_v32  ;;  %v1108_v32 = vrot.slane %v5582_v51, 2 }
 0x10a   :  { %v826_v62 = vsel %vm7656_vm9, %v811_v30, %v813_v31  ;;  %v827_v47 = vsel %vm7656_vm9, %v813_v31, %v5738_v2  ;;  %vm1585_vm9 = vcmask 1045504  }
 0x10b   :  { %840 = vst [vmem:[#allocation2 + $0xe8] sm:$0x80] %v826_v62  ;;  %568 = vrot.lane.b32.xlu0 %v558_v41, %s5162_s9 }
 0x10c   :  { %841 = vst [vmem:[#allocation2 + $0xf0] sm:$0x80] %v827_v47 }
 0x10d   :  { %v5747_v43 = vld.sshfl [vmem:[#allocation1 + $0x30] sm:$0xff pattern:$0x75316420]  ;;  %v5749_v52 = vld.sshfl [vmem:[#allocation1 + $0x38] sm:$0xff pattern:$0x75316420]  ;;  %570 = vrot.lane.b32.xlu1 %v559_v60, %s5162_s9 }
 0x10e   :  { %1095 = vst [vmem:[#allocation1 + $0x30] ss:$2 sm:$0xff] %v5322_v42  ;;  %v1056_v0 = vpop.permute.xlu2 %1055 }
 0x10f   :  { %847 = vst [vmem:[#allocation2 + $0x120] sm:$0x3] %v826_v62  ;;  %998 = vrot.lane.b32.xlu2 %v5527_v53, %s5169_s16  ;;  %v940_v31 = vpop.permute.xlu1 %939  ;;  %v1176_v62 = vrot.slane %v5613_v44, 7  ;;  %v1047_v53 = vrot.slane %v5553_v61, 5 }
 0x110   :  { %848 = vst [vmem:[#allocation2 + $0x128] sm:$0x3] %v827_v47 }
 0x111   :  { %v5767_v13 = vpop.permute.xlu0 %882 }
 0x112   :  { %7718 = vst [vmem:[#allocation58_spill] sm:$0xff] %v5767_v13  ;;  %v895_v12 = vsel %vm892_vm8, %v881_v35, %v5767_v13 }
 0x113   :  { %909 = vst [vmem:[#allocation2 + $0x128] sm:$0x1c] %v895_v12  ;;  %1059 = vrot.lane.b32.xlu0 %v1047_v53, %s5170_s17 }
 0x115   :  { %v5762_v57 = vld.sshfl [vmem:[#allocation1 + $0x30] sm:$0xff pattern:$0x75316420]  ;;  %v5764_v30 = vld.sshfl [vmem:[#allocation1 + $0x38] sm:$0xff pattern:$0x75316420]  ;;  %1120 = vrot.lane.b32.xlu1 %v1108_v32, %s5171_s18 }
 0x116   :  { %1163 = vst [vmem:[#allocation1 + $0x30] ss:$2 sm:$0xff] %v5322_v42  ;;  %v1113_v35 = vpop.permute.xlu2 %1112 }
 0x117   :  { %1188 = vrot.lane.b32.xlu2 %v1176_v62, %s5172_s19  ;;  %v942_v41 = vpop.permute.xlu1 %941 }
 0x118   :  { %v955_v51 = vsel %vm953_vm10, %v940_v31, %v942_v41  ;;  %v956_v61 = vsel %vm953_vm10, %v942_v41, %v5740_v49 }
 0x119   :  { %v938_v44 = vpop.permute.xlu0 %937  ;;  %969 = vst [vmem:[#allocation2 + $0x120] sm:$0xe0] %v955_v51 }
 0x11a   :  { %v954_v12 = vsel %vm953_vm10, %v938_v44, %v940_v31  ;;  %970 = vst [vmem:[#allocation2 + $0x128] sm:$0xe0] %v956_v61 }
 0x11b   :  { %968 = vst [vmem:[#allocation2 + $0x118] sm:$0xe0] %v954_v12 }
 0x11d   :  { %v5777_v47 = vld.sshfl [vmem:[#allocation1 + $0x30] sm:$0xff pattern:$0x75316420]  ;;  %v5779_v60 = vld.sshfl [vmem:[#allocation1 + $0x38] sm:$0xff pattern:$0x75316420] }
 0x11e   :  { %1225 = vst [vmem:[#allocation1 + $0x31] ss:$2 sm:$0xff] %v5322_v42  ;;  %v5789_v2 = vpop.permute.xlu2 %1118 }
 0x11f   :  { %v991_v53 = vpop.permute.xlu1 %990 }
 0x120   :  { %v1007_v13 = vsel %vm7655_vm11, %v991_v53, %v993_v19 }
 0x121   :  { %v995_v24 = vpop.permute.xlu0 %994  ;;  %1021 = vst [vmem:[#allocation2 + $0x150] sm:$0x7] %v1007_v13 }
 0x122   :  { %v1008_v41 = vsel %vm7655_vm11, %v993_v19, %v995_v24 }
 0x123   :  { %1022 = vst [vmem:[#allocation2 + $0x158] sm:$0x7] %v1008_v41 }
 0x125   :  { %v1231_v32 = vld.sshfl [vmem:[#allocation1 + $0x30] sm:$0xff pattern:$0x75316420]  ;;  %v5786_v62 = vld.sshfl [vmem:[#allocation1 + $0x38] sm:$0xff pattern:$0x75316420] }
 0x126   :  { %7719 = vst [vmem:[#allocation59_spill] sm:$0xff] %v5786_v62  ;;  %v1183_v12 = vpop.permute.xlu2 %1182 }
 0x127   :  { %1253 = vst [vmem:[#allocation1 + $0x30] ss:$2 sm:$0xff] %v5322_v42  ;;  %v5796_v44 = vpop.permute.xlu1 %996 }
 0x128   :  { %1245 = vst [vmem:[#allocation2 + $0x1b0] sm:$0x70] %v1231_v32  ;;  %v1009_v62 = vsel %vm7655_vm11, %v995_v24, %v5796_v44 }
 0x129   :  { %v1052_v32 = vpop.permute.xlu0 %1051  ;;  %1023 = vst [vmem:[#allocation2 + $0x160] sm:$0x7] %v1009_v62  ;;  %v78_v62 = vrot.slane %v5262_v10, 5 }
 0x12e   :  { %v1259_v31 = vld.sshfl [vmem:[#allocation1 + $0x30] sm:$0xff pattern:$0x75316420]  ;;  %v5793_v51 = vld.sshfl [vmem:[#allocation1 + $0x38] sm:$0xff pattern:$0x75316420]  ;;  %v5804_v50 = vpop.permute.xlu2 %1272 }
 0x12f   :  { %1315 = vst [vmem:[#allocation1 + $0x30] ss:$2 sm:$0xff] %v5322_v42  ;;  %v1266_v61 = vrot.slane %v1259_v31, 1  ;;  %v1054_v41 = vpop.permute.xlu1 %1053 }
 0x130   :  { %v1068_v31 = vsel %vm7659_vm12, %v1052_v32, %v1054_v41  ;;  %v1069_v7 = vsel %vm7659_vm12, %v1054_v41, %v1056_v0 }
 0x131   :  { %1278 = vrot.lane.b32.xlu0 %v1266_v61, %s5173_s20  ;;  %v5808_v58 = vpop.permute.xlu0 %1057  ;;  %1082 = vst [vmem:[#allocation2 + $0x150] sm:$0x38] %v1068_v31 }
 0x132   :  { %v1070_v24 = vsel %vm7659_vm12, %v1056_v0, %v5808_v58  ;;  %1083 = vst [vmem:[#allocation2 + $0x158] sm:$0x38] %v1069_v7  ;;  %v136_v0 = vrot.slane %v5275_v17, 2  ;;  %v135_v17 = vrot.slane %v5273_v16, 2 }
 0x133   :  { %1084 = vst [vmem:[#allocation2 + $0x160] sm:$0x38] %v1070_v24 }
 0x136   :  { %v1321_v13 = vld.sshfl [vmem:[#allocation1 + $0x30] sm:$0xff pattern:$0x75316420]  ;;  %v5801_v19 = vld.sshfl [vmem:[#allocation1 + $0x38] sm:$0xff pattern:$0x75316420] }
 0x137   :  { %v1328_v53 = vrot.slane %v1321_v13, 6  ;;  %1370 = vst [vmem:[#allocation1 + $0x30] ss:$2 sm:$0xff] %v5322_v42  ;;  %v1117_v32 = vpop.permute.xlu1 %1116  ;;  %v1329_v16 = vrot.slane %v5801_v19, 6  ;;  %v1267_v19 = vrot.slane %v5793_v51, 1 }
 0x139   :  { %1340 = vrot.lane.b32.xlu1 %v1328_v53, %s5174_s21  ;;  %v5817_v41 = vpop.permute.xlu2 %1276  ;;  %v1131_v53 = vsel %vm1128_vm13, %v1117_v32, %v5789_v2  ;;  %v1115_v31 = vpop.permute.xlu0 %1114 }
 0x13a   :  { %1145 = vst [vmem:[#allocation2 + $0x160] sm:$0xc0] %v1131_v53  ;;  %v1129_v10 = vsel %vm1128_vm13, %v1113_v35, %v1115_v31  ;;  %v1130_v7 = vsel %vm1128_vm13, %v1115_v31, %v1117_v32  ;;  %v200_v32 = vrot.slane %v5288_v22, 7 }
 0x13b   :  { %1152 = vst [vmem:[#allocation2 + $0x198] sm:$0x1] %v1131_v53 }
 0x13c   :  { %1143 = vst [vmem:[#allocation2 + $0x150] sm:$0xc0] %v1129_v10 }
 0x13d   :  { %1144 = vst [vmem:[#allocation2 + $0x158] sm:$0xc0] %v1130_v7 }
 0x13e   :  { %v1376_v61 = vld.sshfl [vmem:[#allocation1 + $0x30] sm:$0xff pattern:$0x75316420]  ;;  %v5814_v13 = vld.sshfl [vmem:[#allocation1 + $0x38] sm:$0xff pattern:$0x75316420] }
 0x13f   :  { %v1383_v38 = vrot.slane %v1376_v61, 3  ;;  %1425 = vst [vmem:[#allocation1 + $0x30] ss:$2 sm:$0xff] %v5322_v42  ;;  %v79_v42 = vrot.slane %v5264_v11, 5 }
 0x140   :  { %1150 = vst [vmem:[#allocation2 + $0x188] sm:$0x1] %v1129_v10 }
 0x141   :  { %1395 = vrot.lane.b32.xlu2 %v1383_v38, %s5175_s22  ;;  %85 = vrot.lane.b32.xlu1 %v78_v62, %s5173_s20  ;;  %1151 = vst [vmem:[#allocation2 + $0x190] sm:$0x1] %v1130_v7  ;;  %v1181_v38 = vpop.permute.xlu1 %1180  ;;  %v5828_v62 = vpop.permute.xlu2 %1336 }
 0x142   :  { %v1197_v35 = vsel %vm7654_vm14, %v1181_v38, %v1183_v12  ;;  %v1185_v61 = vpop.permute.xlu0 %1184  ;;  %v1384_v38 = vrot.slane %v5814_v13, 3 }
 0x143   :  { %1211 = vst [vmem:[#allocation2 + $0x188] sm:$0xe] %v1197_v35  ;;  %v1198_v11 = vsel %vm7654_vm14, %v1183_v12, %v1185_v61  ;;  %v201_v12 = vrot.slane %v5290_v23, 7  ;;  %v80_v35 = vrot.slane %v5257_v8, 5 }
 0x144   :  { %1212 = vst [vmem:[#allocation2 + $0x190] sm:$0xe] %v1198_v11 }
 0x146   :  { %v1431_v24 = vld.sshfl [vmem:[#allocation1 + $0x30] sm:$0xff pattern:$0x75316420]  ;;  %v1432_v13 = vld.sshfl [vmem:[#allocation1 + $0x38] sm:$0xff pattern:$0x75316420] }
 0x147   :  { %1443 = vrot.lane.b32.xlu0 %v1431_v24, %s5176_s23 }
 0x149   :  { %87 = vrot.lane.b32.xlu2 %v79_v42, %s5173_s20  ;;  %144 = vrot.lane.b32.xlu1 %v136_v0, %s5174_s21  ;;  %v5837_v53 = vpop.permute.xlu1 %1186  ;;  %v1386_v31 = vpop.permute.xlu2 %1385 }
 0x14a   :  { %v1199_v10 = vsel %vm7654_vm14, %v1185_v61, %v5837_v53  ;;  %v1269_v7 = vpop.permute.xlu0 %1268 }
 0x14b   :  { %1213 = vst [vmem:[#allocation2 + $0x198] sm:$0xe] %v1199_v10 }
 0x14f   :  { %142 = vrot.lane.b32.xlu0 %v135_v17, %s5174_s21 }
 0x151   :  { %207 = vrot.lane.b32.xlu2 %v200_v32, %s5175_s22  ;;  %258 = vrot.lane.b32.xlu1 %v5303_v28, %s5176_s23  ;;  %v1331_v22 = vpop.permute.xlu1 %1330  ;;  %v1388_v42 = vpop.permute.xlu2 %1387  ;;  %v81_v32 = vrot.slane %v5259_v9, 5 }
 0x152   :  { %v1399_v0 = vsel %vm221_vm15, %v1386_v31, %v1388_v42  ;;  %v1271_v24 = vpop.permute.xlu0 %1270  ;;  %v138_v31 = vrot.slane %v5270_v15, 2  ;;  %v137_v15 = vrot.slane %v5268_v14, 2 }
 0x153   :  { %1412 = vst [vmem:[#allocation2 + $0x1c0] sm:$0xe0] %v1399_v0  ;;  %v1282_v28 = vsel %vm99_vm0, %v1269_v7, %v1271_v24  ;;  %v1283_v23 = vsel %vm99_vm0, %v1271_v24, %v5804_v50 }
 0x154   :  { %1295 = vst [vmem:[#allocation2 + $0x188] sm:$0x80] %v1282_v28 }
 0x155   :  { %1296 = vst [vmem:[#allocation2 + $0x190] sm:$0x80] %v1283_v23 }
 0x156   :  { %1302 = vst [vmem:[#allocation2 + $0x1c0] sm:$0x3] %v1282_v28 }
 0x157   :  { %209 = vrot.lane.b32.xlu0 %v201_v12, %s5175_s22  ;;  %1303 = vst [vmem:[#allocation2 + $0x1c8] sm:$0x3] %v1283_v23 }
 0x159   :  { %260 = vrot.lane.b32.xlu2 %v5305_v29, %s5176_s23  ;;  %1342 = vrot.lane.b32.xlu1 %v1329_v16, %s5174_s21  ;;  %v1333_v29 = vpop.permute.xlu1 %1332  ;;  %v5858_v61 = vpop.permute.xlu2 %1437 }
 0x15a   :  { %v1344_v11 = vsel %vm156_vm3, %v1331_v22, %v1333_v29  ;;  %v1275_v17 = vpop.permute.xlu0 %1274  ;;  %v202_v22 = vrot.slane %v5283_v20, 7 }
 0x15b   :  { %1357 = vst [vmem:[#allocation2 + $0x1c0] sm:$0x1c] %v1344_v11  ;;  %v1284_v51 = vsel %vm99_vm0, %v5804_v50, %v1275_v17  ;;  %v1285_v8 = vsel %vm99_vm0, %v1275_v17, %v5817_v41 }
 0x15c   :  { %1297 = vst [vmem:[#allocation2 + $0x198] sm:$0x80] %v1284_v51 }
 0x15d   :  { %1298 = vst [vmem:[#allocation2 + $0x1a0] sm:$0x80] %v1285_v8 }
 0x15e   :  { %1304 = vst [vmem:[#allocation2 + $0x1d0] sm:$0x3] %v1284_v51  ;;  %v933_v51 = vrot.slane %v5499_v48, 3 }
 0x15f   :  { %1280 = vrot.lane.b32.xlu0 %v1267_v19, %s5173_s20  ;;  %1305 = vst [vmem:[#allocation2 + $0x1d8] sm:$0x3] %v1285_v8  ;;  %v689_v19 = vrot.slane %v5421_v55, 7  ;;  %v872_v55 = vrot.slane %v5478_v3, 6  ;;  %v804_v3 = vrot.slane %v5457_v33, 1  ;;  %v5177_v8 = vmov 65535  }
 0x161   :  { %1397 = vrot.lane.b32.xlu2 %v1384_v38, %s5175_s22  ;;  %89 = vrot.lane.b32.xlu1 %v80_v35, %s5173_s20  ;;  %v1335_v10 = vpop.permute.xlu1 %1334  ;;  %v5870_v7 = vpop.permute.xlu2 %1441 }
 0x162   :  { %v1345_v12 = vsel %vm156_vm3, %v1333_v29, %v1335_v10  ;;  %v1346_v50 = vsel %vm156_vm3, %v1335_v10, %v5828_v62  ;;  %v5875_v16 = vpop.permute.xlu0 %1338  ;;  %v1523_v10 = vld [vmem:[#allocation2 + $0x1c0] sm:$0xff] }
 0x163   :  { %1358 = vst [vmem:[#allocation2 + $0x1c8] sm:$0x1c] %v1345_v12  ;;  %v1347_v9 = vsel %vm156_vm3, %v5828_v62, %v5875_v16  ;;  %v203_v62 = vrot.slane %v5285_v21, 7  ;;  %v621_v21 = vrot.slane %v5407_v39, 2 }
 0x164   :  { %1359 = vst [vmem:[#allocation2 + $0x1d0] sm:$0x1c] %v1346_v50 }
 0x165   :  { %1360 = vst [vmem:[#allocation2 + $0x1d8] sm:$0x1c] %v1347_v9 }
 0x167   :  { %1445 = vrot.lane.b32.xlu0 %v1432_v13, %s5176_s23  ;;  %v1048_v13 = vrot.slane %v5555_v25, 5 }
 0x169   :  { %91 = vrot.lane.b32.xlu2 %v81_v32, %s5173_s20  ;;  %148 = vrot.lane.b32.xlu1 %v138_v31, %s5174_s21  ;;  %v1392_v0 = vpop.permute.xlu1 %1391  ;;  %v5885_v24 = vpop.permute.xlu2 %998 }
 0x16a   :  { %v1010_v28 = vsel %vm7655_vm11, %v5796_v44, %v5885_v24  ;;  %v1390_v23 = vpop.permute.xlu0 %1389  ;;  %vm7657_vm11 = vcmask 1043456  }
 0x16b   :  { %1024 = vst [vmem:[#allocation2 + $0x168] sm:$0x7] %v1010_v28  ;;  %v1400_v14 = vsel %vm221_vm15, %v1388_v42, %v1390_v23  ;;  %v1401_v20 = vsel %vm221_vm15, %v1390_v23, %v1392_v0 }
 0x16c   :  { %1413 = vst [vmem:[#allocation2 + $0x1c8] sm:$0xe0] %v1400_v14 }
 0x16d   :  { %1414 = vst [vmem:[#allocation2 + $0x1d0] sm:$0xe0] %v1401_v20 }
 0x16f   :  { %146 = vrot.lane.b32.xlu0 %v137_v15, %s5174_s21 }
 0x171   :  { %211 = vrot.lane.b32.xlu2 %v202_v22, %s5175_s22  ;;  %262 = vrot.lane.b32.xlu1 %v5298_v26, %s5176_s23  ;;  %v5898_v44 = vpop.permute.xlu1 %1393  ;;  %v5900_v38 = vpop.permute.xlu2 %1188 }
 0x172   :  { %v1402_v26 = vsel %vm221_vm15, %v1392_v0, %v5898_v44  ;;  %v1200_v42 = vsel %vm7654_vm14, %v5837_v53, %v5900_v38  ;;  %v1434_v35 = vpop.permute.xlu0 %1433  ;;  %vm1584_vm14 = vcmask 1044480  }
 0x173   :  { %1415 = vst [vmem:[#allocation2 + $0x1d8] sm:$0xe0] %v1402_v26  ;;  %v1586_v32 = vsel %vm1584_vm14, 4294967295, %v5177_v8  ;;  %v1524_v15 = vld [vmem:[#allocation2 + $0x1c8] sm:$0xff] }
 0x174   :  { %1214 = vst [vmem:[#allocation2 + $0x1a0] sm:$0xe] %v1200_v42  ;;  %v5932_v50 = vsel %vm1585_vm9, %v1586_v32, 0  ;;  %v1525_v28 = vld [vmem:[#allocation2 + $0x1d0] sm:$0xff]  ;;  %v1503_v32 = vld [vmem:[#allocation2 + $0x120] sm:$0xff]  ;;  %vm7658_vm9 = vcmask 1014789  }
 0x177   :  { %213 = vrot.lane.b32.xlu0 %v203_v62, %s5175_s22 }
 0x179   :  { %264 = vrot.lane.b32.xlu2 %v5300_v27, %s5176_s23  ;;  %701 = vrot.lane.b32.xlu1 %v689_v19, %s5164_s11  ;;  %v1436_v29 = vpop.permute.xlu1 %1435 }
 0x17a   :  { %v1447_v11 = vsel %vm272_vm1, %v1434_v35, %v1436_v29  ;;  %v1448_v53 = vsel %vm272_vm1, %v1436_v29, %v5858_v61  ;;  %v1440_v17 = vpop.permute.xlu0 %1439  ;;  %v1526_v62 = vld [vmem:[#allocation2 + $0x1d8] sm:$0xff]  ;;  %v313_v35 = vrot.slane %v5336_v56, 1  ;;  %v1517_v29 = vld [vmem:[#allocation2 + $0x190] sm:$0xff] }
 0x17b   :  { %1460 = vst [vmem:[#allocation2 + $0x1f8] sm:$0x7] %v1447_v11  ;;  %v1449_v27 = vsel %vm272_vm1, %v5858_v61, %v1440_v17  ;;  %v1450_v39 = vsel %vm272_vm1, %v1440_v17, %v5870_v7 }
 0x17c   :  { %1461 = vst [vmem:[#allocation2 + $0x200] sm:$0x7] %v1448_v53  ;;  %v1518_v53 = vld [vmem:[#allocation2 + $0x198] sm:$0xff] }
 0x17d   :  { %1462 = vst [vmem:[#allocation2 + $0x208] sm:$0x7] %v1449_v27  ;;  %v1509_v27 = vld [vmem:[#allocation2 + $0x150] sm:$0xff] }
 0x17e   :  { %1463 = vst [vmem:[#allocation2 + $0x210] sm:$0x7] %v1450_v39  ;;  %v1510_v39 = vld [vmem:[#allocation2 + $0x158] sm:$0xff] }
 0x17f   :  { %633 = vrot.lane.b32.xlu0 %v621_v21, %s5163_s10 }
 0x181   :  { %755 = vrot.lane.b32.xlu2 %v5438_v45, %s5165_s12  ;;  %884 = vrot.lane.b32.xlu1 %v872_v55, %s5167_s14  ;;  %v3172_v45 = vsel %vm7657_vm11, 4294967295, %v5177_v8  ;;  %v5930_v31 = vpop.permute.xlu1 %570  ;;  %v1516_v55 = vld [vmem:[#allocation2 + $0x188] sm:$0xff]  ;;  %v1511_v8 = vld [vmem:[#allocation2 + $0x160] sm:$0xff]  ;;  %vm7660_vm11 = vcmask 1011714  }
 0x182   :  { %v5927_v61 = vsel %vm1584_vm14, %v3172_v45, 0  ;;  %v569_v33 = vpop.permute.xlu0 %568  ;;  %v1530_v12 = vld [vmem:[#allocation2 + $0x1f8] sm:$0x7]  ;;  %v1561_v45 = vpack.c.bf16 %v1518_v53, %v1511_v8  ;;  %vm7665_vm14 = vcmask 1009664  }
 0x183   :  { %v582_v48 = vsel %vm7663_vm4, %v5671_v6, %v569_v33  ;;  %v583_v25 = vsel %vm7663_vm4, %v569_v33, %v5930_v31  ;;  %v1566_v9 = vpack.c.bf16 %v1530_v12, %v1523_v10  ;;  %v1531_v22 = vld [vmem:[#allocation2 + $0x200] sm:$0x7]  ;;  %v1109_v6 = vrot.slane %v5584_v18, 2  ;;  %v1496_v12 = vld [vmem:[#allocation2 + $0xe8] sm:$0xff] }
 0x184   :  { %596 = vst [vmem:[#allocation2 + $0xb0] sm:$0x38] %v582_v48  ;;  %v1567_v0 = vpack.c.bf16 %v1531_v22, %v1524_v15  ;;  %v1532_v23 = vld [vmem:[#allocation2 + $0x208] sm:$0x7]  ;;  %v1177_v33 = vrot.slane %v5615_v36, 7  ;;  %v1495_v10 = vld [vmem:[#allocation2 + $0xe0] sm:$0xff] }
 0x185   :  { %597 = vst [vmem:[#allocation2 + $0xb8] sm:$0x38] %v583_v25  ;;  %v1589_v14 = vand.u32 %v5932_v50, %v1566_v9  ;;  %v1568_v20 = vpack.c.bf16 %v1532_v23, %v1525_v28  ;;  %v1533_v19 = vld [vmem:[#allocation2 + $0x210] sm:$0x7]  ;;  %v1553_v25 = vpack.c.bf16 %v1503_v32, %v1496_v12  ;;  %v383_v15 = vrot.slane %v5349_v4, 6  ;;  %v1482_v36 = vld [vmem:[#allocation2 + $0x78] sm:$0xff] }
 0x186   :  { %v1592_v26 = vand.u32 %v5932_v50, %v1567_v0  ;;  %v1569_v42 = vpack.c.bf16 %v1533_v19, %v1526_v62  ;;  %v1497_v9 = vld [vmem:[#allocation2 + $0xf0] sm:$0xff]  ;;  %v1483_v62 = vld [vmem:[#allocation2 + $0x80] sm:$0xff] }
 0x187   :  { %816 = vrot.lane.b32.xlu0 %v804_v3, %s5166_s13  ;;  %1612 = vmatpush.bf16.msra.mxu0 %v1589_v14  ;;  %v1595_v21 = vand.u32 %v5932_v50, %v1568_v20  ;;  %v1559_v3 = vpack.c.bf16 %v1516_v55, %v1509_v27  ;;  %v1481_v23 = vld [vmem:[#allocation2 + $0x70] sm:$0xff]  ;;  %v560_v55 = vrot.slane %v5394_v59, 5  ;;  %v1110_v59 = vrot.slane %v5762_v57, 2 }
 0x188   :  { %1625 = vmatpush.bf16.msra.mxu1 %v1592_v26  ;;  %v1598_v11 = vand.u32 %v5932_v50, %v1569_v42  ;;  %v1179_v57 = vrot.slane %v5779_v60, 7  ;;  %v1178_v27 = vrot.slane %v5777_v47, 7  ;;  %v7720_v60 = vld [vmem:[#allocation28_spill] sm:$0xff]  ;;  %v7725_v12 = vld [vmem:[#allocation35_spill] sm:$0xff] }
 0x189   :  { %945 = vrot.lane.b32.xlu2 %v933_v51, %s5168_s15  ;;  %1061 = vrot.lane.b32.xlu1 %v1048_v13, %s5170_s17  ;;  %v5948_v17 = vpop.permute.xlu1 %1120  ;;  %v1560_v51 = vpack.c.bf16 %v1517_v29, %v1510_v39  ;;  %v1502_v13 = vld [vmem:[#allocation2 + $0x118] sm:$0xff] }
 0x18a   :  { %1638 = vmatpush.bf16.msra.mxu2 %v1595_v21  ;;  %1651 = vmatpush.bf16.msra.mxu3 %v1598_v11  ;;  %v1132_v56 = vsel %vm1128_vm13, %v5789_v2, %v5948_v17  ;;  %v5953_v18 = vpop.permute.xlu0 %1059  ;;  %v1504_v2 = vld [vmem:[#allocation2 + $0x128] sm:$0xff]  ;;  %v1552_v48 = vpack.c.bf16 %v1502_v13, %v1495_v10  ;;  %v1050_v11 = vrot.slane %v5749_v52, 5  ;;  %v7723_v13 = vld [vmem:[#allocation36_spill] sm:$0xff] }
 0x18b   :  { %1146 = vst [vmem:[#allocation2 + $0x168] sm:$0xc0] %v1132_v56  ;;  %1613 = vmatpush.bf16.msra.mxu0 %v1559_v3  ;;  %v1554_v22 = vpack.c.bf16 %v1504_v2, %v1497_v9  ;;  %v1489_v0 = vld [vmem:[#allocation2 + $0xb0] sm:$0xff]  ;;  %v7721_v3 = vld [vmem:[#allocation26_spill] sm:$0xff]  ;;  %v934_v32 = vrot.slane %v7723_v13, 3 }
 0x18c   :  { %1153 = vst [vmem:[#allocation2 + $0x1a0] sm:$0x1] %v1132_v56  ;;  %1626 = vmatpush.bf16.msra.mxu1 %v1560_v51  ;;  %v1490_v28 = vld [vmem:[#allocation2 + $0xb8] sm:$0xff]  ;;  %v1546_v20 = vpack.c.bf16 %v1489_v0, %v1482_v36  ;;  %v690_v51 = vrot.slane %v7721_v3, 7 }
 0x18d   :  { %v1547_v4 = vpack.c.bf16 %v1490_v28, %v1483_v62  ;;  %v7724_v2 = vld [vmem:[#allocation16_spill] sm:$0xff] }
 0x18e   :  { %1639 = vmatpush.bf16.msra.mxu2 %v1561_v45  ;;  %63 = vst.msk [vmem:[#allocation2 + $0x30] sm:$0x7] %vm7665_vm14, %v7724_v2  ;;  %v7736_v2 = vld [vmem:[#allocation49_spill] sm:$0xff] }
 0x18f   :  { %1000 = vrot.lane.b32.xlu0 %v5529_v37, %s5169_s16  ;;  %v1071_v37 = vsel %vm7659_vm12, %v5808_v58, %v5953_v18  ;;  %v1488_v58 = vld [vmem:[#allocation2 + $0xa8] sm:$0xff]  ;;  %1614 = vmatpush.bf16.msra.mxu0 %v1552_v48  ;;  %v873_v48 = vrot.slane %v7725_v12, 6  ;;  %vm7662_vm12 = vcmask 1008640  }
 0x190   :  { %1085 = vst [vmem:[#allocation2 + $0x168] sm:$0x38] %v1071_v37  ;;  %1627 = vmatpush.bf16.msra.mxu1 %v1553_v25  ;;  %v1545_v14 = vpack.c.bf16 %v1488_v58, %v1481_v23  ;;  %v7722_v37 = vld [vmem:[#allocation31_spill] sm:$0xff] }
 0x191   :  { %1122 = vrot.lane.b32.xlu2 %v1109_v6, %s5171_s18  ;;  %325 = vrot.lane.b32.xlu1 %v313_v35, %s5158_s28  ;;  %v445_v6 = vrot.slane %v5366_v34, 3  ;;  %v805_v45 = vrot.slane %v7722_v37, 1  ;;  %v7727_v58 = vld [vmem:[#allocation11_spill] sm:$0xff] }
 0x192   :  { %1640 = vmatpush.bf16.msra.mxu2 %v1554_v22  ;;  %v204_v0 = vrot.slane %v7727_v58, 7 }
 0x193   :  { %v1519_v19 = vld [vmem:[#allocation2 + $0x1a0] sm:$0xff]  ;;  %1615 = vmatpush.bf16.msra.mxu0 %v1545_v14 }
 0x194   :  { %1628 = vmatpush.bf16.msra.mxu1 %v1546_v20  ;;  %v7728_v14 = vld [vmem:[#allocation9_spill] sm:$0xff] }
 0x195   :  { %v139_v20 = vrot.slane %v7728_v14, 2 }
 0x196   :  { %1641 = vmatpush.bf16.msra.mxu2 %v1547_v4 }
 0x197   :  { %1190 = vrot.lane.b32.xlu0 %v1177_v33, %s5172_s19  ;;  %v1512_v26 = vld [vmem:[#allocation2 + $0x168] sm:$0xff] }
 0x198   :  { %v1562_v35 = vpack.c.bf16 %v1519_v19, %v1512_v26 }
 0x199   :  { %395 = vrot.lane.b32.xlu2 %v383_v15, %s5159_s7  ;;  %511 = vrot.lane.b32.xlu1 %v5381_v46, %s5161_s8  ;;  %v7726_v15 = vld [vmem:[#allocation7_spill] sm:$0xff] }
 0x19a   :  { %1652 = vmatpush.bf16.msra.mxu3 %v1562_v35  ;;  %v82_v22 = vrot.slane %v7726_v15, 5 }
 0x19b   :  { %v1396_v42 = vpop.permute.xlu2 %1395 }
 0x19c   :  { %v1403_v21 = vsel %vm221_vm15, %v5898_v44, %v1396_v42  ;;  %v1049_v44 = vrot.slane %v5747_v43, 5  ;;  %v1111_v43 = vrot.slane %v5764_v30, 2 }
 0x19d   :  { %1416 = vst [vmem:[#allocation2 + $0x1e0] sm:$0xe0] %v1403_v21 }
 0x19f   :  { %457 = vrot.lane.b32.xlu0 %v445_v6, %s5160_s0 }
 0x1a1   :  { %572 = vrot.lane.b32.xlu2 %v560_v55, %s5162_s9  ;;  %1004 = vrot.lane.b32.xlu1 %v5736_v5, %s5169_s16  ;;  %v7730_v55 = vld [vmem:[#allocation13_spill] sm:$0xff] }
 0x1a3   :  { %v5974_v46 = vpop.permute.xlu2 %87  ;;  %v5976_v29 = vpop.permute.xlu0 %1278 }
 0x1a4   :  { %v1286_v34 = vsel %vm99_vm0, %v5817_v41, %v5976_v29 }
 0x1a5   :  { %1299 = vst [vmem:[#allocation2 + $0x1a8] sm:$0x80] %v1286_v34 }
 0x1a6   :  { %1306 = vst [vmem:[#allocation2 + $0x1e0] sm:$0x3] %v1286_v34 }
 0x1a7   :  { %1002 = vrot.lane.b32.xlu0 %v5734_v1, %s5169_s16  ;;  %s5181_s16 = smov 98  }
 0x1a9   :  { %1063 = vrot.lane.b32.xlu2 %v1049_v44, %s5170_s17  ;;  %1124 = vrot.lane.b32.xlu1 %v1110_v59, %s5171_s18 }
 0x1ab   :  { %v208_v5 = vpop.permute.xlu2 %207  ;;  %v1341_v53 = vpop.permute.xlu1 %1340 }
 0x1ac   :  { %v1348_v41 = vsel %vm156_vm3, %v5875_v16, %v1341_v53  ;;  %v622_v16 = vrot.slane %v5409_v40, 2 }
 0x1ad   :  { %1361 = vst [vmem:[#allocation2 + $0x1e0] sm:$0x1c] %v1348_v41  ;;  %v7731_v41 = vld [vmem:[#allocation42_spill] sm:$0xff] }
 0x1af   :  { %1065 = vrot.lane.b32.xlu0 %v1050_v11, %s5170_s17  ;;  %s5182_s17 = smov 83  }
 0x1b1   :  { %1126 = vrot.lane.b32.xlu2 %v1111_v43, %s5171_s18  ;;  %1194 = vrot.lane.b32.xlu1 %v1179_v57, %s5172_s19  ;;  %v623_v43 = vrot.slane %v7731_v41, 2  ;;  %s5183_s18 = smov 111  }
 0x1b3   :  { %v5995_v1 = vpop.permute.xlu2 %260  ;;  %v86_v52 = vpop.permute.xlu1 %85 }
 0x1b4   :  { %v100_v39 = vsel %vm99_vm0, %v86_v52, %v5974_v46  ;;  %v1527_v35 = vld [vmem:[#allocation2 + $0x1e0] sm:$0xff] }
 0x1b5   :  { %113 = vst [vmem:[#allocation2] sm:$0x38] %v100_v39  ;;  %v691_v39 = vrot.slane %v5629_v63, 7  ;;  %v7733_v63 = vld [vmem:[#allocation46_spill] sm:$0xff] }
 0x1b7   :  { %1192 = vrot.lane.b32.xlu0 %v1178_v27, %s5172_s19  ;;  %s5184_s19 = smov 68  }
 0x1b9   :  { %635 = vrot.lane.b32.xlu2 %v622_v16, %s5163_s10  ;;  %v6003_v30 = vpop.permute.xlu0 %1443  ;;  %757 = vrot.lane.b32.xlu1 %v7720_v60, %s5165_s12  ;;  %v7732_v60 = vld [vmem:[#allocation47_spill] sm:$0xff] }
 0x1ba   :  { %v1451_v47 = vsel %vm272_vm1, %v5870_v7, %v6003_v30 }
 0x1bb   :  { %1464 = vst [vmem:[#allocation2 + $0x218] sm:$0x7] %v1451_v47  ;;  %v1398_v56 = vpop.permute.xlu2 %1397  ;;  %v6011_v40 = vpop.permute.xlu1 %144 }
 0x1bc   :  { %v1404_v8 = vsel %vm221_vm15, %v1396_v42, %v1398_v56  ;;  %1418 = vst.msk [vmem:[#allocation2 + $0x1f0] sm:$0xe0] %vm7658_vm9, %v1398_v56  ;;  %v7729_v42 = vld [vmem:[#allocation43_spill] sm:$0xff]  ;;  %vm7664_vm9 = vcmask 1014791   ;;  %v692_v56 = vrot.slane %v7733_v63, 7  ;;  %v7745_v63 = vld [vmem:[#allocation44_spill] sm:$0xff] }
 0x1bd   :  { %1417 = vst [vmem:[#allocation2 + $0x1e8] sm:$0xe0] %v1404_v8  ;;  %v624_v6 = vrot.slane %v7729_v42, 2  ;;  %v7734_v8 = vld [vmem:[#allocation50_spill] sm:$0xff] }
 0x1be   :  { %v807_v37 = vrot.slane %v7734_v8, 1  ;;  %v7746_v8 = vld [vmem:[#allocation58_spill] sm:$0xff] }
 0x1bf   :  { %703 = vrot.lane.b32.xlu0 %v690_v51, %s5164_s11 }
 0x1c1   :  { %818 = vrot.lane.b32.xlu2 %v805_v45, %s5166_s13  ;;  %v143_v7 = vpop.permute.xlu0 %142  ;;  %947 = vrot.lane.b32.xlu1 %v934_v32, %s5168_s15 }
 0x1c2   :  { %v157_v33 = vsel %vm156_vm3, %v143_v7, %v6011_v40  ;;  %v1534_v26 = vld [vmem:[#allocation2 + $0x218] sm:$0x7]  ;;  %v806_v7 = vrot.slane %v7736_v2, 1 }
 0x1c3   :  { %v6024_v10 = vpop.permute.xlu2 %91  ;;  %170 = vst [vmem:[#allocation2] sm:$0xc0] %v157_v33  ;;  %v259_v25 = vpop.permute.xlu1 %258  ;;  %v1570_v21 = vpack.c.bf16 %v1534_v26, %v1527_v35  ;;  %v7741_v26 = vld [vmem:[#allocation56_spill] sm:$0xff] }
 0x1c4   :  { %178 = vst [vmem:[#allocation2 + $0x38] sm:$0x1] %v157_v33  ;;  %v273_v9 = vsel %vm272_vm1, %v259_v25, %v5995_v1  ;;  %v936_v42 = vrot.slane %v7741_v26, 3 }
 0x1c5   :  { %286 = vst [vmem:[#allocation2 + $0x38] sm:$0x70] %v273_v9  ;;  %v1601_v27 = vand.u32 %v5932_v50, %v1570_v21  ;;  %v7738_v9 = vld [vmem:[#allocation55_spill] sm:$0xff]  ;;  %v7742_v21 = vld [vmem:[#allocation17_spill] sm:$0xff] }
 0x1c6   :  { %v935_v15 = vrot.slane %v7738_v9, 3  ;;  %v7752_v9 = vld [vmem:[#allocation25_spill] sm:$0xff] }
 0x1c7   :  { %886 = vrot.lane.b32.xlu0 %v873_v48, %s5167_s14  ;;  %v7737_v48 = vld [vmem:[#allocation52_spill] sm:$0xff] }
 0x1c8   :  { %v874_v25 = vrot.slane %v7737_v48, 6 }
 0x1c9   :  { %93 = vrot.lane.b32.xlu2 %v82_v22, %s5173_s20  ;;  %v210_v28 = vpop.permute.xlu0 %209  ;;  %215 = vrot.lane.b32.xlu1 %v204_v0, %s5175_s22 }
 0x1ca   :  { %v222_v23 = vsel %vm221_vm15, %v208_v5, %v210_v28  ;;  %v1467_v59 = vld [vmem:[#allocation2] sm:$0xff] }
 0x1cb   :  { %v6035_v36 = vpop.permute.xlu2 %211  ;;  %235 = vst [vmem:[#allocation2 + $0x38] sm:$0xe] %v222_v23  ;;  %v1343_v62 = vpop.permute.xlu1 %1342 }
 0x1cc   :  { %v223_v4 = vsel %vm221_vm15, %v210_v28, %v6035_v36  ;;  %v1349_v19 = vsel %vm156_vm3, %v1341_v53, %v1343_v62  ;;  %1363 = vst.msk [vmem:[#allocation2 + $0x1f0] sm:$0x1c] %vm7660_vm11, %v1343_v62  ;;  %v7739_v28 = vld [vmem:[#allocation53_spill] sm:$0xff]  ;;  %vm1580_vm11 = vcmask 613376  }
 0x1cd   :  { %236 = vst [vmem:[#allocation2 + $0x40] sm:$0xe] %v223_v4  ;;  %v875_v23 = vrot.slane %v7739_v28, 6 }
 0x1ce   :  { %1362 = vst [vmem:[#allocation2 + $0x1e8] sm:$0x1c] %v1349_v19 }
 0x1cf   :  { %150 = vrot.lane.b32.xlu0 %v139_v20, %s5174_s21  ;;  %v6112_v20 = vld [vmem:[%s7638_s2] sm:$0x7] }
 0x1d1   :  { %266 = vrot.lane.b32.xlu2 %v7730_v55, %s5176_s23  ;;  %v1281_v34 = vpop.permute.xlu0 %1280  ;;  %639 = vrot.lane.b32.xlu1 %v624_v6, %s5163_s10  ;;  %v384_v55 = vrot.slane %v7742_v21, 6  ;;  %v7759_v21 = vld [vmem:[#allocation30_spill] sm:$0xff] }
 0x1d2   :  { %v1287_v44 = vsel %vm99_vm0, %v5976_v29, %v1281_v34  ;;  %1301 = vst.msk [vmem:[#allocation2 + $0x1b8] sm:$0x80] %vm7664_vm9, %v1281_v34  ;;  %v1474_v5 = vld [vmem:[#allocation2 + $0x38] sm:$0xff]  ;;  %vm7776_vm9 = vcmask 498688  }
 0x1d3   :  { %v6050_v11 = vpop.permute.xlu2 %264  ;;  %1300 = vst [vmem:[#allocation2 + $0x1b0] sm:$0x80] %v1287_v44  ;;  %v1538_v53 = vpack.c.bf16 %v1474_v5, %v1467_v59  ;;  %v90_v57 = vpop.permute.xlu1 %89 }
 0x1d4   :  { %1307 = vst [vmem:[#allocation2 + $0x1e8] sm:$0x3] %v1287_v44  ;;  %v101_v52 = vsel %vm99_vm0, %v5974_v46, %v90_v57  ;;  %v102_v29 = vsel %vm99_vm0, %v90_v57, %v6024_v10 }
 0x1d5   :  { %1308 = vst.msk [vmem:[#allocation2 + $0x1f0] sm:$0x3] %vm7662_vm12, %v1281_v34  ;;  %1616 = vmatpush.bf16.msra.mxu0 %v1538_v53  ;;  %vm7751_vm12 = vcmask 244736  }
 0x1d6   :  { %114 = vst [vmem:[#allocation2 + $0x8] sm:$0x38] %v101_v52 }
 0x1d7   :  { %637 = vrot.lane.b32.xlu0 %v623_v43, %s5163_s10  ;;  %115 = vst [vmem:[#allocation2 + $0x10] sm:$0x38] %v102_v29  ;;  %v7743_v43 = vld [vmem:[#allocation51_spill] sm:$0xff]  ;;  %s5196_s10 = smov 70  }
 0x1d8   :  { %4100 = vmatmul.msk.bf16.vlgmr.msra.gmra.mxu0 %vm1580_vm11, %v6112_v20 }
 0x1d9   :  { %1664 = vmatpush.bf16.msrb.mxu0 %v1601_v27  ;;  %705 = vrot.lane.b32.xlu2 %v691_v39, %s5164_s11  ;;  %v1446_v16 = vpop.permute.xlu0 %1445 }
 0x1da   :  { %759 = vrot.lane.b32.xlu1 %v7732_v60, %s5165_s12  ;;  %v1452_v46 = vsel %vm272_vm1, %v6003_v30, %v1446_v16  ;;  %1466 = vst.msk [vmem:[#allocation2 + $0x228] sm:$0x7] %vm7665_vm14, %v1446_v16  ;;  %v7735_v30 = vld [vmem:[#allocation48_spill] sm:$0xff]  ;;  %v7744_v16 = vld [vmem:[#allocation15_spill] sm:$0xff] }
 0x1db   :  { %v6067_v47 = vpop.permute.xlu2 %755  ;;  %1465 = vst [vmem:[#allocation2 + $0x220] sm:$0x7] %v1452_v46  ;;  %v6070_v3 = vpop.permute.xlu1 %148  ;;  %v1528_v19 = vld [vmem:[#allocation2 + $0x1e8] sm:$0xff]  ;;  %v314_v60 = vrot.slane %v7744_v16, 1  ;;  %v5178_v16 = vmov 0  }
 0x1dc   :  { %v767_v51 = vsel %vm763_vm7, %v5688_v54, %v6067_v47  ;;  %v1529_v44 = vld [vmem:[#allocation2 + $0x1f0] sm:$0xff]  ;;  %5070 = vset.pattern.permute.xlu2 %v5178_v16  ;;  %5126 = vset.pattern.permute.xlu1 %v5178_v16 }
 0x1dd   :  { %781 = vst [vmem:[#allocation2 + $0xf8] sm:$0x70] %v767_v51  ;;  %5127 = vset.pattern.permute.xlu0 %v5178_v16 }
 0x1df   :  { %707 = vrot.lane.b32.xlu0 %v692_v56, %s5164_s11  ;;  %s5197_s11 = smov 69  }
 0x1e1   :  { %761 = vrot.lane.b32.xlu2 %v7735_v30, %s5165_s12  ;;  %v147_v45 = vpop.permute.xlu0 %146  ;;  %v1536_v35 = vld [vmem:[#allocation2 + $0x228] sm:$0x7]  ;;  %v7747_v30 = vld [vmem:[#allocation19_spill] sm:$0xff] }
 0x1e2   :  { %822 = vrot.lane.b32.xlu1 %v807_v37, %s5166_s13  ;;  %v158_v13 = vsel %vm156_vm3, %v6011_v40, %v147_v45  ;;  %v159_v54 = vsel %vm156_vm3, %v147_v45, %v6070_v3  ;;  %v1535_v58 = vld [vmem:[#allocation2 + $0x220] sm:$0x7]  ;;  %v1572_v5 = vpack.c.bf16 %v1536_v35, %v1529_v44  ;;  %v446_v45 = vrot.slane %v7747_v30, 3 }
 0x1e3   :  { %v6082_v32 = vpop.permute.xlu2 %945  ;;  %171 = vst [vmem:[#allocation2 + $0x8] sm:$0xc0] %v158_v13  ;;  %v263_v33 = vpop.permute.xlu1 %262  ;;  %v1571_v6 = vpack.c.bf16 %v1535_v58, %v1528_v19  ;;  %v7754_v58 = vld [vmem:[#allocation21_spill] sm:$0xff] }
 0x1e4   :  { %v957_v12 = vsel %vm953_vm10, %v5740_v49, %v6082_v32  ;;  %179 = vst [vmem:[#allocation2 + $0x40] sm:$0x1] %v158_v13  ;;  %v274_v40 = vsel %vm272_vm1, %v5995_v1, %v263_v33  ;;  %v275_v22 = vsel %vm272_vm1, %v263_v33, %v6050_v11  ;;  %v1607_v51 = vand.u32 %v5932_v50, %v1572_v5  ;;  %v7748_v13 = vld [vmem:[#allocation23_spill] sm:$0xff]  ;;  %v7762_v5 = vld [vmem:[#allocation32_spill] sm:$0xff] }
 0x1e5   :  { %971 = vst [vmem:[#allocation2 + $0x130] sm:$0xe0] %v957_v12  ;;  %v1604_v41 = vand.u32 %v5932_v50, %v1571_v6  ;;  %v7757_v6 = vld [vmem:[#allocation34_spill] sm:$0xff] }
 0x1e6   :  { %172 = vst [vmem:[#allocation2 + $0x10] sm:$0xc0] %v159_v54 }
 0x1e7   :  { %180 = vst [vmem:[#allocation2 + $0x48] sm:$0x1] %v159_v54  ;;  %820 = vrot.lane.b32.xlu0 %v806_v7, %s5166_s13  ;;  %v561_v54 = vrot.slane %v7748_v13, 5  ;;  %v7749_v7 = vld [vmem:[#allocation57_spill] sm:$0xff] }
 0x1e8   :  { %287 = vst [vmem:[#allocation2 + $0x40] sm:$0x70] %v274_v40 }
 0x1e9   :  { %888 = vrot.lane.b32.xlu2 %v874_v25, %s5167_s14  ;;  %v6098_v49 = vpop.permute.xlu0 %213  ;;  %288 = vst [vmem:[#allocation2 + $0x48] sm:$0x70] %v275_v22  ;;  %v7753_v22 = vld [vmem:[#allocation29_spill] sm:$0xff] }
 0x1ea   :  { %949 = vrot.lane.b32.xlu1 %v935_v15, %s5168_s15  ;;  %v224_v1 = vsel %vm221_vm15, %v6035_v36, %v6098_v49  ;;  %v7740_v36 = vld [vmem:[#allocation54_spill] sm:$0xff]  ;;  %v315_v15 = vrot.slane %v7752_v9, 1 }
 0x1eb   :  { %v6104_v0 = vpop.permute.xlu2 %1122  ;;  %237 = vst [vmem:[#allocation2 + $0x48] sm:$0xe] %v224_v1  ;;  %v6107_v14 = vpop.permute.xlu1 %701  ;;  %v385_v1 = vrot.slane %v7753_v22, 6 }
 0x1ec   :  { %v1133_v62 = vsel %vm1128_vm13, %v5948_v17, %v6104_v0  ;;  %v713_v4 = vsel %vm709_vm5, %v7740_v36, %v6107_v14  ;;  %v1468_v17 = vld [vmem:[#allocation2 + $0x8] sm:$0xff] }
 0x1ed   :  { %1147 = vst [vmem:[#allocation2 + $0x170] sm:$0xc0] %v1133_v62  ;;  %v1469_v27 = vld [vmem:[#allocation2 + $0x10] sm:$0xff] }
 0x1ee   :  { %1154 = vst [vmem:[#allocation2 + $0x1a8] sm:$0x1] %v1133_v62  ;;  %v7756_v36 = vld [vmem:[#allocation27_spill] sm:$0xff] }
 0x1ef   :  { %890 = vrot.lane.b32.xlu0 %v875_v23, %s5167_s14  ;;  %727 = vst [vmem:[#allocation2 + $0xf8] sm:$0xe] %v713_v4  ;;  %v1475_v34 = vld [vmem:[#allocation2 + $0x40] sm:$0xff]  ;;  %v316_v4 = vrot.slane %v7756_v36, 1 }
 0x1f0   :  { %v1539_v59 = vpack.c.bf16 %v1475_v34, %v1468_v17 }
 0x1f1   :  { %951 = vrot.lane.b32.xlu2 %v936_v42, %s5168_s15  ;;  %v6126_v53 = vpop.permute.xlu0 %633  ;;  %s5180_s15 = smov 72  }
 0x1f2   :  { %397 = vrot.lane.b32.xlu1 %v384_v55, %s5159_s7  ;;  %v645_v57 = vsel %vm641_vm6, %v7743_v43, %v6126_v53  ;;  %1629 = vmatpush.bf16.msra.mxu1 %v1539_v59  ;;  %v1476_v52 = vld [vmem:[#allocation2 + $0x48] sm:$0xff]  ;;  %v7760_v55 = vld [vmem:[#allocation33_spill] sm:$0xff] }
 0x1f3   :  { %v6133_v29 = vpop.permute.xlu2 %395  ;;  %659 = vst [vmem:[#allocation2 + $0xc0] sm:$0xc0] %v645_v57  ;;  %v1540_v39 = vpack.c.bf16 %v1476_v52, %v1469_v27  ;;  %v6136_v46 = vpop.permute.xlu1 %884  ;;  %v448_v17 = vrot.slane %v7760_v55, 3  ;;  %v7765_v52 = vld [vmem:[#allocation39_spill] sm:$0xff] }
 0x1f4   :  { %v407_v56 = vsel %vm7661_vm2, %v7745_v63, %v6133_v29  ;;  %666 = vst [vmem:[#allocation2 + $0xf8] sm:$0x1] %v645_v57  ;;  %v896_v37 = vsel %vm892_vm8, %v7746_v8, %v6136_v46  ;;  %vm7750_vm2 = vcmask 498688   ;;  %v7763_v57 = vld [vmem:[#allocation41_spill] sm:$0xff] }
 0x1f5   :  { %421 = vst [vmem:[#allocation2 + $0x88] sm:$0x1c] %v407_v56  ;;  %1642 = vmatpush.bf16.msra.mxu2 %v1540_v39  ;;  %4101 = vmatmul.msk.bf16.vlgmr.msra.gmra.mxu1 %vm1580_vm11, %v6112_v20  ;;  %v562_v39 = vrot.slane %v7765_v52, 5  ;;  %v7768_v56 = vld [vmem:[#allocation45_spill] sm:$0xff] }
 0x1f6   :  { %1677 = vmatpush.bf16.msrb.mxu1 %v1604_v41  ;;  %910 = vst [vmem:[#allocation2 + $0x130] sm:$0x1c] %v896_v37  ;;  %v447_v41 = vrot.slane %v7762_v5, 3  ;;  %v7781_v5 = vld [vmem:[#allocation14_spill] sm:$0xff] }
 0x1f7   :  { %327 = vrot.lane.b32.xlu0 %v314_v60, %s5158_s28  ;;  %v7767_v60 = vld [vmem:[#allocation37_spill] sm:$0xff] }
 0x1f8   :  { %4102 = vmatmul.msk.bf16.vlgmr.msra.gmra.mxu2 %vm1580_vm11, %v6112_v20 }
 0x1f9   :  { %1690 = vmatpush.bf16.msrb.mxu2 %v1607_v51  ;;  %459 = vrot.lane.b32.xlu2 %v446_v45, %s5160_s0  ;;  %v6153_v2 = vpop.permute.xlu0 %816 }
 0x1fa   :  { %574 = vrot.lane.b32.xlu1 %v561_v54, %s5162_s9  ;;  %v828_v33 = vsel %vm7750_vm2, %v7749_v7, %v6153_v2  ;;  %vm7755_vm2 = vcmask 252928   ;;  %v7770_v7 = vld [vmem:[#allocation40_spill] sm:$0xff] }
 0x1fb   :  { %v6159_v12 = vpop.permute.xlu2 %572  ;;  %842 = vst [vmem:[#allocation2 + $0xf8] sm:$0x80] %v828_v33  ;;  %v1062_v48 = vpop.permute.xlu1 %1061 }
 0x1fc   :  { %v584_v25 = vsel %vm7663_vm4, %v5930_v31, %v6159_v12  ;;  %849 = vst [vmem:[#allocation2 + $0x130] sm:$0x3] %v828_v33  ;;  %v1072_v40 = vsel %vm7751_vm12, %v5953_v18, %v1062_v48  ;;  %vm7758_vm4 = vcmask 785408   ;;  %v563_v33 = vrot.slane %v7770_v7, 5 }
 0x1fd   :  { %598 = vst [vmem:[#allocation2 + $0xc0] sm:$0x38] %v584_v25 }
 0x1fe   :  { %1086 = vst [vmem:[#allocation2 + $0x170] sm:$0x38] %v1072_v40  ;;  %v7772_v40 = vld [vmem:[#allocation38_spill] sm:$0xff] }
 0x1ff   :  { %513 = vrot.lane.b32.xlu0 %v7754_v58, %s5161_s8 }
 0x201   :  { %329 = vrot.lane.b32.xlu2 %v315_v15, %s5158_s28  ;;  %v1001_v28 = vpop.permute.xlu0 %1000 }
 0x202   :  { %399 = vrot.lane.b32.xlu1 %v385_v1, %s5159_s7  ;;  %v1011_v31 = vsel %vm7755_vm2, %v5885_v24, %v1001_v28  ;;  %v1498_v23 = vld [vmem:[#allocation2 + $0xf8] sm:$0xff]  ;;  %v386_v24 = vrot.slane %v7759_v21, 6  ;;  %vm7761_vm2 = vcmask 228352  }
 0x203   :  { %v6174_v62 = vpop.permute.xlu2 %1063  ;;  %1025 = vst [vmem:[#allocation2 + $0x170] sm:$0x7] %v1011_v31  ;;  %v1505_v18 = vld [vmem:[#allocation2 + $0x130] sm:$0xff]  ;;  %v6177_v19 = vpop.permute.xlu1 %325 }
 0x204   :  { %v1073_v26 = vsel %vm7751_vm12, %v1062_v48, %v6174_v62  ;;  %v1555_v42 = vpack.c.bf16 %v1505_v18, %v1498_v23  ;;  %v337_v35 = vsel %vm7758_vm4, %v7757_v6, %v6177_v19  ;;  %vm7764_vm4 = vcmask 760832   ;;  %v7771_v48 = vld [vmem:[#allocation10_spill] sm:$0xff]  ;;  %v7775_v23 = vld [vmem:[#allocation8_spill] sm:$0xff] }
 0x205   :  { %1087 = vst [vmem:[#allocation2 + $0x178] sm:$0x38] %v1073_v26  ;;  %vm292_vm12 = vcmask 1013764   ;;  %v140_v25 = vrot.slane %v7771_v48, 2  ;;  %v83_v18 = vrot.slane %v7775_v23, 5 }
 0x206   :  { %1653 = vmatpush.bf16.msra.mxu3 %v1555_v42  ;;  %351 = vst [vmem:[#allocation2 + $0x50] sm:$0x80] %v337_v35 }
 0x207   :  { %331 = vrot.lane.b32.xlu0 %v316_v4, %s5158_s28  ;;  %359 = vst [vmem:[#allocation2 + $0x88] sm:$0x3] %v337_v35  ;;  %v7778_v35 = vld [vmem:[#allocation18_spill] sm:$0xff] }
 0x208   :  { %v84_v21 = vrot.slane %v7778_v35, 5 }
 0x209   :  { %401 = vrot.lane.b32.xlu2 %v386_v24, %s5159_s7  ;;  %v6188_v34 = vpop.permute.xlu0 %1190  ;;  %s5192_s7 = smov 113  }
 0x20a   :  { %463 = vrot.lane.b32.xlu1 %v448_v17, %s5160_s0  ;;  %v1201_v44 = vsel %vm7761_vm2, %v5900_v38, %v6188_v34  ;;  %v7766_v38 = vld [vmem:[#allocation59_spill] sm:$0xff]  ;;  %vm7769_vm2 = vcmask 769024  }
 0x20b   :  { %v1127_v59 = vpop.permute.xlu2 %1126  ;;  %1215 = vst [vmem:[#allocation2 + $0x1a8] sm:$0xe] %v1201_v44  ;;  %v6195_v43 = vpop.permute.xlu1 %511  ;;  %v1513_v8 = vld [vmem:[#allocation2 + $0x170] sm:$0xff] }
 0x20c   :  { %v523_v27 = vsel %vm7764_vm4, %v7763_v57, %v6195_v43  ;;  %1246 = vst.msk [vmem:[#allocation2 + $0x1b8] sm:$0x70] %vm292_vm12, %v7766_v38  ;;  %vm7773_vm4 = vcmask 252928   ;;  %v7780_v44 = vld [vmem:[#allocation20_spill] sm:$0xff] }
 0x20d   :  { %537 = vst [vmem:[#allocation2 + $0xc0] sm:$0x7] %v523_v27 }
 0x20f   :  { %461 = vrot.lane.b32.xlu0 %v447_v41, %s5160_s0  ;;  %v7782_v41 = vld [vmem:[#allocation24_spill] sm:$0xff]  ;;  %s5193_s0 = smov 110  }
 0x211   :  { %515 = vrot.lane.b32.xlu2 %v7767_v60, %s5161_s8  ;;  %v6206_v63 = vpop.permute.xlu0 %457 }
 0x212   :  { %576 = vrot.lane.b32.xlu1 %v562_v39, %s5162_s9  ;;  %v469_v51 = vsel %vm7769_vm2, %v7768_v56, %v6206_v63  ;;  %v1520_v37 = vld [vmem:[#allocation2 + $0x1a8] sm:$0xff]  ;;  %vm7774_vm2 = vmmov %vm7773_vm4 }
 0x213   :  { %v6212_v30 = vpop.permute.xlu2 %635  ;;  %483 = vst [vmem:[#allocation2 + $0x88] sm:$0xe0] %v469_v51  ;;  %v1563_v45 = vpack.c.bf16 %v1520_v37, %v1513_v8  ;;  %v1005_v13 = vpop.permute.xlu1 %1004  ;;  %v7785_v39 = vld [vmem:[#allocation22_spill] sm:$0xff] }
 0x214   :  { %v646_v54 = vsel %vm641_vm6, %v6126_v53, %v6212_v30  ;;  %v1491_v9 = vld [vmem:[#allocation2 + $0xc0] sm:$0xff]  ;;  %v206_v16 = vrot.slane %v7785_v39, 7 }
 0x215   :  { %660 = vst [vmem:[#allocation2 + $0xc8] sm:$0xc0] %v646_v54  ;;  %1665 = vmatpush.bf16.msrb.mxu0 %v1563_v45 }
 0x216   :  { %667 = vst [vmem:[#allocation2 + $0x100] sm:$0x1] %v646_v54 }
 0x217   :  { %517 = vrot.lane.b32.xlu0 %v7772_v40, %s5161_s8  ;;  %s5194_s8 = smov 112  }
 0x219   :  { %578 = vrot.lane.b32.xlu2 %v563_v33, %s5162_s9  ;;  %v1003_v15 = vpop.permute.xlu0 %1002  ;;  %s5195_s9 = smov 114  }
 0x21a   :  { %152 = vrot.lane.b32.xlu1 %v140_v25, %s5174_s21  ;;  %v1012_v22 = vsel %vm7773_vm4, %v1001_v28, %v1003_v15  ;;  %v1013_v53 = vsel %vm7774_vm2, %v1003_v15, %v1005_v13  ;;  %v1484_v1 = vld [vmem:[#allocation2 + $0x88] sm:$0xff]  ;;  %v7777_v28 = vld [vmem:[#allocation12_spill] sm:$0xff]  ;;  %vm176_vm4 = vcmask 1014790   ;;  %vm184_vm2 = vcmask 1007616  }
 0x21b   :  { %v6225_v58 = vpop.permute.xlu2 %818  ;;  %1026 = vst [vmem:[#allocation2 + $0x178] sm:$0x7] %v1012_v22  ;;  %v1548_v31 = vpack.c.bf16 %v1491_v9, %v1484_v1  ;;  %v1125_v36 = vpop.permute.xlu1 %1124  ;;  %v205_v42 = vrot.slane %v7777_v28, 7 }
 0x21c   :  { %v829_v4 = vsel %vm7776_vm9, %v6153_v2, %v6225_v58  ;;  %1027 = vst.msk [vmem:[#allocation2 + $0x180] sm:$0x7] %vm7665_vm14, %v1013_v53  ;;  %v1134_v26 = vsel %vm1128_vm13, %v6104_v0, %v1125_v36  ;;  %v1135_v6 = vsel %vm1128_vm13, %v1125_v36, %v1127_v59  ;;  %vm7666_vm9 = vcmask 1012739  }
 0x21d   :  { %843 = vst [vmem:[#allocation2 + $0x100] sm:$0x80] %v829_v4  ;;  %1654 = vmatpush.bf16.msra.mxu3 %v1548_v31  ;;  %vm7779_vm14 = vcmask 244736   ;;  %v141_v59 = vrot.slane %v7780_v44, 2  ;;  %vm241_vm13 = vcmask 1010689  }
 0x21e   :  { %850 = vst [vmem:[#allocation2 + $0x138] sm:$0x3] %v829_v4 }
 0x21f   :  { %95 = vrot.lane.b32.xlu0 %v83_v18, %s5173_s20  ;;  %1148 = vst [vmem:[#allocation2 + $0x178] sm:$0xc0] %v1134_v26 }
 0x220   :  { %1149 = vst.msk [vmem:[#allocation2 + $0x180] sm:$0xc0] %vm176_vm4, %v1135_v6 }
 0x221   :  { %217 = vrot.lane.b32.xlu2 %v205_v42, %s5175_s22  ;;  %v1066_v0 = vpop.permute.xlu0 %1065  ;;  %1155 = vst [vmem:[#allocation2 + $0x1b0] sm:$0x1] %v1134_v26 }
 0x222   :  { %97 = vrot.lane.b32.xlu1 %v84_v21, %s5173_s20  ;;  %v1074_v2 = vsel %vm7779_vm14, %v6174_v62, %v1066_v0  ;;  %1156 = vst.msk [vmem:[#allocation2 + $0x1b8] sm:$0x1] %vm184_vm2, %v1135_v6  ;;  %vm7783_vm14 = vcmask 228352  }
 0x223   :  { %v6244_v24 = vpop.permute.xlu2 %93  ;;  %1088 = vst.msk [vmem:[#allocation2 + $0x180] sm:$0x38] %vm7666_vm9, %v1074_v2  ;;  %v1195_v55 = vpop.permute.xlu1 %1194  ;;  %vm7784_vm9 = vmmov %vm7783_vm14 }
 0x224   :  { %v103_v17 = vsel %vm99_vm0, %v6024_v10, %v6244_v24  ;;  %v1573_v10 = vld [vmem:[%s7641_s5 + $0xd0] sm:$0x7] }
 0x225   :  { %116 = vst [vmem:[#allocation2 + $0x18] sm:$0x38] %v103_v17  ;;  %v1574_v56 = vunpack.c.l.bf16 %v1573_v10 }
 0x226   :  { %v1514_v37 = vld [vmem:[#allocation2 + $0x178] sm:$0xff] }
 0x227   :  { %268 = vrot.lane.b32.xlu0 %v7781_v5, %s5176_s23 }
 0x229   :  { %154 = vrot.lane.b32.xlu2 %v141_v59, %s5174_s21  ;;  %v1193_v62 = vpop.permute.xlu0 %1192 }
 0x22a   :  { %270 = vrot.lane.b32.xlu1 %v7782_v41, %s5176_s23  ;;  %v1202_v57 = vsel %vm7783_vm14, %v6188_v34, %v1193_v62  ;;  %v1203_v27 = vsel %vm7784_vm9, %v1193_v62, %v1195_v55  ;;  %v1515_v54 = vld [vmem:[#allocation2 + $0x180] sm:$0xff]  ;;  %vm7790_vm14 = vcmask 1008640  }
 0x22b   :  { %v6262_v52 = vpop.permute.xlu2 %266  ;;  %1216 = vst [vmem:[#allocation2 + $0x1b0] sm:$0xe] %v1202_v57  ;;  %v758_v38 = vpop.permute.xlu1 %757 }
 0x22c   :  { %v276_v60 = vsel %vm272_vm1, %v6050_v11, %v6262_v52  ;;  %1217 = vst.msk [vmem:[#allocation2 + $0x1b8] sm:$0xe] %vm241_vm13, %v1203_v27  ;;  %v768_v34 = vsel %vm763_vm7, %v6067_v47, %v758_v38 }
 0x22d   :  { %289 = vst [vmem:[#allocation2 + $0x50] sm:$0x70] %v276_v60 }
 0x22e   :  { %782 = vst [vmem:[#allocation2 + $0x100] sm:$0x70] %v768_v34 }
 0x22f   :  { %219 = vrot.lane.b32.xlu0 %v206_v16, %s5175_s22 }
 0x231   :  { %1577 = vperm.xlu2 %5070, %v1574_v56   ;;  %v704_v51 = vpop.permute.xlu0 %703 }
 0x232   :  { %v714_v8 = vsel %vm709_vm5, %v6107_v14, %v704_v51  ;;  %v1521_v45 = vld [vmem:[#allocation2 + $0x1b0] sm:$0xff] }
 0x233   :  { %v706_v13 = vpop.permute.xlu2 %705  ;;  %728 = vst [vmem:[#allocation2 + $0x100] sm:$0xe] %v714_v8  ;;  %v1564_v11 = vpack.c.bf16 %v1521_v45, %v1514_v37  ;;  %v1522_v7 = vld [vmem:[#allocation2 + $0x1b8] sm:$0xff]  ;;  %v948_v33 = vpop.permute.xlu1 %947 }
 0x234   :  { %v715_v47 = vsel %vm709_vm5, %v704_v51, %v706_v13  ;;  %v1565_v48 = vpack.c.bf16 %v1522_v7, %v1515_v54  ;;  %v958_v25 = vsel %vm953_vm10, %v6082_v32, %v948_v33 }
 0x235   :  { %729 = vst [vmem:[#allocation2 + $0x108] sm:$0xe] %v715_v47  ;;  %1678 = vmatpush.bf16.msrb.mxu1 %v1564_v11 }
 0x236   :  { %1691 = vmatpush.bf16.msrb.mxu2 %v1565_v48  ;;  %972 = vst [vmem:[#allocation2 + $0x138] sm:$0xe0] %v958_v25 }
 0x239   :  { %v887_v40 = vpop.permute.xlu0 %886 }
 0x23a   :  { %v897_v14 = vsel %vm892_vm8, %v6136_v46, %v887_v40  ;;  %v1499_v1 = vld [vmem:[#allocation2 + $0x100] sm:$0xff] }
 0x23b   :  { %v762_v9 = vpop.permute.xlu2 %761  ;;  %911 = vst [vmem:[#allocation2 + $0x138] sm:$0x1c] %v897_v14  ;;  %v6279_v15 = vpop.permute.xlu1 %215 }
 0x23c   :  { %v225_v22 = vsel %vm221_vm15, %v6098_v49, %v6279_v15 }
 0x23d   :  { %238 = vst [vmem:[#allocation2 + $0x50] sm:$0xe] %v225_v22 }
 0x241   :  { %v6284_v53 = vpop.permute.xlu0 %150 }
 0x242   :  { %v160_v32 = vsel %vm156_vm3, %v6070_v3, %v6284_v53  ;;  %v1506_v31 = vld [vmem:[#allocation2 + $0x138] sm:$0xff] }
 0x243   :  { %v889_v23 = vpop.permute.xlu2 %888  ;;  %173 = vst [vmem:[#allocation2 + $0x18] sm:$0xc0] %v160_v32  ;;  %v1556_v46 = vpack.c.bf16 %v1506_v31, %v1499_v1  ;;  %v640_v18 = vpop.permute.xlu1 %639 }
 0x244   :  { %v898_v36 = vsel %vm892_vm8, %v887_v40, %v889_v23  ;;  %181 = vst [vmem:[#allocation2 + $0x50] sm:$0x1] %v160_v32 }
 0x245   :  { %912 = vst [vmem:[#allocation2 + $0x140] sm:$0x1c] %v898_v36  ;;  %1666 = vmatpush.bf16.msrb.mxu0 %v1556_v46 }
 0x249   :  { %v638_v4 = vpop.permute.xlu0 %637 }
 0x24a   :  { %v647_v49 = vsel %vm641_vm6, %v6212_v30, %v638_v4  ;;  %v648_v26 = vsel %vm641_vm6, %v638_v4, %v640_v18  ;;  %v1470_v28 = vld [vmem:[#allocation2 + $0x18] sm:$0xff]  ;;  %vm7786_vm6 = vcmask 769024  }
 0x24b   :  { %v952_v42 = vpop.permute.xlu2 %951  ;;  %661 = vst [vmem:[#allocation2 + $0xd0] sm:$0xc0] %v647_v49  ;;  %v1477_v3 = vld [vmem:[#allocation2 + $0x50] sm:$0xff] }
 0x24c   :  { %v760_v6 = vpop.permute.xlu1 %759  ;;  %668 = vst [vmem:[#allocation2 + $0x108] sm:$0x1] %v647_v49  ;;  %v1541_v35 = vpack.c.bf16 %v1477_v3, %v1470_v28 }
 0x24d   :  { %v769_v21 = vsel %vm763_vm7, %v758_v38, %v760_v6  ;;  %662 = vst.msk [vmem:[#allocation2 + $0xd8] sm:$0xc0] %vm176_vm4, %v648_v26  ;;  %v770_v0 = vsel %vm763_vm7, %v760_v6, %v762_v9  ;;  %vm7787_vm7 = vcmask 498688  }
 0x24e   :  { %669 = vst.msk [vmem:[#allocation2 + $0x110] sm:$0x1] %vm184_vm2, %v648_v26  ;;  %1655 = vmatpush.bf16.msra.mxu3 %v1541_v35  ;;  %vm7788_vm9 = vmmov %vm7787_vm7 }
 0x24f   :  { %783 = vst [vmem:[#allocation2 + $0x108] sm:$0x70] %v769_v21 }
 0x250   :  { %784 = vst.msk [vmem:[#allocation2 + $0x110] sm:$0x70] %vm292_vm12, %v770_v0 }
 0x251   :  { %v708_v30 = vpop.permute.xlu0 %707  ;;  %4103 = vmatmul.msk.bf16.vlgmr.msra.gmra.mxu3 %vm1580_vm11, %v6112_v20 }
 0x252   :  { %v716_v2 = vsel %vm709_vm5, %v706_v13, %v708_v30  ;;  %vm7789_vm5 = vcmask 1014791  }
 0x253   :  { %v6301_v55 = vpop.permute.xlu2 %459  ;;  %730 = vst.msk [vmem:[#allocation2 + $0x110] sm:$0xe] %vm241_vm13, %v716_v2 }
 0x254   :  { %v823_v17 = vpop.permute.xlu1 %822  ;;  %v470_v44 = vsel %vm7786_vm6, %v6206_v63, %v6301_v55  ;;  %vm7791_vm6 = vcmask 1014789  }
 0x255   :  { %484 = vst [vmem:[#allocation2 + $0x90] sm:$0xe0] %v470_v44 }
 0x259   :  { %v821_v59 = vpop.permute.xlu0 %820 }
 0x25a   :  { %v830_v5 = vsel %vm7787_vm7, %v6225_v58, %v821_v59  ;;  %v831_v62 = vsel %vm7788_vm9, %v821_v59, %v823_v17  ;;  %vm7792_vm7 = vcmask 1011714   ;;  %vm7793_vm9 = vcmask 777216  }
 0x25b   :  { %v330_v41 = vpop.permute.xlu2 %329  ;;  %844 = vst [vmem:[#allocation2 + $0x108] sm:$0x80] %v830_v5 }
 0x25c   :  { %v950_v57 = vpop.permute.xlu1 %949  ;;  %851 = vst [vmem:[#allocation2 + $0x140] sm:$0x3] %v830_v5 }
 0x25d   :  { %v959_v27 = vsel %vm953_vm10, %v948_v33, %v950_v57  ;;  %845 = vst.msk [vmem:[#allocation2 + $0x110] sm:$0x80] %vm7789_vm5, %v831_v62  ;;  %v960_v10 = vsel %vm953_vm10, %v950_v57, %v952_v42  ;;  %vm7794_vm10 = vcmask 785408   ;;  %v1618_v33 = vpop.f32.mrf.mxu0 }
 0x25e   :  { %852 = vst.msk [vmem:[#allocation2 + $0x148] sm:$0x3] %vm7790_vm14, %v831_v62  ;;  %vm7795_vm5 = vmmov %vm7794_vm10  ;;  %vm7797_vm14 = vcmask 760832  }
 0x25f   :  { %973 = vst [vmem:[#allocation2 + $0x140] sm:$0xe0] %v959_v27 }
 0x260   :  { %974 = vst.msk [vmem:[#allocation2 + $0x148] sm:$0xe0] %vm7791_vm6, %v960_v10  ;;  %vm7798_vm6 = vmmov %vm7797_vm14 }
 0x261   :  { %v891_v63 = vpop.permute.xlu0 %890 }
 0x262   :  { %v899_v58 = vsel %vm892_vm8, %v889_v23, %v891_v63  ;;  %v1500_v60 = vld [vmem:[#allocation2 + $0x108] sm:$0xff]  ;;  %vm7796_vm8 = vcmask 752640  }
 0x263   :  { %v402_v39 = vpop.permute.xlu2 %401  ;;  %913 = vst.msk [vmem:[#allocation2 + $0x148] sm:$0x1c] %vm7792_vm7, %v899_v58  ;;  %vm7799_vm7 = vmmov %vm7793_vm9 }
 0x264   :  { %v398_v16 = vpop.permute.xlu1 %397  ;;  %v1501_v45 = vld [vmem:[#allocation2 + $0x110] sm:$0xff] }
 0x265   :  { %v408_v38 = vsel %vm7793_vm9, %v6133_v29, %v398_v16  ;;  %vm7800_vm9 = vmmov %vm7799_vm7  ;;  %v1620_v22 = vpop.f32.mrf.mxu0 }
 0x266   :  { %422 = vst [vmem:[#allocation2 + $0x90] sm:$0x1c] %v408_v38  ;;  %v1507_v34 = vld [vmem:[#allocation2 + $0x140] sm:$0xff] }
 0x267   :  { %v1557_v56 = vpack.c.bf16 %v1507_v34, %v1500_v60 }
 0x269   :  { %v328_v51 = vpop.permute.xlu0 %327  ;;  %1679 = vmatpush.bf16.msrb.mxu1 %v1557_v56 }
 0x26a   :  { %v338_v8 = vsel %vm7794_vm10, %v6177_v19, %v328_v51  ;;  %v339_v37 = vsel %vm7795_vm5, %v328_v51, %v330_v41  ;;  %v1508_v13 = vld [vmem:[#allocation2 + $0x148] sm:$0xff]  ;;  %vm7801_vm10 = vcmask 1011714  }
 0x26b   :  { %v516_v11 = vpop.permute.xlu2 %515  ;;  %352 = vst [vmem:[#allocation2 + $0x58] sm:$0x80] %v338_v8  ;;  %v1558_v54 = vpack.c.bf16 %v1508_v13, %v1501_v45 }
 0x26c   :  { %v575_v7 = vpop.permute.xlu1 %574  ;;  %353 = vst [vmem:[#allocation2 + $0x60] sm:$0x80] %v339_v37 }
 0x26d   :  { %v585_v29 = vsel %vm7796_vm8, %v6159_v12, %v575_v7  ;;  %360 = vst [vmem:[#allocation2 + $0x90] sm:$0x3] %v338_v8  ;;  %1692 = vmatpush.bf16.msrb.mxu2 %v1558_v54  ;;  %vm7802_vm8 = vcmask 1014791  }
 0x26e   :  { %361 = vst [vmem:[#allocation2 + $0x98] sm:$0x3] %v339_v37 }
 0x26f   :  { %599 = vst [vmem:[#allocation2 + $0xc8] sm:$0x38] %v585_v29 }
 0x271   :  { %v514_v47 = vpop.permute.xlu0 %513 }
 0x272   :  { %v524_v19 = vsel %vm7797_vm14, %v6195_v43, %v514_v47  ;;  %v525_v48 = vsel %vm7798_vm6, %v514_v47, %v516_v11  ;;  %v1631_v25 = vpop.f32.mrf.mxu1  ;;  %vm7803_vm14 = vcmask 1008640   ;;  %vm7804_vm6 = vcmask 769024  }
 0x273   :  { %v579_v40 = vpop.permute.xlu2 %578  ;;  %538 = vst [vmem:[#allocation2 + $0xc8] sm:$0x7] %v524_v19 }
 0x274   :  { %v400_v14 = vpop.permute.xlu1 %399  ;;  %539 = vst [vmem:[#allocation2 + $0xd0] sm:$0x7] %v525_v48  ;;  %v1485_v31 = vld [vmem:[#allocation2 + $0x90] sm:$0xff] }
 0x275   :  { %v409_v9 = vsel %vm7799_vm7, %v398_v16, %v400_v14  ;;  %v410_v12 = vsel %vm7800_vm9, %v400_v14, %v402_v39  ;;  %vm7805_vm7 = vmmov %vm7804_vm6  ;;  %vm7806_vm9 = vcmask 752640  }
 0x276   :  { %423 = vst [vmem:[#allocation2 + $0x98] sm:$0x1c] %v409_v9 }
 0x277   :  { %425 = vst.msk [vmem:[#allocation2 + $0xa0] sm:$0x1c] %vm7801_vm10, %v410_v12  ;;  %vm7807_vm10 = vmmov %vm7806_vm9 }
 0x279   :  { %v332_v32 = vpop.permute.xlu0 %331 }
 0x27a   :  { %v340_v1 = vsel %vm7795_vm5, %v330_v41, %v332_v32  ;;  %v1492_v43 = vld [vmem:[#allocation2 + $0xc8] sm:$0xff]  ;;  %v1633_v23 = vpop.f32.mrf.mxu1  ;;  %vm7808_vm5 = vcmask 1014789  }
 0x27b   :  { %v6331_v46 = vpop.permute.xlu2 %217  ;;  %355 = vst.msk [vmem:[#allocation2 + $0x68] sm:$0x80] %vm7802_vm8, %v340_v1  ;;  %v1549_v18 = vpack.c.bf16 %v1492_v43, %v1485_v31  ;;  %v1644_v49 = vpop.f32.mrf.mxu2  ;;  %vm7809_vm8 = vcmask 1012739  }
 0x27c   :  { %v464_v36 = vpop.permute.xlu1 %463  ;;  %v226_v4 = vsel %vm221_vm15, %v6279_v15, %v6331_v46  ;;  %363 = vst.msk [vmem:[#allocation2 + $0xa0] sm:$0x3] %vm7803_vm14, %v340_v1  ;;  %vm7810_vm14 = vcmask 760832  }
 0x27d   :  { %239 = vst [vmem:[#allocation2 + $0x58] sm:$0xe] %v226_v4  ;;  %1667 = vmatpush.bf16.msrb.mxu0 %v1549_v18  ;;  %v4873_v18 = vld [vmem:[%s7639_s3 + $0x74] sm:$0xf0] }
 0x281   :  { %v462_v26 = vpop.permute.xlu0 %461 }
 0x282   :  { %v471_v28 = vsel %vm7804_vm6, %v6301_v55, %v462_v26  ;;  %v472_v3 = vsel %vm7805_vm7, %v462_v26, %v464_v36  ;;  %vm7811_vm6 = vcmask 1009664   ;;  %v4157_v36 = vld [vmem:[%s7639_s3 + $0x60] sm:$0xf] }
 0x283   :  { %v155_v42 = vpop.permute.xlu2 %154  ;;  %485 = vst [vmem:[#allocation2 + $0x98] sm:$0xe0] %v471_v28  ;;  %v1646_v21 = vpop.f32.mrf.mxu2  ;;  %v4149_v28 = vld [vmem:[%s7639_s3 + $0x50] sm:$0xf] }
 0x284   :  { %v577_v6 = vpop.permute.xlu1 %576  ;;  %177 = vst.msk [vmem:[#allocation2 + $0x30] sm:$0xc0] %vm176_vm4, %v155_v42  ;;  %vm7812_vm4 = vmmov %vm7809_vm8  ;;  %v4867_v21 = vld [vmem:[%s7639_s3 + $0x44] sm:$0xf0] }
 0x285   :  { %v586_v35 = vsel %vm7806_vm9, %v575_v7, %v577_v6  ;;  %185 = vst.msk [vmem:[#allocation2 + $0x68] sm:$0x1] %vm184_vm2, %v155_v42  ;;  %v587_v15 = vsel %vm7807_vm10, %v577_v6, %v579_v40 }
 0x286   :  { %487 = vst.msk [vmem:[#allocation2 + $0xa0] sm:$0xe0] %vm7808_vm5, %v472_v3  ;;  %vm2635_vm5 = vcmask 62464  }
 0x287   :  { %600 = vst [vmem:[#allocation2 + $0xd0] sm:$0x38] %v586_v35  ;;  %v4141_v35 = vld [vmem:[%s7639_s3 + $0x40] sm:$0xf] }
 0x288   :  { %601 = vst.msk [vmem:[#allocation2 + $0xd8] sm:$0x38] %vm7809_vm8, %v587_v15  ;;  %vm2728_vm8 = vcmask 908288  }
 0x289   :  { %v518_v0 = vpop.permute.xlu0 %517 }
 0x28a   :  { %v526_v30 = vsel %vm7810_vm14, %v516_v11, %v518_v0  ;;  %v1486_v41 = vld [vmem:[#allocation2 + $0x98] sm:$0xff]  ;;  %v4142_v0 = vor.u32 %v4867_v21, %v4141_v35  ;;  %vm2664_vm14 = vcmask 64516  }
 0x28b   :  { %v6348_v2 = vpop.permute.xlu2 %1577  ;;  %540 = vst.msk [vmem:[#allocation2 + $0xd8] sm:$0x7] %vm7811_vm6, %v526_v30  ;;  %v4205_v21 = vld [vmem:[%s7639_s3 + $0xc0] sm:$0xf]  ;;  %vm2837_vm6 = vcmask 678912  }
 0x28c   :  { %v153_v55 = vpop.permute.xlu1 %152  ;;  %v6352_v17 = vadd.f32 %v1631_v25, %v6348_v2  ;;  %v6355_v44 = vadd.f32 %v1618_v33, %v6348_v2  ;;  %v6358_v59 = vadd.f32 %v1644_v49, %v6348_v2  ;;  %v4871_v49 = vld [vmem:[%s7639_s3 + $0x64] sm:$0xf0] }
 0x28d   :  { %v161_v5 = vsel %vm156_vm3, %v6284_v53, %v153_v55  ;;  %v162_v62 = vsel %vm156_vm3, %v153_v55, %v155_v42  ;;  %v1487_v38 = vld [vmem:[#allocation2 + $0xa0] sm:$0xff]  ;;  %v4158_v26 = vor.u32 %v4871_v49, %v4157_v36  ;;  %v4869_v42 = vld [vmem:[%s7639_s3 + $0x54] sm:$0xf0] }
 0x28e   :  { %174 = vst [vmem:[#allocation2 + $0x20] sm:$0xc0] %v161_v5  ;;  %v1701_v57 = vmax.f32 %v6352_v17, 0.0  ;;  %v1700_v27 = vmax.f32 %v6355_v44, 0.0  ;;  %v1702_v10 = vmax.f32 %v6358_v59, 0.0  ;;  %v1493_v63 = vld [vmem:[#allocation2 + $0xd0] sm:$0xff]  ;;  %v4150_v3 = vor.u32 %v4869_v42, %v4149_v28 }
 0x28f   :  { %175 = vst [vmem:[#allocation2 + $0x28] sm:$0xc0] %v162_v62  ;;  %v1550_v58 = vpack.c.bf16 %v1493_v63, %v1486_v41  ;;  %v4133_v17 = vld [vmem:[%s7639_s3 + $0x30] sm:$0xf]  ;;  %v4865_v44 = vld [vmem:[%s7639_s3 + $0x34] sm:$0xf0] }
 0x290   :  { %182 = vst [vmem:[#allocation2 + $0x58] sm:$0x1] %v161_v5  ;;  %v5071_v39 = vpack.i.bf16 %v1701_v57, %v1700_v27  ;;  %1718 = vrot.lane.b32.xlu1 %v1702_v10, %s5173_s20  ;;  %v4293_v59 = vld [vmem:[%s7639_s3 + $0x170] sm:$0xf]  ;;  %v4903_v36 = vld [vmem:[%s7639_s3 + $0x164] sm:$0xf0] }
 0x291   :  { %183 = vst [vmem:[#allocation2 + $0x60] sm:$0x1] %v162_v62  ;;  %v96_v53 = vpop.permute.xlu0 %95  ;;  %1680 = vmatpush.bf16.msrb.mxu1 %v1550_v58  ;;  %v4134_v62 = vor.u32 %v4865_v44, %v4133_v17  ;;  %v4885_v28 = vld [vmem:[%s7639_s3 + $0xd4] sm:$0xf0]  ;;  %v4277_v42 = vld [vmem:[%s7639_s3 + $0x150] sm:$0xf] }
 0x292   :  { %5072 = vrot.lane.b32.xlu0 %v5071_v39, %s5173_s20  ;;  %v104_v16 = vsel %vm99_vm0, %v6244_v24, %v96_v53  ;;  %v1494_v60 = vld [vmem:[#allocation2 + $0xd8] sm:$0xff] }
 0x293   :  { %117 = vst [vmem:[#allocation2 + $0x20] sm:$0x38] %v104_v16  ;;  %v1551_v34 = vpack.c.bf16 %v1494_v60, %v1487_v38 }
 0x294   :  { %v98_v56 = vpop.permute.xlu1 %97 }
 0x295   :  { %v105_v51 = vsel %vm99_vm0, %v96_v53, %v98_v56  ;;  %120 = vst.msk [vmem:[#allocation2 + $0x30] sm:$0x38] %vm7812_vm4, %v98_v56  ;;  %1693 = vmatpush.bf16.msrb.mxu2 %v1551_v34  ;;  %vm2667_vm4 = vcmask 58368  }
 0x296   :  { %118 = vst [vmem:[#allocation2 + $0x28] sm:$0x38] %v105_v51 }
 0x299   :  { %v269_v8 = vpop.permute.xlu0 %268 }
 0x29a   :  { %v277_v37 = vsel %vm272_vm1, %v6262_v52, %v269_v8  ;;  %v1471_v54 = vld [vmem:[#allocation2 + $0x20] sm:$0xff] }
 0x29b   :  { %290 = vst [vmem:[#allocation2 + $0x58] sm:$0x70] %v277_v37  ;;  %v4117_v37 = vld [vmem:[%s7639_s3 + $0x10] sm:$0xf] }
 0x29c   :  { %v271_v45 = vpop.permute.xlu1 %270  ;;  %v1473_v52 = vld [vmem:[#allocation2 + $0x30] sm:$0xff] }
 0x29d   :  { %v278_v13 = vsel %vm272_vm1, %v269_v8, %v271_v45  ;;  %293 = vst.msk [vmem:[#allocation2 + $0x68] sm:$0x70] %vm292_vm12, %v271_v45  ;;  %v1472_v19 = vld [vmem:[#allocation2 + $0x28] sm:$0xff] }
 0x29e   :  { %291 = vst [vmem:[#allocation2 + $0x60] sm:$0x70] %v278_v13  ;;  %v4109_v13 = vld [vmem:[%s7639_s3] sm:$0xf] }
 0x2a1   :  { %v220_v24 = vpop.permute.xlu0 %219 }
 0x2a2   :  { %v227_v11 = vsel %vm221_vm15, %v6331_v46, %v220_v24  ;;  %242 = vst.msk [vmem:[#allocation2 + $0x68] sm:$0xe] %vm241_vm13, %v220_v24  ;;  %v1478_v7 = vld [vmem:[#allocation2 + $0x58] sm:$0xff]  ;;  %v4859_v24 = vld [vmem:[%s7639_s3 + $0x4] sm:$0xf0]  ;;  %vm2442_vm13 = vcmask 744448  }
 0x2a3   :  { %240 = vst [vmem:[#allocation2 + $0x60] sm:$0xe] %v227_v11  ;;  %v1542_v29 = vpack.c.bf16 %v1478_v7, %v1471_v54  ;;  %v4110_v11 = vor.u32 %v4859_v24, %v4109_v13 }
 0x2a5   :  { %1668 = vmatpush.bf16.msrb.mxu0 %v1542_v29 }
 0x2a8   :  { %4104 = vmatmul.msk.bf16.vlgmr.msrb.gmra.mxu0 %vm1580_vm11, %v6112_v20 }
 0x2a9   :  { %v1480_v33 = vld [vmem:[#allocation2 + $0x68] sm:$0xff] }
 0x2aa   :  { %v1544_v47 = vpack.c.bf16 %v1480_v33, %v1473_v52  ;;  %v1479_v48 = vld [vmem:[#allocation2 + $0x60] sm:$0xff] }
 0x2ab   :  { %v1543_v25 = vpack.c.bf16 %v1479_v48, %v1472_v19 }
 0x2ac   :  { %1694 = vmatpush.bf16.msrb.mxu2 %v1544_v47 }
 0x2ad   :  { %1681 = vmatpush.bf16.msrb.mxu1 %v1543_v25 }
 0x2af   :  { %4106 = vmatmul.msk.bf16.vlgmr.msrb.gmra.mxu2 %vm1580_vm11, %v6112_v20 }
 0x2b0   :  { %4105 = vmatmul.msk.bf16.vlgmr.msrb.gmra.mxu1 %vm1580_vm11, %v6112_v20  ;;  %v4165_v20 = vld [vmem:[%s7639_s3 + $0x70] sm:$0xf]  ;;  %vm7813_vm11 = vcmask 785408  }
 0x2b1   :  { %v4166_v4 = vor.u32 %v4873_v18, %v4165_v20  ;;  %v4285_v18 = vld [vmem:[%s7639_s3 + $0x160] sm:$0xf]  ;;  %vm7814_vm12 = vmmov %vm7813_vm11 }
 0x2b2   :  { %v4286_v49 = vor.u32 %v4903_v36, %v4285_v18  ;;  %v4413_v36 = vld [vmem:[%s7639_s3 + $0x260] sm:$0xf]  ;;  %vm7815_vm2 = vmmov %vm7813_vm11 }
 0x2b3   :  { %2452 = vmatpush.bf16.msrb.mxu3 %v4166_v4  ;;  %vm7816_vm7 = vmmov %vm7815_vm2 }
 0x2b4   :  { %vm7817_vm9 = vmmov %vm7815_vm2 }
 0x2b5   :  { %vm7818_vm10 = vmmov %vm7815_vm2 }
 0x2b7   :  { %2453 = vmatpush.bf16.msrb.mxu3 %v4158_v26  ;;  %v4213_v26 = vld [vmem:[%s7639_s3 + $0xd0] sm:$0xf] }
 0x2bb   :  { %2454 = vmatpush.bf16.msrb.mxu3 %v4150_v3  ;;  %v4901_v3 = vld [vmem:[%s7639_s3 + $0x154] sm:$0xf0] }
 0x2bc   :  { %v4278_v35 = vor.u32 %v4901_v3, %v4277_v42  ;;  %v4917_v42 = vld [vmem:[%s7639_s3 + $0x1d4] sm:$0xf0]  ;;  %v4533_v3 = vld [vmem:[%s7639_s3 + $0x350] sm:$0xf] }
 0x2bf   :  { %2455 = vmatpush.bf16.msrb.mxu3 %v4142_v0  ;;  %v4269_v0 = vld [vmem:[%s7639_s3 + $0x140] sm:$0xf] }
 0x2c3   :  { %2456 = vmatpush.bf16.msrb.mxu3 %v4134_v62  ;;  %v4197_v62 = vld [vmem:[%s7639_s3 + $0xb0] sm:$0xf] }
 0x2d4   :  { %v1657_v40 = vpop.f32.mrf.mxu3 }
 0x2d5   :  { %v1658_v6 = vadd.f32 %v1657_v40, %v6348_v2 }
 0x2d7   :  { %v1703_v30 = vmax.f32 %v1658_v6, 0.0  ;;  %v4214_v6 = vor.u32 %v4885_v28, %v4213_v26  ;;  %v4341_v26 = vld [vmem:[%s7639_s3 + $0x1d0] sm:$0xf] }
 0x2dc   :  { %v1659_v14 = vpop.f32.mrf.mxu3 }
 0x302   :  { %v6387_v12 = vpop.permute.xlu1 %1718 }
 0x304   :  { %v5073_v9 = vpop.permute.xlu0 %5072 }
 0x305   :  { %v5075_v22 = vunpack.i.h.bf16 %v5073_v9  ;;  %v5074_v32 = vunpack.i.l.bf16 %v5073_v9 }
 0x307   :  { %v1728_v1 = vsel %vm99_vm0, %v5074_v32, %v5075_v22  ;;  %v1729_v31 = vsel %vm99_vm0, %v5075_v22, %v6387_v12 }
 0x308   :  { %v1741_v43 = vmax.f32 %v1700_v27, %v1728_v1  ;;  %v6392_v23 = vmax.f32 %v1701_v57, %v1729_v31  ;;  %v4125_v57 = vld [vmem:[%s7639_s3 + $0x20] sm:$0xf]  ;;  %v4863_v27 = vld [vmem:[%s7639_s3 + $0x24] sm:$0xf0]  ;;  %v4229_v1 = vld [vmem:[%s7639_s3 + $0xf0] sm:$0xf] }
 0x309   :  { %v4126_v39 = vor.u32 %v4863_v27, %v4125_v57  ;;  %v4905_v31 = vld [vmem:[%s7639_s3 + $0x174] sm:$0xf0]  ;;  %v4261_v57 = vld [vmem:[%s7639_s3 + $0x130] sm:$0xf] }
 0x30a   :  { %v5086_v46 = vpack.i.bf16 %v6392_v23, %v1741_v43  ;;  %v4294_v20 = vor.u32 %v4905_v31, %v4293_v59  ;;  %v4897_v27 = vld [vmem:[%s7639_s3 + $0x134] sm:$0xf0] }
 0x30b   :  { %2457 = vmatpush.bf16.msrb.mxu3 %v4126_v39  ;;  %v4189_v39 = vld [vmem:[%s7639_s3 + $0xa0] sm:$0xf]  ;;  %v4921_v59 = vld [vmem:[%s7639_s3 + $0x1f4] sm:$0xf0] }
 0x30c   :  { %5087 = vrot.lane.b32.xlu1 %v5086_v46, %s5158_s28  ;;  %v4887_v46 = vld [vmem:[%s7639_s3 + $0xe4] sm:$0xf0]  ;;  %2478 = vmatpush.bf16.msra.mxu1 %v4294_v20 }
 0x30d   :  { %v4919_v20 = vld [vmem:[%s7639_s3 + $0x1e4] sm:$0xf0] }
 0x310   :  { %2479 = vmatpush.bf16.msra.mxu1 %v4286_v49 }
 0x314   :  { %2480 = vmatpush.bf16.msra.mxu1 %v4278_v35  ;;  %v4405_v35 = vld [vmem:[%s7639_s3 + $0x250] sm:$0xf] }
 0x325   :  { %v1670_v15 = vpop.f32.mrf.mxu0 }
 0x326   :  { %v6422_v55 = vadd.f32 %v1670_v15, %v6348_v2  ;;  %v4883_v15 = vld [vmem:[%s7639_s3 + $0xc4] sm:$0xf0] }
 0x327   :  { %v4206_v17 = vor.u32 %v4883_v15, %v4205_v21  ;;  %v4933_v21 = vld [vmem:[%s7639_s3 + $0x254] sm:$0xf0] }
 0x328   :  { %v1704_v5 = vmax.f32 %v6422_v55, 0.0  ;;  %v4877_v55 = vld [vmem:[%s7639_s3 + $0x94] sm:$0xf0] }
 0x32a   :  { %v5076_v41 = vpack.i.bf16 %v1704_v5, %v1703_v30 }
 0x32c   :  { %5077 = vrot.lane.b32.xlu2 %v5076_v41, %s5173_s20  ;;  %v4881_v41 = vld [vmem:[%s7639_s3 + $0xb4] sm:$0xf0] }
 0x32d   :  { %v1683_v63 = vpop.f32.mrf.mxu1  ;;  %v1672_v58 = vpop.f32.mrf.mxu0 }
 0x32e   :  { %v6441_v53 = vadd.f32 %v1683_v63, %v6348_v2  ;;  %v4198_v63 = vor.u32 %v4881_v41, %v4197_v62  ;;  %v4262_v58 = vor.u32 %v4897_v27, %v4261_v57  ;;  %v4963_v57 = vld [vmem:[%s7639_s3 + $0x344] sm:$0xf0]  ;;  %v4406_v27 = vor.u32 %v4933_v21, %v4405_v35  ;;  %v4501_v35 = vld [vmem:[%s7639_s3 + $0x310] sm:$0xf] }
 0x330   :  { %v1705_v60 = vmax.f32 %v6441_v53, 0.0 }
 0x332   :  { %v1696_v16 = vpop.f32.mrf.mxu2 }
 0x333   :  { %v6444_v38 = vadd.f32 %v1696_v16, %v6348_v2  ;;  %v4861_v2 = vld [vmem:[%s7639_s3 + $0x14] sm:$0xf0]  ;;  %v4879_v16 = vld [vmem:[%s7639_s3 + $0xa4] sm:$0xf0] }
 0x334   :  { %v4118_v45 = vor.u32 %v4861_v2, %v4117_v37 }
 0x335   :  { %v1706_v34 = vmax.f32 %v6444_v38, 0.0  ;;  %v1685_v56 = vpop.f32.mrf.mxu1 }
 0x336   :  { %2458 = vmatpush.bf16.msrb.mxu3 %v4118_v45  ;;  %v4253_v56 = vld [vmem:[%s7639_s3 + $0x120] sm:$0xf] }
 0x337   :  { %v5081_v51 = vpack.i.bf16 %v1706_v34, %v1705_v60 }
 0x339   :  { %5082 = vrot.lane.b32.xlu0 %v5081_v51, %s5173_s20  ;;  %v4895_v51 = vld [vmem:[%s7639_s3 + $0x124] sm:$0xf0] }
 0x33a   :  { %v1698_v8 = vpop.f32.mrf.mxu2  ;;  %2459 = vmatpush.bf16.msrb.mxu3 %v4110_v11  ;;  %v4254_v37 = vor.u32 %v4895_v51, %v4253_v56  ;;  %v4931_v56 = vld [vmem:[%s7639_s3 + $0x244] sm:$0xf0] }
 0x33b   :  { %v4190_v8 = vor.u32 %v4879_v16, %v4189_v39  ;;  %v4477_v39 = vld [vmem:[%s7639_s3 + $0x2e0] sm:$0xf] }
 0x33c   :  { %v4397_v16 = vld [vmem:[%s7639_s3 + $0x240] sm:$0xf] }
 0x37e   :  { %v6465_v54 = vpop.permute.xlu1 %5087 }
 0x37f   :  { %v5090_v7 = vunpack.i.h.bf16 %v6465_v54  ;;  %v5089_v29 = vunpack.i.l.bf16 %v6465_v54  ;;  %v4309_v54 = vld [vmem:[%s7639_s3 + $0x190] sm:$0xf] }
 0x381   :  { %v1769_v52 = vsel %vm7813_vm11, %v5089_v29, %v5090_v7  ;;  %vm2649_vm11 = vcmask 64518  }
 0x382   :  { %v1782_v33 = vmax.f32 %v1741_v43, %v1769_v52  ;;  %v4221_v43 = vld [vmem:[%s7639_s3 + $0xe0] sm:$0xf] }
 0x383   :  { %v4222_v4 = vor.u32 %v4887_v46, %v4221_v43  ;;  %v4937_v43 = vld [vmem:[%s7639_s3 + $0x274] sm:$0xf0]  ;;  %v4349_v46 = vld [vmem:[%s7639_s3 + $0x1e0] sm:$0xf] }
 0x384   :  { %v6472_v47 = vpack.c.bf16 %v1782_v33, %v1782_v33  ;;  %v4350_v49 = vor.u32 %v4919_v20, %v4349_v46 }
 0x386   :  { %2460 = vmatmul.bf16.vlgmr.msrb.gmra.mxu3 %v6472_v47  ;;  %v6475_v19 = vpop.permute.xlu2 %5077 }
 0x387   :  { %v5080_v48 = vunpack.i.h.bf16 %v6475_v19  ;;  %v5079_v25 = vunpack.i.l.bf16 %v6475_v19 }
 0x389   :  { %v1730_v40 = vsel %vm99_vm0, %v6387_v12, %v5079_v25  ;;  %v1731_v14 = vsel %vm99_vm0, %v5079_v25, %v5080_v48  ;;  %v4889_v12 = vld [vmem:[%s7639_s3 + $0xf4] sm:$0xf0]  ;;  %v4875_v25 = vld [vmem:[%s7639_s3 + $0x84] sm:$0xf0] }
 0x38a   :  { %v6484_v9 = vmax.f32 %v1702_v10, %v1730_v40  ;;  %v6486_v22 = vmax.f32 %v1703_v30, %v1731_v14  ;;  %v4230_v10 = vor.u32 %v4889_v12, %v4229_v1  ;;  %v4899_v30 = vld [vmem:[%s7639_s3 + $0x144] sm:$0xf0]  ;;  %v4237_v40 = vld [vmem:[%s7639_s3 + $0x100] sm:$0xf]  ;;  %v4357_v12 = vld [vmem:[%s7639_s3 + $0x1f0] sm:$0xf] }
 0x38b   :  { %v4270_v44 = vor.u32 %v4899_v30, %v4269_v0  ;;  %v4358_v31 = vor.u32 %v4921_v59, %v4357_v12  ;;  %v4485_v0 = vld [vmem:[%s7639_s3 + $0x2f0] sm:$0xf]  ;;  %v4953_v30 = vld [vmem:[%s7639_s3 + $0x2f4] sm:$0xf0]  ;;  %v4927_v12 = vld [vmem:[%s7639_s3 + $0x224] sm:$0xf0] }
 0x38c   :  { %v5091_v32 = vpack.i.bf16 %v6486_v22, %v6484_v9  ;;  %2465 = vmatpush.bf16.msra.mxu0 %v4230_v10  ;;  %v4421_v10 = vld [vmem:[%s7639_s3 + $0x270] sm:$0xf]  ;;  %v4486_v41 = vor.u32 %v4953_v30, %v4485_v0  ;;  %v4957_v30 = vld [vmem:[%s7639_s3 + $0x314] sm:$0xf0] }
 0x38d   :  { %2481 = vmatpush.bf16.msra.mxu1 %v4270_v44  ;;  %v4422_v18 = vor.u32 %v4937_v43, %v4421_v10  ;;  %2491 = vmatpush.bf16.msra.mxu2 %v4358_v31  ;;  %v4342_v44 = vor.u32 %v4917_v42, %v4341_v26  ;;  %v4469_v59 = vld [vmem:[%s7639_s3 + $0x2d0] sm:$0xf]  ;;  %v4949_v10 = vld [vmem:[%s7639_s3 + $0x2d4] sm:$0xf0] }
 0x38e   :  { %5092 = vrot.lane.b32.xlu2 %v5091_v32, %s5158_s28  ;;  %v4891_v32 = vld [vmem:[%s7639_s3 + $0x104] sm:$0xf0]  ;;  %v4470_v20 = vor.u32 %v4949_v10, %v4469_v59  ;;  %v4909_v26 = vld [vmem:[%s7639_s3 + $0x194] sm:$0xf0]  ;;  %v4287_v10 = vld [vmem:[%s7639_s3 + $0x168] sm:$0xf0] }
 0x38f   :  { %v4238_v1 = vor.u32 %v4891_v32, %v4237_v40  ;;  %2504 = vmatpush.bf16.msra.mxu3 %v4422_v18  ;;  %v4317_v40 = vld [vmem:[%s7639_s3 + $0x1a0] sm:$0xf]  ;;  %v4925_v42 = vld [vmem:[%s7639_s3 + $0x214] sm:$0xf0] }
 0x390   :  { %2466 = vmatpush.bf16.msra.mxu0 %v4222_v4  ;;  %v4935_v4 = vld [vmem:[%s7639_s3 + $0x264] sm:$0xf0]  ;;  %v4381_v32 = vld [vmem:[%s7639_s3 + $0x220] sm:$0xf] }
 0x391   :  { %2482 = vmatpush.bf16.msra.mxu1 %v4262_v58  ;;  %v4414_v28 = vor.u32 %v4935_v4, %v4413_v36  ;;  %2492 = vmatpush.bf16.msra.mxu2 %v4350_v49  ;;  %v4915_v58 = vld [vmem:[%s7639_s3 + $0x1c4] sm:$0xf0]  ;;  %v4382_v46 = vor.u32 %v4927_v12, %v4381_v32  ;;  %v4509_v18 = vld [vmem:[%s7639_s3 + $0x320] sm:$0xf]  ;;  %v4886_v32 = vld [vmem:[%s7639_s3 + $0xe4] sm:$0xf] }
 0x392   :  { %v4959_v36 = vld [vmem:[%s7639_s3 + $0x324] sm:$0xf0]  ;;  %v4902_v12 = vld [vmem:[%s7639_s3 + $0x164] sm:$0xf] }
 0x393   :  { %2505 = vmatpush.bf16.msra.mxu3 %v4414_v28  ;;  %v4510_v49 = vor.u32 %v4959_v36, %v4509_v18  ;;  %v4373_v28 = vld [vmem:[%s7639_s3 + $0x210] sm:$0xf]  ;;  %v4151_v18 = vld [vmem:[%s7639_s3 + $0x58] sm:$0xf0]  ;;  %v4884_v36 = vld [vmem:[%s7639_s3 + $0xd4] sm:$0xf] }
 0x394   :  { %2467 = vmatpush.bf16.msra.mxu0 %v4214_v6  ;;  %v4965_v6 = vld [vmem:[%s7639_s3 + $0x354] sm:$0x30] }
 0x395   :  { %2483 = vmatpush.bf16.msra.mxu1 %v4254_v37  ;;  %v4534_v15 = vor.u32 %v4965_v6, %v4533_v3  ;;  %2493 = vmatpush.bf16.msra.mxu2 %v4342_v44  ;;  %v4310_v3 = vor.u32 %v4909_v26, %v4309_v54  ;;  %v4947_v6 = vld [vmem:[%s7639_s3 + $0x2c4] sm:$0xf0]  ;;  %v4301_v44 = vld [vmem:[%s7639_s3 + $0x180] sm:$0xf]  ;;  %v4279_v26 = vld [vmem:[%s7639_s3 + $0x158] sm:$0xf0] }
 0x397   :  { %v2447_v62 = vand.u32 %v4534_v15, %v5932_v50  ;;  %2506 = vmatpush.bf16.msra.mxu3 %v4406_v27  ;;  %v4923_v27 = vld [vmem:[%s7639_s3 + $0x204] sm:$0xf0] }
 0x398   :  { %2468 = vmatpush.bf16.msra.mxu0 %v4206_v17  ;;  %v4525_v17 = vld [vmem:[%s7639_s3 + $0x340] sm:$0xf] }
 0x399   :  { %v4526_v51 = vor.u32 %v4963_v57, %v4525_v17  ;;  %v4502_v17 = vor.u32 %v4957_v30, %v4501_v35  ;;  %v4882_v35 = vld [vmem:[%s7639_s3 + $0xc4] sm:$0xf]  ;;  %v4920_v30 = vld [vmem:[%s7639_s3 + $0x1f4] sm:$0xf] }
 0x39c   :  { %2469 = vmatpush.bf16.msra.mxu0 %v4198_v63  ;;  %v4333_v63 = vld [vmem:[%s7639_s3 + $0x1c0] sm:$0xf] }
 0x3a0   :  { %2470 = vmatpush.bf16.msra.mxu0 %v4190_v8  ;;  %v4951_v8 = vld [vmem:[%s7639_s3 + $0x2e4] sm:$0xf0] }
 0x3a1   :  { %v4478_v37 = vor.u32 %v4951_v8, %v4477_v39  ;;  %v4888_v8 = vld [vmem:[%s7639_s3 + $0xf4] sm:$0xf] }
 0x3ab   :  { %v5083_v2 = vpop.permute.xlu0 %5082 }
 0x3ac   :  { %v5085_v45 = vunpack.i.h.bf16 %v5083_v2  ;;  %v5084_v13 = vunpack.i.l.bf16 %v5083_v2  ;;  %v4517_v2 = vld [vmem:[%s7639_s3 + $0x330] sm:$0xf] }
 0x3ae   :  { %v6565_v24 = vmax.f32 %v1706_v34, %v5085_v45  ;;  %v1732_v11 = vsel %vm99_vm0, %v5080_v48, %v5084_v13  ;;  %v1733_v29 = vsel %vm99_vm0, %v5084_v13, %v5085_v45  ;;  %v4181_v34 = vld [vmem:[%s7639_s3 + $0x90] sm:$0xf]  ;;  %v4173_v48 = vld [vmem:[%s7639_s3 + $0x80] sm:$0xf]  ;;  %v4961_v45 = vld [vmem:[%s7639_s3 + $0x334] sm:$0xf0]  ;;  %v4334_v13 = vor.u32 %v4915_v58, %v4333_v63 }
 0x3af   :  { %v6571_v52 = vmax.f32 %v1704_v5, %v1732_v11  ;;  %v6575_v33 = vmax.f32 %v1705_v60, %v1733_v29  ;;  %v4245_v5 = vld [vmem:[%s7639_s3 + $0x110] sm:$0xf]  ;;  %v4182_v53 = vor.u32 %v4877_v55, %v4181_v34  ;;  %v4893_v60 = vld [vmem:[%s7639_s3 + $0x114] sm:$0xf0]  ;;  %v4174_v14 = vor.u32 %v4875_v25, %v4173_v48 }
 0x3b0   :  { %1767 = vrot.lane.b32.xlu1 %v6565_v24, %s5158_s28  ;;  %v4246_v19 = vor.u32 %v4893_v60, %v4245_v5  ;;  %v4398_v11 = vor.u32 %v4931_v56, %v4397_v16  ;;  %v4325_v29 = vld [vmem:[%s7639_s3 + $0x1b0] sm:$0xf]  ;;  %v4929_v55 = vld [vmem:[%s7639_s3 + $0x234] sm:$0xf0]  ;;  %v4518_v5 = vor.u32 %v4961_v45, %v4517_v2  ;;  %2494 = vmatpush.bf16.msra.mxu2 %v4334_v13  ;;  %v4872_v56 = vld [vmem:[%s7639_s3 + $0x74] sm:$0xf] }
 0x3b1   :  { %v5096_v38 = vpack.i.bf16 %v6575_v33, %v6571_v52  ;;  %2471 = vmatpush.bf16.msra.mxu0 %v4182_v53  ;;  %v4389_v34 = vld [vmem:[%s7639_s3 + $0x230] sm:$0xf]  ;;  %v4945_v58 = vld [vmem:[%s7639_s3 + $0x2b4] sm:$0xf0]  ;;  %v4231_v2 = vld [vmem:[%s7639_s3 + $0xf8] sm:$0xf0] }
 0x3b2   :  { %2484 = vmatpush.bf16.msra.mxu1 %v4246_v19  ;;  %2507 = vmatpush.bf16.msra.mxu3 %v4398_v11  ;;  %v4390_v60 = vor.u32 %v4929_v55, %v4389_v34  ;;  %v4453_v63 = vld [vmem:[%s7639_s3 + $0x2b0] sm:$0xf]  ;;  %v4493_v45 = vld [vmem:[%s7639_s3 + $0x300] sm:$0xf]  ;;  %v4955_v13 = vld [vmem:[%s7639_s3 + $0x304] sm:$0xf0]  ;;  %v4234_v11 = vor.u32 %v4888_v8, %v4231_v2 }
 0x3b3   :  { %5097 = vrot.lane.b32.xlu0 %v5096_v38, %s5158_s28  ;;  %v4913_v38 = vld [vmem:[%s7639_s3 + $0x1b4] sm:$0xf0]  ;;  %v4454_v16 = vor.u32 %v4945_v58, %v4453_v63  ;;  %v4295_v34 = vld [vmem:[%s7639_s3 + $0x178] sm:$0xf0]  ;;  %v4445_v55 = vld [vmem:[%s7639_s3 + $0x2a0] sm:$0xf] }
 0x3b4   :  { %v4326_v53 = vor.u32 %v4913_v38, %v4325_v29  ;;  %v4494_v29 = vor.u32 %v4955_v13, %v4493_v45  ;;  %v4904_v38 = vld [vmem:[%s7639_s3 + $0x174] sm:$0xf]  ;;  %v4918_v2 = vld [vmem:[%s7639_s3 + $0x1e4] sm:$0xf]  ;;  %v4351_v45 = vld [vmem:[%s7639_s3 + $0x1e8] sm:$0xf0] }
 0x3b5   :  { %2472 = vmatpush.bf16.msra.mxu0 %v4174_v14  ;;  %v4911_v14 = vld [vmem:[%s7639_s3 + $0x1a4] sm:$0xf0]  ;;  %v4864_v58 = vld [vmem:[%s7639_s3 + $0x34] sm:$0xf]  ;;  %v4354_v13 = vor.u32 %v4918_v2, %v4351_v45  ;;  %v4535_v45 = vld [vmem:[%s7639_s3 + $0x358] sm:$0x30] }
 0x3b6   :  { %2485 = vmatpush.bf16.msra.mxu1 %v4238_v1  ;;  %2495 = vmatpush.bf16.msra.mxu2 %v4326_v53  ;;  %v4318_v1 = vor.u32 %v4911_v14, %v4317_v40  ;;  %v4943_v53 = vld [vmem:[%s7639_s3 + $0x2a4] sm:$0xf0]  ;;  %v4964_v2 = vld [vmem:[%s7639_s3 + $0x354] sm:$0xf] }
 0x3b7   :  { %2508 = vmatpush.bf16.msra.mxu3 %v4390_v60  ;;  %v4870_v60 = vld [vmem:[%s7639_s3 + $0x64] sm:$0xf]  ;;  %v4446_v40 = vor.u32 %v4943_v53, %v4445_v55  ;;  %v4127_v55 = vld [vmem:[%s7639_s3 + $0x28] sm:$0xf0] }
 0x3b8   :  { %v4878_v53 = vld [vmem:[%s7639_s3 + $0xa4] sm:$0xf] }
 0x3b9   :  { %2517 = vmatpush.bf16.msrb.mxu0 %v4486_v41  ;;  %v4365_v41 = vld [vmem:[%s7639_s3 + $0x200] sm:$0xf] }
 0x3ba   :  { %2532 = vmatpush.bf16.msrb.mxu1 %v2447_v62  ;;  %2496 = vmatpush.bf16.msra.mxu2 %v4318_v1  ;;  %v4907_v62 = vld [vmem:[%s7639_s3 + $0x184] sm:$0xf0]  ;;  %v4366_v39 = vor.u32 %v4923_v27, %v4365_v41  ;;  %v4223_v1 = vld [vmem:[%s7639_s3 + $0xe8] sm:$0xf0] }
 0x3bb   :  { %2509 = vmatpush.bf16.msra.mxu3 %v4382_v46  ;;  %v4302_v57 = vor.u32 %v4907_v62, %v4301_v44  ;;  %v4226_v59 = vor.u32 %v4886_v32, %v4223_v1  ;;  %v4290_v46 = vor.u32 %v4902_v12, %v4287_v10  ;;  %v4898_v44 = vld [vmem:[%s7639_s3 + $0x144] sm:$0xf]  ;;  %v4255_v12 = vld [vmem:[%s7639_s3 + $0x128] sm:$0xf0] }
 0x3bc   :  { %v4894_v1 = vld [vmem:[%s7639_s3 + $0x124] sm:$0xf] }
 0x3bd   :  { %2518 = vmatpush.bf16.msrb.mxu0 %v4478_v37  ;;  %v4258_v10 = vor.u32 %v4894_v1, %v4255_v12  ;;  %v4952_v1 = vld [vmem:[%s7639_s3 + $0x2f4] sm:$0xf]  ;;  %v4487_v12 = vld [vmem:[%s7639_s3 + $0x2f8] sm:$0xf0] }
 0x3be   :  { %2533 = vmatpush.bf16.msrb.mxu1 %v4526_v51  ;;  %2497 = vmatpush.bf16.msra.mxu2 %v4310_v3  ;;  %v4167_v51 = vld [vmem:[%s7639_s3 + $0x78] sm:$0xf0]  ;;  %v4939_v3 = vld [vmem:[%s7639_s3 + $0x284] sm:$0xf0] }
 0x3bf   :  { %v4170_v37 = vor.u32 %v4872_v56, %v4167_v51  ;;  %v4880_v56 = vld [vmem:[%s7639_s3 + $0xb4] sm:$0xf]  ;;  %v4199_v51 = vld [vmem:[%s7639_s3 + $0xb8] sm:$0xf0] }
 0x3c1   :  { %2519 = vmatpush.bf16.msrb.mxu0 %v4470_v20  ;;  %v4868_v20 = vld [vmem:[%s7639_s3 + $0x54] sm:$0xf] }
 0x3c2   :  { %2534 = vmatpush.bf16.msrb.mxu1 %v4518_v5  ;;  %2498 = vmatpush.bf16.msra.mxu2 %v4302_v57  ;;  %v4298_v5 = vor.u32 %v4904_v38, %v4295_v34  ;;  %v4271_v57 = vld [vmem:[%s7639_s3 + $0x148] sm:$0xf0]  ;;  %v4862_v34 = vld [vmem:[%s7639_s3 + $0x24] sm:$0xf] }
 0x3c6   :  { %2535 = vmatpush.bf16.msrb.mxu1 %v4510_v49  ;;  %2543 = vmatpush.bf16.msrb.mxu2 %v4170_v37  ;;  %v4900_v49 = vld [vmem:[%s7639_s3 + $0x154] sm:$0xf]  ;;  %v4202_v37 = vor.u32 %v4880_v56, %v4199_v51  ;;  %v4906_v51 = vld [vmem:[%s7639_s3 + $0x184] sm:$0xf] }
 0x3ca   :  { %2536 = vmatpush.bf16.msrb.mxu1 %v4502_v17  ;;  %v4359_v17 = vld [vmem:[%s7639_s3 + $0x1f8] sm:$0xf0] }
 0x3cb   :  { %v4362_v63 = vor.u32 %v4920_v30, %v4359_v17 }
 0x3ce   :  { %2537 = vmatpush.bf16.msrb.mxu1 %v4494_v29  ;;  %v4263_v29 = vld [vmem:[%s7639_s3 + $0x138] sm:$0xf0] }
 0x3e8   :  { %v6697_v19 = vpop.permute.xlu2 %5092 }
 0x3e9   :  { %v5095_v48 = vunpack.i.h.bf16 %v6697_v19  ;;  %v5094_v25 = vunpack.i.l.bf16 %v6697_v19 }
 0x3eb   :  { %v1770_v31 = vsel %vm7814_vm12, %v5090_v7, %v5094_v25  ;;  %v1771_v43 = vsel %vm7815_vm2, %v5094_v25, %v5095_v48  ;;  %v4159_v25 = vld [vmem:[%s7639_s3 + $0x68] sm:$0xf0]  ;;  %vm2859_vm12 = vcmask 588800   ;;  %vm2652_vm2 = vcmask 60416  }
 0x3ec   :  { %v1783_v7 = vmax.f32 %v6392_v23, %v1770_v31  ;;  %v1784_v4 = vmax.f32 %v6484_v9, %v1771_v43  ;;  %v4374_v23 = vor.u32 %v4925_v42, %v4373_v28  ;;  %v4461_v9 = vld [vmem:[%s7639_s3 + $0x2c0] sm:$0xf]  ;;  %v4162_v14 = vor.u32 %v4870_v60, %v4159_v25  ;;  %v4437_v31 = vld [vmem:[%s7639_s3 + $0x290] sm:$0xf]  ;;  %v4941_v43 = vld [vmem:[%s7639_s3 + $0x294] sm:$0xf0] }
 0x3ed   :  { %v4462_v0 = vor.u32 %v4947_v6, %v4461_v9  ;;  %v4438_v54 = vor.u32 %v4941_v43, %v4437_v31  ;;  %v4429_v42 = vld [vmem:[%s7639_s3 + $0x280] sm:$0xf]  ;;  %v4282_v9 = vor.u32 %v4900_v49, %v4279_v26  ;;  %v4143_v6 = vld [vmem:[%s7639_s3 + $0x48] sm:$0xf0]  ;;  %v4860_v31 = vld [vmem:[%s7639_s3 + $0x14] sm:$0xf] }
 0x3ee   :  { %v6754_v21 = vpack.c.bf16 %v1783_v7, %v1783_v7  ;;  %v6756_v15 = vpack.c.bf16 %v1784_v4, %v1784_v4  ;;  %2510 = vmatpush.bf16.msra.mxu3 %v4374_v23  ;;  %2544 = vmatpush.bf16.msrb.mxu2 %v4162_v14  ;;  %v4154_v7 = vor.u32 %v4868_v20, %v4151_v18  ;;  %v4215_v4 = vld [vmem:[%s7639_s3 + $0xd8] sm:$0xf0]  ;;  %v4866_v23 = vld [vmem:[%s7639_s3 + $0x44] sm:$0xf]  ;;  %v4191_v60 = vld [vmem:[%s7639_s3 + $0xa8] sm:$0xf0] }
 0x3ef   :  { %2520 = vmatpush.bf16.msrb.mxu0 %v4462_v0  ;;  %v4218_v28 = vor.u32 %v4884_v36, %v4215_v4  ;;  %v4207_v0 = vld [vmem:[%s7639_s3 + $0xc8] sm:$0xf0]  ;;  %v4430_v62 = vor.u32 %v4939_v3, %v4429_v42  ;;  %v4146_v41 = vor.u32 %v4866_v23, %v4143_v6  ;;  %v4194_v25 = vor.u32 %v4878_v53, %v4191_v60  ;;  %v4343_v14 = vld [vmem:[%s7639_s3 + $0x1d8] sm:$0xf0]  ;;  %v4876_v20 = vld [vmem:[%s7639_s3 + $0x94] sm:$0xf] }
 0x3f0   :  { %2473 = vmatmul.bf16.vlgmr.msra.gmra.mxu0 %v6754_v21  ;;  %2486 = vmatmul.bf16.vlgmr.msra.gmra.mxu1 %v6756_v15  ;;  %v4210_v27 = vor.u32 %v4882_v35, %v4207_v0  ;;  %v4119_v43 = vld [vmem:[%s7639_s3 + $0x18] sm:$0xf0]  ;;  %v4914_v36 = vld [vmem:[%s7639_s3 + $0x1c4] sm:$0xf]  ;;  %v4892_v4 = vld [vmem:[%s7639_s3 + $0x114] sm:$0xf] }
 0x3f1   :  { %2569 = vmatpush.bf16.msra.mxu1 %v4298_v5  ;;  %v4130_v5 = vor.u32 %v4862_v34, %v4127_v55  ;;  %v4183_v18 = vld [vmem:[%s7639_s3 + $0x98] sm:$0xf0]  ;;  %v4858_v42 = vld [vmem:[%s7639_s3 + $0x4] sm:$0xf]  ;;  %v4111_v3 = vld [vmem:[%s7639_s3 + $0x8] sm:$0xf0] }
 0x3f2   :  { %2511 = vmatpush.bf16.msra.mxu3 %v4366_v39  ;;  %2545 = vmatpush.bf16.msrb.mxu2 %v4154_v7  ;;  %v4135_v39 = vld [vmem:[%s7639_s3 + $0x38] sm:$0xf0]  ;;  %v4335_v7 = vld [vmem:[%s7639_s3 + $0x1c8] sm:$0xf0]  ;;  %v4874_v23 = vld [vmem:[%s7639_s3 + $0x84] sm:$0xf] }
 0x3f3   :  { %2521 = vmatpush.bf16.msrb.mxu0 %v4454_v16  ;;  %v4274_v16 = vor.u32 %v4898_v44, %v4271_v57  ;;  %v4138_v8 = vor.u32 %v4864_v58, %v4135_v39  ;;  %v4247_v49 = vld [vmem:[%s7639_s3 + $0x118] sm:$0xf0]  ;;  %v4338_v26 = vor.u32 %v4914_v36, %v4335_v7  ;;  %v4175_v6 = vld [vmem:[%s7639_s3 + $0x88] sm:$0xf0]  ;;  %v4912_v35 = vld [vmem:[%s7639_s3 + $0x1b4] sm:$0xf]  ;;  %v4490_v7 = vor.u32 %v4952_v1, %v4487_v12 }
 0x3f4   :  { %v4327_v0 = vld [vmem:[%s7639_s3 + $0x1b8] sm:$0xf0]  ;;  %v4178_v30 = vor.u32 %v4874_v23, %v4175_v6  ;;  %v4908_v39 = vld [vmem:[%s7639_s3 + $0x194] sm:$0xf]  ;;  %v4527_v53 = vld [vmem:[%s7639_s3 + $0x348] sm:$0xf0] }
 0x3f5   :  { %2570 = vmatpush.bf16.msra.mxu1 %v4290_v46  ;;  %v4122_v46 = vor.u32 %v4860_v31, %v4119_v43  ;;  %v4330_v17 = vor.u32 %v4912_v35, %v4327_v0  ;;  %v4960_v43 = vld [vmem:[%s7639_s3 + $0x334] sm:$0xf]  ;;  %v4471_v35 = vld [vmem:[%s7639_s3 + $0x2d8] sm:$0xf0]  ;;  %v4938_v1 = vld [vmem:[%s7639_s3 + $0x284] sm:$0xf] }
 0x3f6   :  { %2556 = vmatpush.bf16.msrb.mxu3 %v4234_v11  ;;  %2546 = vmatpush.bf16.msrb.mxu2 %v4146_v41  ;;  %v4896_v11 = vld [vmem:[%s7639_s3 + $0x134] sm:$0xf]  ;;  %v4239_v41 = vld [vmem:[%s7639_s3 + $0x108] sm:$0xf0] }
 0x3f7   :  { %2522 = vmatpush.bf16.msrb.mxu0 %v4446_v40  ;;  %v4266_v38 = vor.u32 %v4896_v11, %v4263_v29  ;;  %v4916_v40 = vld [vmem:[%s7639_s3 + $0x1d4] sm:$0xf]  ;;  %v4431_v12 = vld [vmem:[%s7639_s3 + $0x288] sm:$0xf0] }
 0x3f8   :  { %v4346_v32 = vor.u32 %v4916_v40, %v4343_v14  ;;  %v4932_v23 = vld [vmem:[%s7639_s3 + $0x254] sm:$0xf] }
 0x3f9   :  { %2571 = vmatpush.bf16.msra.mxu1 %v4282_v9  ;;  %v4114_v9 = vor.u32 %v4858_v42, %v4111_v3  ;;  %v4948_v6 = vld [vmem:[%s7639_s3 + $0x2d4] sm:$0xf] }
 0x3fa   :  { %2557 = vmatpush.bf16.msrb.mxu3 %v4226_v59  ;;  %2547 = vmatpush.bf16.msrb.mxu2 %v4138_v8  ;;  %v4303_v8 = vld [vmem:[%s7639_s3 + $0x188] sm:$0xf0] }
 0x3fb   :  { %2523 = vmatpush.bf16.msrb.mxu0 %v4438_v54  ;;  %v4186_v54 = vor.u32 %v4876_v20, %v4183_v18 }
 0x3fd   :  { %2572 = vmatpush.bf16.msra.mxu1 %v4274_v16  ;;  %v4311_v16 = vld [vmem:[%s7639_s3 + $0x198] sm:$0xf0] }
 0x3fe   :  { %2558 = vmatpush.bf16.msrb.mxu3 %v4218_v28  ;;  %2548 = vmatpush.bf16.msrb.mxu2 %v4130_v5  ;;  %v4250_v28 = vor.u32 %v4892_v4, %v4247_v49  ;;  %v4314_v56 = vor.u32 %v4908_v39, %v4311_v16  ;;  %v4962_v5 = vld [vmem:[%s7639_s3 + $0x344] sm:$0xf]  ;;  %v4479_v4 = vld [vmem:[%s7639_s3 + $0x2e8] sm:$0xf0] }
 0x3ff   :  { %2524 = vmatpush.bf16.msrb.mxu0 %v4430_v62  ;;  %v4890_v62 = vld [vmem:[%s7639_s3 + $0x104] sm:$0xf]  ;;  %v4495_v16 = vld [vmem:[%s7639_s3 + $0x308] sm:$0xf0] }
 0x400   :  { %v4242_v57 = vor.u32 %v4890_v62, %v4239_v41  ;;  %v4474_v62 = vor.u32 %v4948_v6, %v4471_v35  ;;  %v4930_v41 = vld [vmem:[%s7639_s3 + $0x244] sm:$0xf] }
 0x401   :  { %2573 = vmatpush.bf16.msra.mxu1 %v4266_v38  ;;  %v4954_v39 = vld [vmem:[%s7639_s3 + $0x304] sm:$0xf] }
 0x402   :  { %2559 = vmatpush.bf16.msrb.mxu3 %v4210_v27  ;;  %2549 = vmatpush.bf16.msrb.mxu2 %v4122_v46  ;;  %v4910_v27 = vld [vmem:[%s7639_s3 + $0x1a4] sm:$0xf]  ;;  %v4519_v46 = vld [vmem:[%s7639_s3 + $0x338] sm:$0xf0] }
 0x403   :  { %2582 = vmatpush.bf16.msra.mxu0 %v4362_v63  ;;  %v4319_v63 = vld [vmem:[%s7639_s3 + $0x1a8] sm:$0xf0]  ;;  %v4522_v49 = vor.u32 %v4960_v43, %v4519_v46 }
 0x404   :  { %v4322_v58 = vor.u32 %v4910_v27, %v4319_v63  ;;  %v4946_v27 = vld [vmem:[%s7639_s3 + $0x2c4] sm:$0xf]  ;;  %v4463_v63 = vld [vmem:[%s7639_s3 + $0x2c8] sm:$0xf0] }
 0x405   :  { %2574 = vmatpush.bf16.msra.mxu1 %v4258_v10  ;;  %v4530_v10 = vor.u32 %v4962_v5, %v4527_v53  ;;  %v4447_v5 = vld [vmem:[%s7639_s3 + $0x2a8] sm:$0xf0] }
 0x406   :  { %2560 = vmatpush.bf16.msrb.mxu3 %v4202_v37  ;;  %2550 = vmatpush.bf16.msrb.mxu2 %v4114_v9  ;;  %v4306_v37 = vor.u32 %v4906_v51, %v4303_v8  ;;  %v4407_v9 = vld [vmem:[%s7639_s3 + $0x258] sm:$0xf0]  ;;  %v4466_v51 = vor.u32 %v4946_v27, %v4463_v63  ;;  %v4928_v8 = vld [vmem:[%s7639_s3 + $0x234] sm:$0xf] }
 0x407   :  { %2583 = vmatpush.bf16.msra.mxu0 %v4354_v13  ;;  %v4538_v13 = vor.u32 %v4964_v2, %v4535_v45  ;;  %v4944_v2 = vld [vmem:[%s7639_s3 + $0x2b4] sm:$0xf]  ;;  %v4455_v45 = vld [vmem:[%s7639_s3 + $0x2b8] sm:$0xf0] }
 0x409   :  { %v6931_v59 = vpop.f32.mrf.mxu3  ;;  %2575 = vmatpush.bf16.msra.mxu1 %v4250_v28  ;;  %v2450_v38 = vand.u32 %v4538_v13, %v5932_v50  ;;  %v4936_v50 = vld [vmem:[%s7639_s3 + $0x274] sm:$0xf]  ;;  %v4511_v28 = vld [vmem:[%s7639_s3 + $0x328] sm:$0xf0]  ;;  %v4498_v13 = vor.u32 %v4954_v39, %v4495_v16 }
 0x40a   :  { %2561 = vmatpush.bf16.msrb.mxu3 %v4194_v25 }
 0x40b   :  { %2584 = vmatpush.bf16.msra.mxu0 %v4346_v32 }
 0x40d   :  { %2576 = vmatpush.bf16.msra.mxu1 %v4242_v57  ;;  %v4399_v57 = vld [vmem:[%s7639_s3 + $0x248] sm:$0xf0] }
 0x40e   :  { %2562 = vmatpush.bf16.msrb.mxu3 %v4186_v54 }
 0x40f   :  { %2585 = vmatpush.bf16.msra.mxu0 %v4338_v26  ;;  %v4958_v26 = vld [vmem:[%s7639_s3 + $0x324] sm:$0xf] }
 0x410   :  { %v4514_v0 = vor.u32 %v4958_v26, %v4511_v28 }
 0x411   :  { %v2463_v44 = vpop.f32.mrf.mxu3 }
 0x412   :  { %2563 = vmatpush.bf16.msrb.mxu3 %v4178_v30  ;;  %v4956_v30 = vld [vmem:[%s7639_s3 + $0x314] sm:$0xf]  ;;  %v4410_v44 = vor.u32 %v4932_v23, %v4407_v9 }
 0x413   :  { %2586 = vmatpush.bf16.msra.mxu0 %v4330_v17  ;;  %v4503_v17 = vld [vmem:[%s7639_s3 + $0x318] sm:$0xf0] }
 0x417   :  { %2587 = vmatpush.bf16.msra.mxu0 %v4322_v58  ;;  %v4506_v58 = vor.u32 %v4956_v30, %v4503_v17 }
 0x41b   :  { %2588 = vmatpush.bf16.msra.mxu0 %v4314_v56  ;;  %v4402_v56 = vor.u32 %v4930_v41, %v4399_v57 }
 0x41f   :  { %2589 = vmatpush.bf16.msra.mxu0 %v4306_v37  ;;  %v4391_v37 = vld [vmem:[%s7639_s3 + $0x238] sm:$0xf0] }
 0x422   :  { %v1768_v11 = vpop.permute.xlu1 %1767 }
 0x423   :  { %v1788_v29 = vmax.f32 %v6565_v24, %v1768_v11  ;;  %v4423_v24 = vld [vmem:[%s7639_s3 + $0x278] sm:$0xf0] }
 0x424   :  { %v4426_v20 = vor.u32 %v4936_v50, %v4423_v24  ;;  %v4375_v50 = vld [vmem:[%s7639_s3 + $0x218] sm:$0xf0]  ;;  %v4940_v24 = vld [vmem:[%s7639_s3 + $0x294] sm:$0xf] }
 0x425   :  { %v7007_v34 = vpack.c.bf16 %v1788_v29, %v1788_v29  ;;  %v5098_v55 = vpop.permute.xlu0 %5097  ;;  %v4926_v29 = vld [vmem:[%s7639_s3 + $0x224] sm:$0xf] }
 0x426   :  { %v5100_v60 = vunpack.i.h.bf16 %v5098_v55  ;;  %v5099_v25 = vunpack.i.l.bf16 %v5098_v55  ;;  %v4942_v55 = vld [vmem:[%s7639_s3 + $0x2a4] sm:$0xf] }
 0x427   :  { %4539 = vmatmul.msk.bf16.vlgmr.msrb.gmra.mxu1 %vm2442_vm13, %v7007_v34 }
 0x428   :  { %v1772_v40 = vsel %vm7816_vm7, %v5095_v48, %v5099_v25  ;;  %v1773_v14 = vsel %vm7817_vm9, %v5099_v25, %v5100_v60  ;;  %v1774_v32 = vsel %vm7818_vm10, %v5100_v60, %v1768_v11  ;;  %2623 = vmatpush.bf16.msrb.mxu1 %v2450_v38  ;;  %v4458_v11 = vor.u32 %v4944_v2, %v4455_v45  ;;  %v4383_v38 = vld [vmem:[%s7639_s3 + $0x228] sm:$0xf0]  ;;  %v4924_v25 = vld [vmem:[%s7639_s3 + $0x214] sm:$0xf] }
 0x429   :  { %v1785_v31 = vmax.f32 %v6486_v22, %v1772_v40  ;;  %v1786_v19 = vmax.f32 %v6571_v52, %v1773_v14  ;;  %v1787_v48 = vmax.f32 %v6575_v33, %v1774_v32  ;;  %v4934_v22 = vld [vmem:[%s7639_s3 + $0x264] sm:$0xf]  ;;  %v4415_v52 = vld [vmem:[%s7639_s3 + $0x268] sm:$0xf0]  ;;  %v4386_v53 = vor.u32 %v4926_v29, %v4383_v38 }
 0x42a   :  { %v4950_v33 = vld [vmem:[%s7639_s3 + $0x2e4] sm:$0xf]  ;;  %v4418_v42 = vor.u32 %v4934_v22, %v4415_v52  ;;  %v4450_v60 = vor.u32 %v4942_v55, %v4447_v5  ;;  %v4367_v32 = vld [vmem:[%s7639_s3 + $0x208] sm:$0xf0]  ;;  %vm2772_vm7 = vcmask 801792   ;;  %vm2805_vm9 = vcmask 703488  }
 0x42b   :  { %v1900_v18 = vpack.c.bf16 %v1785_v31, %v1785_v31  ;;  %v7043_v36 = vpack.c.bf16 %v1786_v19, %v1786_v19  ;;  %v7045_v54 = vpack.c.bf16 %v1787_v48, %v1787_v48  ;;  %v4482_v3 = vor.u32 %v4950_v33, %v4479_v4  ;;  %v4922_v14 = vld [vmem:[%s7639_s3 + $0x204] sm:$0xf] }
 0x42c   :  { %2624 = vmatpush.bf16.msrb.mxu1 %v4530_v10  ;;  %v4370_v10 = vor.u32 %v4922_v14, %v4367_v32  ;;  %v4434_v31 = vor.u32 %v4938_v1, %v4431_v12  ;;  %vm2679_vm10 = vcmask 64514  }
 0x42d   :  { %2499 = vmatmul.bf16.vlgmr.msra.gmra.mxu2 %v1900_v18  ;;  %2512 = vmatmul.bf16.vlgmr.msra.gmra.mxu3 %v7043_v36 }
 0x42e   :  { %2525 = vmatmul.bf16.vlgmr.msrb.gmra.mxu0 %v7045_v54  ;;  %2595 = vmatpush.bf16.msra.mxu2 %v4426_v20 }
 0x42f   :  { %2608 = vmatpush.bf16.msra.mxu3 %v4490_v7 }
 0x430   :  { %2625 = vmatpush.bf16.msrb.mxu1 %v4522_v49 }
 0x432   :  { %2596 = vmatpush.bf16.msra.mxu2 %v4418_v42 }
 0x433   :  { %2609 = vmatpush.bf16.msra.mxu3 %v4482_v3 }
 0x434   :  { %2626 = vmatpush.bf16.msrb.mxu1 %v4514_v0 }
 0x436   :  { %2597 = vmatpush.bf16.msra.mxu2 %v4410_v44 }
 0x437   :  { %2610 = vmatpush.bf16.msra.mxu3 %v4474_v62  ;;  %2577 = vmatmul.bf16.vlgmr.msra.gmra.mxu1 %v6756_v15  ;;  %v4394_v15 = vor.u32 %v4928_v8, %v4391_v37 }
 0x438   :  { %2627 = vmatpush.bf16.msrb.mxu1 %v4506_v58 }
 0x43a   :  { %2598 = vmatpush.bf16.msra.mxu2 %v4402_v56 }
 0x43b   :  { %2611 = vmatpush.bf16.msra.mxu3 %v4466_v51 }
 0x43c   :  { %2628 = vmatpush.bf16.msrb.mxu1 %v4498_v13 }
 0x43d   :  { %2551 = vmatmul.bf16.vlgmr.msrb.gmra.mxu2 %v6472_v47  ;;  %2564 = vmatmul.bf16.vlgmr.msrb.gmra.mxu3 %v6754_v21  ;;  %v4439_v47 = vld [vmem:[%s7639_s3 + $0x298] sm:$0xf0]  ;;  %v4378_v21 = vor.u32 %v4924_v25, %v4375_v50  ;;  %s5179_s3 = smov 85  }
 0x43e   :  { %2590 = vmatmul.bf16.vlgmr.msra.gmra.mxu0 %v1900_v18  ;;  %2599 = vmatpush.bf16.msra.mxu2 %v4394_v15  ;;  %v4442_v40 = vor.u32 %v4940_v24, %v4439_v47 }
 0x43f   :  { %2612 = vmatpush.bf16.msra.mxu3 %v4458_v11 }
 0x442   :  { %2600 = vmatpush.bf16.msra.mxu2 %v4386_v53 }
 0x443   :  { %2613 = vmatpush.bf16.msra.mxu3 %v4450_v60  ;;  %v5028_v60 = vld [vmem:[%s7641_s5 + $0xd8] sm:$0xff]  }
 0x444   :  { %v5026_v25 = vunpack.c.l.bf16 %v5028_v60  ;;  %v5027_v50 = vunpack.c.h.bf16 %v5028_v60 }
 0x446   :  { %2601 = vmatpush.bf16.msra.mxu2 %v4378_v21 }
 0x447   :  { %2614 = vmatpush.bf16.msra.mxu3 %v4442_v40  ;;  %4540 = vmatmul.msk.bf16.vlgmr.msrb.gmra.mxu1 %vm2442_vm13, %v7007_v34  ;;  %v5101_v40 = vpack.i.bf16 %v5027_v50, %v5026_v25  ;;  %vm2815_vm13 = vcmask 695296  }
 0x44a   :  { %2602 = vmatpush.bf16.msra.mxu2 %v4370_v10 }
 0x44b   :  { %2615 = vmatpush.bf16.msra.mxu3 %v4434_v31 }
 0x44d   :  { %2603 = vmatmul.bf16.vlgmr.msra.gmra.mxu2 %v7043_v36 }
 0x44e   :  { %2616 = vmatmul.bf16.vlgmr.msra.gmra.mxu3 %v7045_v54 }
 0x46d   :  { %v2474_v19 = vpop.f32.mrf.mxu0  ;;  %v2487_v48 = vpop.f32.mrf.mxu1 }
 0x46e   :  { %v2475_v18 = vadd.f32 %v2474_v19, %v6931_v59 }
 0x470   :  { %v2488_v52 = vadd.f32 %v2487_v48, %v2475_v18 }
 0x475   :  { %v2476_v43 = vpop.f32.mrf.mxu0  ;;  %v2489_v46 = vpop.f32.mrf.mxu1 }
 0x4a4   :  { %v2539_v20 = vpop.f32.mrf.mxu1 }
 0x4ab   :  { %v2526_v7 = vpop.f32.mrf.mxu0 }
 0x4ac   :  { %v2541_v22 = vpop.f32.mrf.mxu1 }
 0x4b0   :  { %v2500_v33 = vpop.f32.mrf.mxu2  ;;  %v2513_v4 = vpop.f32.mrf.mxu3 }
 0x4b1   :  { %v2501_v34 = vadd.f32 %v2500_v33, %v2488_v52 }
 0x4b3   :  { %v2514_v49 = vadd.f32 %v2513_v4, %v2501_v34  ;;  %v2528_v26 = vpop.f32.mrf.mxu0 }
 0x4b4   :  { %v2578_v28 = vpop.f32.mrf.mxu1 }
 0x4b5   :  { %v2527_v42 = vadd.f32 %v2526_v7, %v2514_v49 }
 0x4b7   :  { %v2540_v36 = vadd.f32 %v2539_v20, %v2527_v42 }
 0x4b8   :  { %v2502_v3 = vpop.f32.mrf.mxu2  ;;  %v2515_v54 = vpop.f32.mrf.mxu3 }
 0x4b9   :  { %2634 = vst [vmem:[#allocation2] sm:$0x3f] %v2540_v36  ;;  %2681 = vrot.lane.b32.xlu2 %v2540_v36, %s5176_s23  ;;  %2811 = vrot.lane.b32.xlu0 %v2540_v36, %s5179_s3  ;;  %v2654_v9 = vrot.slane %v2540_v36, 4  ;;  %v7165_v44 = vrot.slane %v2540_v36, 2  ;;  %v7172_v58 = vrot.slane %v2540_v36, 6 }
 0x4ba   :  { %2855 = vrot.lane.b32.xlu1 %v2540_v36, %s5180_s15 }
 0x4bb   :  { %v2591_v59 = vpop.f32.mrf.mxu0 }
 0x4bc   :  { %v2580_v23 = vpop.f32.mrf.mxu1 }
 0x4c0   :  { %v2552_v6 = vpop.f32.mrf.mxu2  ;;  %v2565_v35 = vpop.f32.mrf.mxu3 }
 0x4c1   :  { %2768 = vrot.lane.b32.xlu0 %v2540_v36, %s5181_s16  ;;  %2833 = vrot.lane.b32.xlu2 %v2654_v9, %s5182_s17  ;;  %v2566_v17 = vadd.f32 %v2565_v35, %v2552_v6 }
 0x4c2   :  { %2724 = vrot.lane.b32.xlu1 %v2540_v36, %s5183_s18 }
 0x4c3   :  { %v2593_v0 = vpop.f32.mrf.mxu0  ;;  %v2579_v57 = vadd.f32 %v2578_v28, %v2566_v17 }
 0x4c4   :  { %v2630_v30 = vpop.f32.mrf.mxu1 }
 0x4c5   :  { %v2592_v63 = vadd.f32 %v2591_v59, %v2579_v57 }
 0x4c8   :  { %v2554_v62 = vpop.f32.mrf.mxu2  ;;  %v2567_v41 = vpop.f32.mrf.mxu3 }
 0x4c9   :  { %2899 = vrot.lane.b32.xlu0 %v2540_v36, %s5184_s19  ;;  %2865 = vrot.lane.b32.xlu2 %v7165_v44, %s5185_s24 }
 0x4ca   :  { %2821 = vrot.lane.b32.xlu1 %v7165_v44, %s5186_s25 }
 0x4cc   :  { %v2632_v27 = vpop.f32.mrf.mxu1 }
 0x4d0   :  { %v2604_v39 = vpop.f32.mrf.mxu2 }
 0x4d1   :  { %v2605_v16 = vadd.f32 %v2604_v39, %v2592_v63  ;;  %v2617_v56 = vpop.f32.mrf.mxu3  ;;  %2845 = vrot.lane.b32.xlu0 %v7172_v58, %s5187_s26  ;;  %2778 = vrot.lane.b32.xlu2 %v7165_v44, %s5188_s1 }
 0x4d2   :  { %2801 = vrot.lane.b32.xlu1 %v7172_v58, %s5189_s27 }
 0x4d3   :  { %v2618_v51 = vadd.f32 %v2617_v56, %v2605_v16 }
 0x4d5   :  { %v2631_v8 = vadd.f32 %v2630_v30, %v2618_v51 }
 0x4d7   :  { %2636 = vst.msk [vmem:[#allocation2 + $0x8] sm:$0x3f] %vm2635_vm5, %v2631_v8  ;;  %v2670_v45 = vrot.slane %v2631_v8, 6  ;;  %v2655_v13 = vrot.slane %v2631_v8, 4  ;;  %v2640_v15 = vrot.slane %v2631_v8, 2 }
 0x4d8   :  { %v2606_v37 = vpop.f32.mrf.mxu2 }
 0x4d9   :  { %v2619_v2 = vpop.f32.mrf.mxu3  ;;  %2790 = vrot.lane.b32.xlu0 %v2654_v9, %s5158_s28  ;;  %2758 = vrot.lane.b32.xlu2 %v7172_v58, %s5190_s29 }
 0x4da   :  { %2746 = vrot.lane.b32.xlu1 %v2654_v9, %s5191_s30 }
 0x4e1   :  { %2702 = vrot.lane.b32.xlu0 %v2654_v9, %s5192_s7  ;;  %2734 = vrot.lane.b32.xlu2 %v7165_v44, %s5193_s0 }
 0x4e2   :  { %2714 = vrot.lane.b32.xlu1 %v7172_v58, %s5194_s8 }
 0x4e9   :  { %2656 = vrot.lane.b32.xlu0 %v2654_v9, %s5174_s21  ;;  %2690 = vrot.lane.b32.xlu2 %v7165_v44, %s5195_s9 }
 0x4ea   :  { %2671 = vrot.lane.b32.xlu1 %v7172_v58, %s5175_s22 }
 0x4f1   :  { %2877 = vrot.lane.b32.xlu0 %v2654_v9, %s5196_s10  ;;  %2726 = vrot.lane.b32.xlu2 %v2631_v8, %s5183_s18 }
 0x4f2   :  { %2857 = vrot.lane.b32.xlu1 %v2631_v8, %s5180_s15 }
 0x4f9   :  { %2813 = vrot.lane.b32.xlu0 %v2631_v8, %s5179_s3  ;;  %2683 = vrot.lane.b32.xlu2 %v2631_v8, %s5176_s23 }
 0x4fa   :  { %2770 = vrot.lane.b32.xlu1 %v2631_v8, %s5181_s16 }
 0x501   :  { %2847 = vrot.lane.b32.xlu0 %v2670_v45, %s5187_s26  ;;  %2835 = vrot.lane.b32.xlu2 %v2655_v13, %s5182_s17  ;;  %s4091_s17 = sshll.u32 %s7642_s6, 4  ;;  %s4092_s17 = int_to_ptr.hbm [resolvable:$true] %s4091_s17 }
 0x502   :  { %2901 = vrot.lane.b32.xlu1 %v2631_v8, %s5184_s19 }
 0x509   :  { %2780 = vrot.lane.b32.xlu0 %v2640_v15, %s5188_s1  ;;  %2867 = vrot.lane.b32.xlu2 %v2640_v15, %s5185_s24 }
 0x50a   :  { %2823 = vrot.lane.b32.xlu1 %v2640_v15, %s5186_s25 }
 0x511   :  { %2760 = vrot.lane.b32.xlu0 %v2670_v45, %s5190_s29  ;;  %2803 = vrot.lane.b32.xlu2 %v2670_v45, %s5189_s27 }
 0x512   :  { %2792 = vrot.lane.b32.xlu1 %v2655_v13, %s5158_s28 }
 0x513   :  { %v2682_v11 = vpop.permute.xlu2 %2681 }
 0x519   :  { %2736 = vrot.lane.b32.xlu0 %v2640_v15, %s5193_s0  ;;  %2748 = vrot.lane.b32.xlu2 %v2655_v13, %s5191_s30 }
 0x51a   :  { %2692 = vrot.lane.b32.xlu1 %v2640_v15, %s5195_s9 }
 0x51b   :  { %v2834_v29 = vpop.permute.xlu2 %2833 }
 0x521   :  { %2716 = vrot.lane.b32.xlu0 %v2670_v45, %s5194_s8  ;;  %2704 = vrot.lane.b32.xlu2 %v2655_v13, %s5192_s7 }
 0x522   :  { %2673 = vrot.lane.b32.xlu1 %v2670_v45, %s5175_s22 }
 0x523   :  { %v2866_v38 = vpop.permute.xlu2 %2865 }
 0x529   :  { %2658 = vrot.lane.b32.xlu0 %v2655_v13, %s5174_s21  ;;  %2643 = vrot.lane.b32.xlu2 %v2640_v15, %s5173_s20 }
 0x52a   :  { %2879 = vrot.lane.b32.xlu1 %v2655_v13, %s5196_s10 }
 0x52b   :  { %v7215_v55 = vpop.permute.xlu0 %2811  ;;  %v7217_v5 = vpop.permute.xlu2 %2778 }
 0x52c   :  { %v2856_v53 = vpop.permute.xlu1 %2855 }
 0x531   :  { %2891 = vrot.lane.b32.xlu0 %v2670_v45, %s5197_s11  ;;  %2889 = vrot.lane.b32.xlu2 %v7172_v58, %s5197_s11 }
 0x532   :  { %2641 = vrot.lane.b32.xlu1 %v7165_v44, %s5173_s20 }
 0x533   :  { %v2769_v24 = vpop.permute.xlu0 %2768  ;;  %v7225_v47 = vpop.permute.xlu2 %2758 }
 0x534   :  { %v2725_v21 = vpop.permute.xlu1 %2724 }
 0x539   :  { %5102 = vperm.xlu2 %5070, %v5101_v40  }
 0x53b   :  { %v7227_v14 = vpop.permute.xlu0 %2899  ;;  %v7229_v32 = vpop.permute.xlu2 %2734 }
 0x53c   :  { %v7231_v1 = vpop.permute.xlu1 %2821 }
 0x543   :  { %v7233_v12 = vpop.permute.xlu0 %2845  ;;  %v7235_v10 = vpop.permute.xlu2 %2690 }
 0x544   :  { %v2802_v31 = vpop.permute.xlu1 %2801 }
 0x54b   :  { %v7237_v19 = vpop.permute.xlu0 %2790  ;;  %v2727_v48 = vpop.permute.xlu2 %2726 }
 0x54c   :  { %v7239_v43 = vpop.permute.xlu1 %2746  ;;  %v2729_v46 = vsel %vm2728_vm8, %v2725_v21, %v2727_v48  ;;  %2733 = vst.msk [vmem:[#allocation2 + $0x158] sm:$0x3f] %vm2635_vm5, %v2727_v48  ;;  %vm2849_vm8 = vcmask 670720  }
 0x54d   :  { %2732 = vst [vmem:[#allocation2 + $0x150] sm:$0x3f] %v2729_v46 }
 0x553   :  { %v7242_v20 = vpop.permute.xlu0 %2702  ;;  %v2684_v18 = vpop.permute.xlu2 %2683 }
 0x554   :  { %v7244_v7 = vpop.permute.xlu1 %2714  ;;  %v2685_v22 = vsel %vm272_vm1, %v2682_v11, %v2684_v18  ;;  %2689 = vst.msk [vmem:[#allocation2 + $0xb0] sm:$0x3f] %vm2635_vm5, %v2684_v18  ;;  %vm2869_vm1 = vcmask 580608  }
 0x555   :  { %2688 = vst [vmem:[#allocation2 + $0xa8] sm:$0x3f] %v2685_v22 }
 0x55b   :  { %v7248_v52 = vpop.permute.xlu0 %2656  ;;  %v2836_v33 = vpop.permute.xlu2 %2835 }
 0x55c   :  { %v7250_v4 = vpop.permute.xlu1 %2671  ;;  %v2838_v34 = vsel %vm2837_vm6, %v2834_v29, %v2836_v33  ;;  %2842 = vst.msk [vmem:[#allocation2 + $0x2e0] sm:$0xf0] %vm2664_vm14, %v2836_v33  ;;  %vm2903_vm6 = vcmask 556032  }
 0x55d   :  { %2841 = vst [vmem:[#allocation2 + $0x2d8] sm:$0xf0] %v2838_v34 }
 0x55e   :  { %2843 = vst [vmem:[#allocation2 + $0x310] sm:$0x3] %v2838_v34 }
 0x55f   :  { %2844 = vst.msk [vmem:[#allocation2 + $0x318] sm:$0x3] %vm2667_vm4, %v2836_v33 }
 0x563   :  { %v7254_v49 = vpop.permute.xlu0 %2877  ;;  %v2868_v26 = vpop.permute.xlu2 %2867 }
 0x564   :  { %v2858_v28 = vpop.permute.xlu1 %2857  ;;  %v2870_v42 = vsel %vm2869_vm1, %v2866_v38, %v2868_v26  ;;  %2874 = vst.msk [vmem:[#allocation2 + $0x350] sm:$0xc0] %vm2649_vm11, %v2868_v26  ;;  %vm2750_vm1 = vcmask 818176  }
 0x565   :  { %v2860_v36 = vsel %vm2859_vm12, %v2856_v53, %v2858_v28  ;;  %2864 = vst.msk [vmem:[#allocation2 + $0x350] sm:$0x3f] %vm2635_vm5, %v2858_v28  ;;  %vm2782_vm12 = vcmask 793600  }
 0x566   :  { %2863 = vst [vmem:[#allocation2 + $0x348] sm:$0x3f] %v2860_v36 }
 0x567   :  { %2873 = vst [vmem:[#allocation2 + $0x348] sm:$0xc0] %v2870_v42 }
 0x568   :  { %2875 = vst [vmem:[#allocation2 + $0x380] sm:$0xf] %v2870_v42 }
 0x569   :  { %2876 = vst.msk [vmem:[#allocation2 + $0x388] sm:$0xf] %vm2652_vm2, %v2868_v26 }
 0x56b   :  { %v2814_v3 = vpop.permute.xlu0 %2813  ;;  %v2804_v54 = vpop.permute.xlu2 %2803 }
 0x56c   :  { %v2816_v59 = vsel %vm2815_vm13, %v7215_v55, %v2814_v3  ;;  %2820 = vst.msk [vmem:[#allocation2 + $0x2a8] sm:$0x3f] %vm2635_vm5, %v2814_v3  ;;  %v2771_v23 = vpop.permute.xlu1 %2770  ;;  %v2806_v6 = vsel %vm2805_vm9, %v2802_v31, %v2804_v54  ;;  %vm2825_vm13 = vcmask 687104   ;;  %v2940_v27 = vld [vmem:[#allocation2 + $0x350] sm:$0xff]  ;;  %vm2762_vm9 = vcmask 809984  }
 0x56d   :  { %2819 = vst [vmem:[#allocation2 + $0x2a0] sm:$0x3f] %v2816_v59  ;;  %v2773_v9 = vsel %vm2772_vm7, %v2769_v24, %v2771_v23  ;;  %vm2706_vm7 = vcmask 924672  }
 0x56e   :  { %2776 = vst [vmem:[#allocation2 + $0x1f8] sm:$0x3f] %v2773_v9  ;;  %v2939_v56 = vld [vmem:[#allocation2 + $0x348] sm:$0xff] }
 0x56f   :  { %2777 = vst.msk [vmem:[#allocation2 + $0x200] sm:$0x3f] %vm2635_vm5, %v2771_v23 }
 0x570   :  { %2809 = vst [vmem:[#allocation2 + $0x268] sm:$0xfc] %v2806_v6 }
 0x571   :  { %2810 = vst.msk [vmem:[#allocation2 + $0x270] sm:$0xfc] %vm2679_vm10, %v2804_v54 }
 0x573   :  { %v2848_v35 = vpop.permute.xlu0 %2847  ;;  %v2749_v0 = vpop.permute.xlu2 %2748 }
 0x574   :  { %v2850_v30 = vsel %vm2849_vm8, %v7233_v12, %v2848_v35  ;;  %2854 = vst.msk [vmem:[#allocation2 + $0x318] sm:$0xfc] %vm2679_vm10, %v2848_v35  ;;  %v2902_v17 = vpop.permute.xlu1 %2901  ;;  %v2751_v62 = vsel %vm2750_vm1, %v7239_v43, %v2749_v0  ;;  %vm7819_vm8 = vcmask 785408   ;;  %vm2694_vm1 = vcmask 932864  }
 0x575   :  { %2853 = vst [vmem:[#allocation2 + $0x310] sm:$0xfc] %v2850_v30  ;;  %v2904_v44 = vsel %vm2903_vm6, %v7227_v14, %v2902_v17  ;;  %vm2738_vm6 = vcmask 900096  }
 0x576   :  { %2907 = vst [vmem:[#allocation2 + $0x3f0] sm:$0x3f] %v2904_v44 }
 0x577   :  { %2908 = vst.msk [vmem:[#allocation2 + $0x3f8] sm:$0x3f] %vm2635_vm5, %v2902_v17  ;;  %vm2996_vm5 = vcmask 1042432  }
 0x578   :  { %2754 = vst [vmem:[#allocation2 + $0x188] sm:$0xf0] %v2751_v62 }
 0x579   :  { %2755 = vst.msk [vmem:[#allocation2 + $0x190] sm:$0xf0] %vm2664_vm14, %v2749_v0 }
 0x57a   :  { %2756 = vst [vmem:[#allocation2 + $0x1c0] sm:$0x3] %v2751_v62 }
 0x57b   :  { %2757 = vst.msk [vmem:[#allocation2 + $0x1c8] sm:$0x3] %vm2667_vm4, %v2749_v0  ;;  %v2781_v41 = vpop.permute.xlu0 %2780  ;;  %v2938_v57 = vld [vmem:[#allocation2 + $0x318] sm:$0xff]  ;;  %v2705_v2 = vpop.permute.xlu2 %2704 }
 0x57c   :  { %v2783_v63 = vsel %vm2782_vm12, %v7217_v5, %v2781_v41  ;;  %2787 = vst.msk [vmem:[#allocation2 + $0x200] sm:$0xc0] %vm2649_vm11, %v2781_v41  ;;  %v2824_v58 = vpop.permute.xlu1 %2823  ;;  %v2964_v39 = vpack.c.bf16 %v2940_v27, %v2938_v57  ;;  %v2937_v16 = vld [vmem:[#allocation2 + $0x310] sm:$0xff]  ;;  %v2707_v29 = vsel %vm2706_vm7, %v7242_v20, %v2705_v2  ;;  %vm2718_vm12 = vcmask 916480  }
 0x57d   :  { %2786 = vst [vmem:[#allocation2 + $0x1f8] sm:$0xc0] %v2783_v63  ;;  %v2826_v51 = vsel %vm2825_vm13, %v7231_v1, %v2824_v58  ;;  %v2963_v8 = vpack.c.bf16 %v2939_v56, %v2937_v16  ;;  %v2945_v37 = vld [vmem:[#allocation2 + $0x3f0] sm:$0x3f]  ;;  %vm4071_vm7 = vcmask 73728  }
 0x57e   :  { %2788 = vst [vmem:[#allocation2 + $0x230] sm:$0xf] %v2783_v63  ;;  %3031 = vmatpush.bf16.msrb.mxu3 %v2964_v39  ;;  %v2946_v45 = vld [vmem:[#allocation2 + $0x3f8] sm:$0x3f]  ;;  %v2967_v13 = vpack.c.bf16 %v2945_v37, %v2945_v37 }
 0x57f   :  { %2789 = vst.msk [vmem:[#allocation2 + $0x238] sm:$0xf] %vm2652_vm2, %v2781_v41  ;;  %3003 = vmatpush.bf16.msrb.mxu0 %v2963_v8  ;;  %v2968_v15 = vpack.c.bf16 %v2946_v45, %v2946_v45 }
 0x580   :  { %2829 = vst [vmem:[#allocation2 + $0x2a0] sm:$0xc0] %v2826_v51  ;;  %v2998_v11 = vsel %vm2996_vm5, %v2967_v13, 0 }
 0x581   :  { %2830 = vst.msk [vmem:[#allocation2 + $0x2a8] sm:$0xc0] %vm2649_vm11, %v2824_v58  ;;  %v3001_v38 = vsel %vm2996_vm5, %v2968_v15, 0  ;;  %3023 = vmatpush.bf16.msrb.mxu2 %v2998_v11  ;;  %v4543_v15 = vld [vmem:[%s7638_s2 + $0x10] sm:$0xf]  ;;  %vm3966_vm5 = vcmask 72704  }
 0x582   :  { %2831 = vst [vmem:[#allocation2 + $0x2d8] sm:$0xf] %v2826_v51  ;;  %3051 = vmatpush.bf16.msra.mxu1 %v3001_v38  ;;  %v4967_v11 = vld [vmem:[%s7638_s2 + $0x14] sm:$0xf0]  ;;  %v4966_v38 = vld [vmem:[%s7638_s2 + $0x14] sm:$0xf] }
 0x583   :  { %2832 = vst.msk [vmem:[#allocation2 + $0x2e0] sm:$0xf] %vm2652_vm2, %v2824_v58  ;;  %v2761_v55 = vpop.permute.xlu0 %2760  ;;  %v7285_v14 = vpop.permute.xlu2 %2643  ;;  %v2928_v3 = vld [vmem:[#allocation2 + $0x200] sm:$0xff] }
 0x584   :  { %2710 = vst [vmem:[#allocation2 + $0xe0] sm:$0xf0] %v2707_v29  ;;  %v2793_v5 = vpop.permute.xlu1 %2792  ;;  %v2763_v53 = vsel %vm2762_vm9, %v7225_v47, %v2761_v55  ;;  %v2927_v42 = vld [vmem:[#allocation2 + $0x1f8] sm:$0xff] }
 0x585   :  { %2711 = vst.msk [vmem:[#allocation2 + $0xe8] sm:$0xf0] %vm2664_vm14, %v2705_v2  ;;  %v2794_v60 = vsel %vm7819_vm8, %v7237_v19, %v2793_v5 }
 0x586   :  { %2712 = vst [vmem:[#allocation2 + $0x118] sm:$0x3] %v2707_v29 }
 0x587   :  { %2713 = vst.msk [vmem:[#allocation2 + $0x120] sm:$0x3] %vm2667_vm4, %v2705_v2  ;;  %v2933_v25 = vld [vmem:[#allocation2 + $0x2a0] sm:$0xff] }
 0x588   :  { %2766 = vst [vmem:[#allocation2 + $0x1c0] sm:$0xfc] %v2763_v53  ;;  %v2934_v50 = vld [vmem:[#allocation2 + $0x2a8] sm:$0xff] }
 0x589   :  { %2767 = vst.msk [vmem:[#allocation2 + $0x1c8] sm:$0xfc] %vm2679_vm10, %v2761_v55  ;;  %v2935_v24 = vld [vmem:[#allocation2 + $0x2d8] sm:$0xff]  ;;  %v4545_v55 = vld [vmem:[%s7638_s2 + $0x18] sm:$0xf0]  ;;  %s5198_s2 = smov [#allocation4]  }
 0x58a   :  { %2797 = vst [vmem:[#allocation2 + $0x230] sm:$0xf0] %v2794_v60  ;;  %v2936_v21 = vld [vmem:[#allocation2 + $0x2e0] sm:$0xff]  ;;  %v2961_v40 = vpack.c.bf16 %v2935_v24, %v2933_v25  ;;  %v4544_v25 = vor.u32 %v4967_v11, %v4543_v15  ;;  %v4970_v11 = vld [vmem:[%s7641_s5 + $0xa0] sm:$0xff] }
 0x58b   :  { %2798 = vst.msk [vmem:[#allocation2 + $0x238] sm:$0xf0] %vm2664_vm14, %v2793_v5  ;;  %v2962_v47 = vpack.c.bf16 %v2936_v21, %v2934_v50  ;;  %v2737_v1 = vpop.permute.xlu0 %2736  ;;  %v2890_v63 = vpop.permute.xlu2 %2889  ;;  %v4971_v15 = vld [vmem:[%s7641_s5 + $0xa8] sm:$0xff] }
 0x58c   :  { %2799 = vst [vmem:[#allocation2 + $0x268] sm:$0x3] %v2794_v60  ;;  %3004 = vmatpush.bf16.msrb.mxu0 %v2961_v40  ;;  %v2693_v12 = vpop.permute.xlu1 %2692  ;;  %v2739_v31 = vsel %vm2738_vm6, %v7229_v32, %v2737_v1 }
 0x58d   :  { %2800 = vst.msk [vmem:[#allocation2 + $0x270] sm:$0x3] %vm2667_vm4, %v2793_v5  ;;  %3032 = vmatpush.bf16.msrb.mxu3 %v2962_v47  ;;  %v2695_v19 = vsel %vm2694_vm1, %v7235_v10, %v2693_v12  ;;  %v4548_v47 = vor.u32 %v4966_v38, %v4545_v55  ;;  %v4968_v38 = vld [vmem:[%s7641_s5 + $0x90] sm:$0xff]  ;;  %v4590_v55 = vld [vmem:[%s7640_s4 + $0x8] sm:$0xf] }
 0x58e   :  { %2650 = vst.msk [vmem:[#allocation2 + $0x8] sm:$0xc0] %vm2649_vm11, %v7285_v14 }
 0x58f   :  { %2653 = vst.msk [vmem:[#allocation2 + $0x40] sm:$0xf] %vm2652_vm2, %v7285_v14  ;;  %v2925_v26 = vld [vmem:[#allocation2 + $0x1c0] sm:$0xff] }
 0x590   :  { %2742 = vst [vmem:[#allocation2 + $0x150] sm:$0xc0] %v2739_v31  ;;  %v2926_v10 = vld [vmem:[#allocation2 + $0x1c8] sm:$0xff]  ;;  %v2957_v54 = vpack.c.bf16 %v2927_v42, %v2925_v26 }
 0x591   :  { %2743 = vst.msk [vmem:[#allocation2 + $0x158] sm:$0xc0] %vm2649_vm11, %v2737_v1  ;;  %v2929_v48 = vld [vmem:[#allocation2 + $0x230] sm:$0xff]  ;;  %v2958_v23 = vpack.c.bf16 %v2928_v3, %v2926_v10 }
 0x592   :  { %2744 = vst [vmem:[#allocation2 + $0x188] sm:$0xf] %v2739_v31  ;;  %v2930_v43 = vld [vmem:[#allocation2 + $0x238] sm:$0xff] }
 0x593   :  { %2745 = vst.msk [vmem:[#allocation2 + $0x190] sm:$0xf] %vm2652_vm2, %v2737_v1  ;;  %v2931_v32 = vld [vmem:[#allocation2 + $0x268] sm:$0xff]  ;;  %v2717_v46 = vpop.permute.xlu0 %2716  ;;  %v5103_v31 = vpop.permute.xlu2 %5102 }
 0x594   :  { %2698 = vst [vmem:[#allocation2 + $0xa8] sm:$0xc0] %v2695_v19  ;;  %v2932_v20 = vld [vmem:[#allocation2 + $0x270] sm:$0xff]  ;;  %v2959_v18 = vpack.c.bf16 %v2931_v32, %v2929_v48  ;;  %v2674_v22 = vpop.permute.xlu1 %2673  ;;  %v2719_v34 = vsel %vm2718_vm12, %v7244_v7, %v2717_v46  ;;  %v5104_v48 = vunpack.i.l.bf16 %v5103_v31 }
 0x595   :  { %2699 = vst.msk [vmem:[#allocation2 + $0xb0] sm:$0xc0] %vm2649_vm11, %v2693_v12  ;;  %v2960_v33 = vpack.c.bf16 %v2932_v20, %v2930_v43  ;;  %v2675_v28 = vsel %vm221_vm15, %v7250_v4, %v2674_v22  ;;  %vm2881_vm11 = vcmask 572416   ;;  %v2910_v29 = vld [vmem:[#allocation2 + $0x8] sm:$0xff]  ;;  %vm2992_vm15 = vcmask 179200  }
 0x596   :  { %2700 = vst [vmem:[#allocation2 + $0xe0] sm:$0xf] %v2695_v19  ;;  %3005 = vmatpush.bf16.msrb.mxu0 %v2959_v18 }
 0x597   :  { %2701 = vst.msk [vmem:[#allocation2 + $0xe8] sm:$0xf] %vm2652_vm2, %v2693_v12  ;;  %3033 = vmatpush.bf16.msrb.mxu3 %v2960_v33  ;;  %v2921_v36 = vld [vmem:[#allocation2 + $0x150] sm:$0xff]  ;;  %vm3924_vm2 = vcmask 1041408  }
 0x598   :  { %2722 = vst [vmem:[#allocation2 + $0x118] sm:$0xfc] %v2719_v34  ;;  %v2922_v59 = vld [vmem:[#allocation2 + $0x158] sm:$0xff] }
 0x599   :  { %2723 = vst.msk [vmem:[#allocation2 + $0x120] sm:$0xfc] %vm2679_vm10, %v2717_v46  ;;  %v2923_v7 = vld [vmem:[#allocation2 + $0x188] sm:$0xff] }
 0x59a   :  { %2678 = vst [vmem:[#allocation2 + $0x70] sm:$0xfc] %v2675_v28  ;;  %3006 = vmatpush.bf16.msrb.mxu0 %v2957_v54  ;;  %v2924_v9 = vld [vmem:[#allocation2 + $0x190] sm:$0xff]  ;;  %v2955_v6 = vpack.c.bf16 %v2923_v7, %v2921_v36  ;;  %v5105_v28 = vunpack.i.h.bf16 %v5103_v31 }
 0x59b   :  { %3034 = vmatpush.bf16.msrb.mxu3 %v2958_v23  ;;  %2680 = vst.msk [vmem:[#allocation2 + $0x78] sm:$0xfc] %vm2679_vm10, %v2674_v22  ;;  %v2956_v35 = vpack.c.bf16 %v2924_v9, %v2922_v59  ;;  %v2659_v4 = vpop.permute.xlu0 %2658  ;;  %v2915_v51 = vld [vmem:[#allocation2 + $0xa8] sm:$0xff] }
 0x59c   :  { %v2660_v0 = vsel %vm156_vm3, %v7248_v52, %v2659_v4  ;;  %2665 = vst.msk [vmem:[#allocation2 + $0x40] sm:$0xf0] %vm2664_vm14, %v2659_v4  ;;  %v2880_v30 = vpop.permute.xlu1 %2879  ;;  %vm2893_vm3 = vcmask 564224   ;;  %v2916_v37 = vld [vmem:[#allocation2 + $0xb0] sm:$0xff] }
 0x59d   :  { %2663 = vst [vmem:[#allocation2 + $0x38] sm:$0xf0] %v2660_v0  ;;  %v2882_v17 = vsel %vm2881_vm11, %v7254_v49, %v2880_v30  ;;  %v2917_v44 = vld [vmem:[#allocation2 + $0xe0] sm:$0xff] }
 0x59e   :  { %3007 = vmatpush.bf16.msrb.mxu0 %v2955_v6  ;;  %2666 = vst [vmem:[#allocation2 + $0x70] sm:$0x3] %v2660_v0  ;;  %v2918_v41 = vld [vmem:[#allocation2 + $0xe8] sm:$0xff] }
 0x59f   :  { %3035 = vmatpush.bf16.msrb.mxu3 %v2956_v35  ;;  %2668 = vst.msk [vmem:[#allocation2 + $0x78] sm:$0x3] %vm2667_vm4, %v2659_v4  ;;  %v2919_v62 = vld [vmem:[#allocation2 + $0x118] sm:$0xff] }
 0x5a0   :  { %2885 = vst [vmem:[#allocation2 + $0x380] sm:$0xf0] %v2882_v17  ;;  %v2920_v57 = vld [vmem:[#allocation2 + $0x120] sm:$0xff]  ;;  %v2953_v27 = vpack.c.bf16 %v2919_v62, %v2917_v44 }
 0x5a1   :  { %2886 = vst.msk [vmem:[#allocation2 + $0x388] sm:$0xf0] %vm2664_vm14, %v2880_v30  ;;  %v2954_v52 = vpack.c.bf16 %v2920_v57, %v2918_v41  ;;  %vm3209_vm14 = vcmask 203776  }
 0x5a2   :  { %2887 = vst [vmem:[#allocation2 + $0x3b8] sm:$0x3] %v2882_v17  ;;  %3008 = vmatpush.bf16.msrb.mxu0 %v2953_v27 }
 0x5a3   :  { %2888 = vst.msk [vmem:[#allocation2 + $0x3c0] sm:$0x3] %vm2667_vm4, %v2880_v30  ;;  %3036 = vmatpush.bf16.msrb.mxu3 %v2954_v52  ;;  %v2892_v49 = vpop.permute.xlu0 %2891  ;;  %v2912_v13 = vld [vmem:[#allocation2 + $0x40] sm:$0xff]  ;;  %vm7820_vm4 = vcmask 1043456  }
 0x5a4   :  { %v2894_v58 = vsel %vm2893_vm3, %v2890_v63, %v2892_v49  ;;  %2898 = vst.msk [vmem:[#allocation2 + $0x3c0] sm:$0xfc] %vm2679_vm10, %v2892_v49  ;;  %v2642_v39 = vpop.permute.xlu1 %2641  ;;  %v2950_v5 = vpack.c.bf16 %v2912_v13, %v2910_v29  ;;  %v4972_v13 = vld [vmem:[%s7641_s5 + $0xb0] sm:$0xff]  ;;  %v4969_v29 = vld [vmem:[%s7641_s5 + $0x98] sm:$0xff]  ;;  %vm3853_vm10 = vcmask 982016  }
 0x5a5   :  { %2897 = vst [vmem:[#allocation2 + $0x3b8] sm:$0xfc] %v2894_v58  ;;  %v2645_v16 = vsel %vm99_vm0, %v2642_v39, %v7285_v14  ;;  %v2913_v56 = vld [vmem:[#allocation2 + $0x70] sm:$0xff] }
 0x5a6   :  { %2648 = vst [vmem:[#allocation2] sm:$0xc0] %v2645_v16  ;;  %v2914_v8 = vld [vmem:[#allocation2 + $0x78] sm:$0xff]  ;;  %v2951_v2 = vpack.c.bf16 %v2915_v51, %v2913_v56  ;;  %v4581_v56 = vld [vmem:[%s7641_s5 + $0xc8] sm:$0xf] }
 0x5a7   :  { %2651 = vst [vmem:[#allocation2 + $0x38] sm:$0xf] %v2645_v16  ;;  %v2952_v45 = vpack.c.bf16 %v2916_v37, %v2914_v8  ;;  %v2941_v24 = vld [vmem:[#allocation2 + $0x380] sm:$0xff] }
 0x5a8   :  { %3009 = vmatpush.bf16.msrb.mxu0 %v2951_v2  ;;  %v2942_v53 = vld [vmem:[#allocation2 + $0x388] sm:$0xff]  ;;  %v4975_v51 = vld [vmem:[%s7641_s5 + $0xc8] sm:$0x10]  ;;  %v4974_v2 = vld [vmem:[%s7641_s5 + $0xc0] sm:$0xff] }
 0x5a9   :  { %3037 = vmatpush.bf16.msrb.mxu3 %v2952_v45  ;;  %v4582_v8 = vor.u32 %v4975_v51, %v4581_v56  ;;  %v4973_v45 = vld [vmem:[%s7641_s5 + $0xb8] sm:$0xff]  ;;  %v4694_v51 = vld [vmem:[%s7640_s4 + $0x88] sm:$0xf] }
 0x5aa   :  { %v4991_v56 = vld [vmem:[%s7640_s4 + $0x78] sm:$0x10] }
 0x5ab   :  { %v2944_v60 = vld [vmem:[#allocation2 + $0x3c0] sm:$0xff]  ;;  %v3175_v37 = vand.u32 %v4582_v8, %v5927_v61 }
 0x5ac   :  { %v2966_v50 = vpack.c.bf16 %v2944_v60, %v2942_v53  ;;  %v2943_v21 = vld [vmem:[#allocation2 + $0x3b8] sm:$0xff]  ;;  %v4603_v53 = vld [vmem:[%s7640_s4 + $0x18] sm:$0xf]  ;;  %v4993_v8 = vld [vmem:[%s7640_s4 + $0x88] sm:$0x10] }
 0x5ad   :  { %3038 = vmatpush.bf16.msrb.mxu3 %v2950_v5  ;;  %v2909_v40 = vld [vmem:[#allocation2] sm:$0xff]  ;;  %v2965_v14 = vpack.c.bf16 %v2943_v21, %v2941_v24 }
 0x5ae   :  { %3052 = vmatpush.bf16.msra.mxu1 %v2966_v50  ;;  %v2911_v1 = vld [vmem:[#allocation2 + $0x38] sm:$0xff]  ;;  %v4977_v5 = vld [vmem:[%s7640_s4 + $0x8] sm:$0x10]  ;;  %v4616_v50 = vld [vmem:[%s7640_s4 + $0x28] sm:$0xf] }
 0x5af   :  { %v2949_v12 = vpack.c.bf16 %v2911_v1, %v2909_v40  ;;  %3024 = vmatpush.bf16.msrb.mxu2 %v2965_v14  ;;  %v4591_v60 = vor.u32 %v4977_v5, %v4590_v55  ;;  %v4981_v24 = vld [vmem:[%s7640_s4 + $0x28] sm:$0x10] }
 0x5b0   :  { %3039 = vmatmul.bf16.vlgmr.msrb.gmra.mxu3 %v4544_v25  ;;  %v4617_v40 = vor.u32 %v4981_v24, %v4616_v50 }
 0x5b1   :  { %3010 = vmatpush.bf16.msrb.mxu0 %v2949_v12  ;;  %4550 = vmatmul.msk.bf16.vlgmr.msra.gmra.mxu1 %vm2992_vm15, %v4548_v47  ;;  %v3214_v14 = vand.u32 %v4591_v60, %v5927_v61 }
 0x5b2   :  { %4549 = vmatmul.msk.bf16.vlgmr.msrb.gmra.mxu2 %vm2992_vm15, %v4548_v47  ;;  %v3290_v1 = vand.u32 %v4617_v40, %v5927_v61 }
 0x5b3   :  { %3177 = vmatpush.bf16.msra.mxu2 %v3175_v37  ;;  %v4720_v37 = vld [vmem:[%s7640_s4 + $0xa8] sm:$0xf] }
 0x5b4   :  { %3011 = vmatmul.bf16.vlgmr.msrb.gmra.mxu0 %v4544_v25  ;;  %v4979_v25 = vld [vmem:[%s7640_s4 + $0x18] sm:$0x10]  ;;  %3298 = vmatpush.bf16.msra.mxu3 %v3290_v1  ;;  %v4996_v1 = vld [vmem:[%s7640_s4 + $0xa0] sm:$0xff] }
 0x5b5   :  { %v4604_v21 = vor.u32 %v4979_v25, %v4603_v53  ;;  %3222 = vmatpush.bf16.msra.mxu0 %v3214_v14 }
 0x5b7   :  { %3178 = vmatpush.bf16.msra.mxu2 %v4974_v2  ;;  %v3252_v47 = vand.u32 %v4604_v21, %v5927_v61  ;;  %v4997_v2 = vld [vmem:[%s7640_s4 + $0xa8] sm:$0x10]  ;;  %v4990_v21 = vld [vmem:[%s7640_s4 + $0x70] sm:$0xff] }
 0x5b9   :  { %3260 = vmatpush.bf16.msrb.mxu1 %v3252_v47  ;;  %v4992_v47 = vld [vmem:[%s7640_s4 + $0x80] sm:$0xff] }
 0x5bb   :  { %3179 = vmatpush.bf16.msra.mxu2 %v4973_v45 }
 0x5bf   :  { %3180 = vmatpush.bf16.msra.mxu2 %v4972_v13  ;;  %v4759_v13 = vld [vmem:[%s7640_s4 + $0xd8] sm:$0xf] }
 0x5c3   :  { %3181 = vmatpush.bf16.msra.mxu2 %v4971_v15  ;;  %v5003_v15 = vld [vmem:[%s7640_s4 + $0xd8] sm:$0x10] }
 0x5c4   :  { %v4760_v5 = vor.u32 %v5003_v15, %v4759_v13 }
 0x5c6   :  { %v3699_v40 = vand.u32 %v4760_v5, %v5927_v61 }
 0x5c7   :  { %3182 = vmatpush.bf16.msra.mxu2 %v4970_v11  ;;  %v4695_v11 = vor.u32 %v4993_v8, %v4694_v51 }
 0x5c9   :  { %v3512_v60 = vand.u32 %v4695_v11, %v5927_v61 }
 0x5cb   :  { %3183 = vmatpush.bf16.msra.mxu2 %v4969_v29  ;;  %v4721_v29 = vor.u32 %v4997_v2, %v4720_v37  ;;  %v3191_v37 = vld [vmem:[%s7641_s5 + $0xe0] sm:$0x1] }
 0x5cc   :  { %v3192_v11 = vunpack.c.l.bf16 %v3191_v37 }
 0x5cd   :  { %v3588_v25 = vand.u32 %v4721_v29, %v5927_v61 }
 0x5cf   :  { %3184 = vmatpush.bf16.msra.mxu2 %v4968_v38 }
 0x62e   :  { %v3054_v32 = vpop.f32.mrf.mxu1 }
 0x631   :  { %v3012_v19 = vpop.f32.mrf.mxu0 }
 0x632   :  { %v3013_v46 = vadd.f32 %v5104_v48, %v3012_v19 }
 0x633   :  { %v3040_v43 = vpop.f32.mrf.mxu3 }
 0x634   :  { %v3041_v20 = vadd.f32 %v5104_v48, %v3040_v43 }
 0x635   :  { %v3026_v18 = vpop.f32.mrf.mxu2 }
 0x636   :  { %v3055_v22 = vadd.f32 %v3054_v32, %v3041_v20  ;;  %v3027_v33 = vadd.f32 %v3026_v18, %v3013_v46  ;;  %v3056_v59 = vpop.f32.mrf.mxu1 }
 0x638   :  { %v3060_v34 = vmax.f32 %v3055_v22, 0.0  ;;  %v3059_v26 = vmax.f32 %v3027_v33, 0.0 }
 0x639   :  { %v3014_v10 = vpop.f32.mrf.mxu0 }
 0x63a   :  { %v5106_v42 = vpack.i.bf16 %v3060_v34, %v3059_v26  ;;  %v3015_v3 = vadd.f32 %v5105_v28, %v3014_v10  ;;  %v4987_v10 = vld [vmem:[%s7640_s4 + $0x58] sm:$0x10] }
 0x63b   :  { %v3042_v36 = vpop.f32.mrf.mxu3 }
 0x63c   :  { %v3043_v54 = vadd.f32 %v5105_v28, %v3042_v36  ;;  %5107 = vrot.lane.b32.xlu0 %v5106_v42, %s5173_s20  ;;  %v4978_v42 = vld [vmem:[%s7640_s4 + $0x10] sm:$0xff]  ;;  %v4980_v36 = vld [vmem:[%s7640_s4 + $0x20] sm:$0xff] }
 0x63d   :  { %v3028_v23 = vpop.f32.mrf.mxu2  ;;  %3261 = vmatpush.bf16.msrb.mxu1 %v4978_v42  ;;  %3299 = vmatpush.bf16.msra.mxu3 %v4980_v36 }
 0x63e   :  { %v3057_v7 = vadd.f32 %v3056_v59, %v3043_v54  ;;  %v3029_v9 = vadd.f32 %v3028_v23, %v3015_v3  ;;  %v4986_v54 = vld [vmem:[%s7640_s4 + $0x50] sm:$0xff]  ;;  %v4629_v59 = vld [vmem:[%s7640_s4 + $0x38] sm:$0xf]  ;;  %v4983_v23 = vld [vmem:[%s7640_s4 + $0x38] sm:$0x10] }
 0x640   :  { %v3062_v6 = vmax.f32 %v3057_v7, 0.0  ;;  %v3061_v35 = vmax.f32 %v3029_v9, 0.0  ;;  %v4642_v7 = vld [vmem:[%s7640_s4 + $0x48] sm:$0xf]  ;;  %v4630_v9 = vor.u32 %v4983_v23, %v4629_v59  ;;  %v5000_v23 = vld [vmem:[%s7640_s4 + $0xc0] sm:$0xff] }
 0x642   :  { %v5111_v4 = vpack.i.bf16 %v3062_v6, %v3061_v35 }
 0x644   :  { %5112 = vrot.lane.b32.xlu1 %v5111_v4, %s5173_s20  ;;  %v4989_v4 = vld [vmem:[%s7640_s4 + $0x68] sm:$0x10] }
 0x6ae   :  { %v5108_v0 = vpop.permute.xlu0 %5107 }
 0x6af   :  { %v5110_v30 = vunpack.i.h.bf16 %v5108_v0  ;;  %v5109_v17 = vunpack.i.l.bf16 %v5108_v0 }
 0x6b1   :  { %v3082_v44 = vmax.f32 %v3060_v34, %v5110_v30  ;;  %v3075_v62 = vsel %vm99_vm0, %v5109_v17, %v5110_v30  ;;  %v4976_v34 = vld [vmem:[%s7640_s4] sm:$0xff]  ;;  %v4707_v17 = vld [vmem:[%s7640_s4 + $0x98] sm:$0xf] }
 0x6b2   :  { %v3081_v41 = vmax.f32 %v3059_v26, %v3075_v62  ;;  %v4655_v26 = vld [vmem:[%s7640_s4 + $0x58] sm:$0xf]  ;;  %3223 = vmatpush.bf16.msra.mxu0 %v4976_v34  ;;  %v3327_v62 = vand.u32 %v4630_v9, %v5927_v61 }
 0x6b3   :  { %v4656_v28 = vor.u32 %v4987_v10, %v4655_v26  ;;  %v4785_v9 = vld [vmem:[%s7640_s4 + $0xf8] sm:$0xf] }
 0x6b4   :  { %v5116_v57 = vpack.i.bf16 %v3082_v44, %v3081_v41  ;;  %v4995_v44 = vld [vmem:[%s7640_s4 + $0x98] sm:$0x10] }
 0x6b5   :  { %v3401_v3 = vand.u32 %v4656_v28, %v5927_v61 }
 0x6b6   :  { %v5113_v27 = vpop.permute.xlu1 %5112  ;;  %5117 = vrot.lane.b32.xlu2 %v5116_v57, %s5195_s9  ;;  %3335 = vmatpush.bf16.msrb.mxu0 %v3327_v62 }
 0x6b7   :  { %v5115_v52 = vunpack.i.h.bf16 %v5113_v27  ;;  %v5114_v63 = vunpack.i.l.bf16 %v5113_v27  ;;  %3409 = vmatpush.bf16.msrb.mxu2 %v3401_v3 }
 0x6b9   :  { %v3084_v49 = vmax.f32 %v3062_v6, %v5115_v52  ;;  %v3076_v58 = vsel %vm99_vm0, %v5114_v63, %v5115_v52  ;;  %vm3167_vm0 = vcmask 990208   ;;  %v4985_v6 = vld [vmem:[%s7640_s4 + $0x48] sm:$0x10]  ;;  %v4982_v52 = vld [vmem:[%s7640_s4 + $0x30] sm:$0xff] }
 0x6ba   :  { %v3083_v39 = vmax.f32 %v3061_v35, %v3076_v58  ;;  %v4668_v35 = vld [vmem:[%s7640_s4 + $0x68] sm:$0xf]  ;;  %v4643_v0 = vor.u32 %v4985_v6, %v4642_v7  ;;  %v4988_v58 = vld [vmem:[%s7640_s4 + $0x60] sm:$0xff]  ;;  %3336 = vmatpush.bf16.msrb.mxu0 %v4982_v52  ;;  %v5007_v6 = vld [vmem:[%s7640_s4 + $0xf8] sm:$0x10] }
 0x6bb   :  { %3410 = vmatpush.bf16.msrb.mxu2 %v4986_v54  ;;  %v4669_v30 = vor.u32 %v4989_v4, %v4668_v35  ;;  %v4998_v54 = vld [vmem:[%s7640_s4 + $0xb0] sm:$0xff]  ;;  %v5004_v7 = vld [vmem:[%s7640_s4 + $0xe0] sm:$0xff]  ;;  %v4786_v35 = vor.u32 %v5007_v6, %v4785_v9 }
 0x6bc   :  { %v5121_v16 = vpack.i.bf16 %v3084_v49, %v3083_v39  ;;  %v3364_v57 = vand.u32 %v4643_v0, %v5927_v61  ;;  %v4984_v49 = vld [vmem:[%s7640_s4 + $0x40] sm:$0xff] }
 0x6bd   :  { %v3438_v27 = vand.u32 %v4669_v30, %v5927_v61  ;;  %v3773_v4 = vand.u32 %v4786_v35, %v5927_v61 }
 0x6be   :  { %5122 = vrot.lane.b32.xlu0 %v5121_v16, %s5195_s9  ;;  %3372 = vmatpush.bf16.msra.mxu1 %v3364_v57  ;;  %v4681_v16 = vld [vmem:[%s7640_s4 + $0x78] sm:$0xf] }
 0x6bf   :  { %3446 = vmatpush.bf16.msrb.mxu3 %v3438_v27  ;;  %v4682_v45 = vor.u32 %v4991_v56, %v4681_v16 }
 0x6c1   :  { %v3475_v55 = vand.u32 %v4682_v45, %v5927_v61  ;;  %v5014_v45 = vld [vmem:[%s7641_s5 + $0x30] sm:$0xff] }
 0x6c2   :  { %3373 = vmatpush.bf16.msra.mxu1 %v4984_v49 }
 0x6c3   :  { %3447 = vmatpush.bf16.msrb.mxu3 %v4988_v58 }
 0x710   :  { %v5118_v12 = vpop.permute.xlu2 %5117 }
 0x711   :  { %v5120_v31 = vunpack.i.h.bf16 %v5118_v12  ;;  %v5119_v19 = vunpack.i.l.bf16 %v5118_v12  ;;  %v5002_v12 = vld [vmem:[%s7640_s4 + $0xd0] sm:$0xff] }
 0x713   :  { %v3097_v43 = vsel %vm2694_vm1, %v5119_v19, %v5120_v31  ;;  %v4733_v31 = vld [vmem:[%s7640_s4 + $0xb8] sm:$0xf]  ;;  %v4999_v19 = vld [vmem:[%s7640_s4 + $0xb8] sm:$0x10] }
 0x714   :  { %v3101_v18 = vmax.f32 %v3081_v41, %v3097_v43  ;;  %v4708_v41 = vor.u32 %v4995_v44, %v4707_v17  ;;  %v5001_v43 = vld [vmem:[%s7640_s4 + $0xc8] sm:$0x10]  ;;  %v5006_v17 = vld [vmem:[%s7640_s4 + $0xf0] sm:$0xff] }
 0x716   :  { %v3550_v63 = vand.u32 %v4708_v41, %v5927_v61 }
 0x730   :  { %v5123_v48 = vpop.permute.xlu0 %5122 }
 0x731   :  { %v5125_v32 = vunpack.i.h.bf16 %v5123_v48  ;;  %v5124_v46 = vunpack.i.l.bf16 %v5123_v48  ;;  %v4746_v48 = vld [vmem:[%s7640_s4 + $0xc8] sm:$0xf] }
 0x733   :  { %v3098_v20 = vsel %vm2694_vm1, %v5124_v46, %v5125_v32  ;;  %v4772_v32 = vld [vmem:[%s7640_s4 + $0xe8] sm:$0xf]  ;;  %v5005_v46 = vld [vmem:[%s7640_s4 + $0xe8] sm:$0x10] }
 0x734   :  { %v3102_v22 = vmax.f32 %v3083_v39, %v3098_v20  ;;  %v4994_v39 = vld [vmem:[%s7640_s4 + $0x90] sm:$0xff]  ;;  %v4734_v20 = vor.u32 %v4999_v19, %v4733_v31 }
 0x736   :  { %v3119_v33 = vpack.c.bf16 %v3102_v22, %v3101_v18  ;;  %v4747_v22 = vor.u32 %v5001_v43, %v4746_v48  ;;  %v3625_v34 = vand.u32 %v4734_v20, %v5927_v61 }
 0x738   :  { %4583 = vmatmul.msk.bf16.vlgmr.msra.gmra.mxu2 %vm3167_vm0, %v3119_v33  ;;  %v4773_v33 = vor.u32 %v5005_v46, %v4772_v32  ;;  %v3662_v28 = vand.u32 %v4747_v22, %v5927_v61  ;;  %v5009_v46 = vld [vmem:[%s7641_s5 + $0x8] sm:$0xff] }
 0x739   :  { %3558 = vmatpush.bf16.msra.mxu2 %v3550_v63 }
 0x73a   :  { %v3736_v42 = vand.u32 %v4773_v33, %v5927_v61 }
 0x73d   :  { %3559 = vmatpush.bf16.msra.mxu2 %v4994_v39  ;;  %v3804_v39 = vld [vmem:[%s7641_s5 + $0x38] sm:$0xf] }
 0x73e   :  { %v3837_v51 = vunpack.c.l.b16 %v3804_v39 }
 0x740   :  { %v3845_v8 = vpack.c.b16 %v3837_v51, %v3837_v51 }
 0x742   :  { %v3858_v2 = vsel %vm7820_vm4, %v3845_v8, 0  ;;  %v3943_v8 = vld [vmem:[%s7641_s5 + $0xf8] sm:$0x1] }
 0x7bb   :  { %v3186_v38 = vpop.f32.mrf.mxu2 }
 0x7bc   :  { %v3197_v53 = vpack.c.bf16 %v3186_v38, %v3186_v38 }
 0x7be   :  { %4592 = vmatmul.msk.bf16.vlgmr.msra.gmra.mxu0 %vm3209_vm14, %v3197_v53  ;;  %v3235_v50 = vshrl.u32 %v3197_v53, 16  ;;  %v3274_v24 = vrot.slane %v3197_v53, 1  ;;  %v3348_v36 = vrot.slane %v3197_v53, 2  ;;  %v3422_v3 = vrot.slane %v3197_v53, 3  ;;  %v5012_v53 = vld [vmem:[%s7641_s5 + $0x20] sm:$0xff] }
 0x7bf   :  { %3483 = vmatpush.bf16.msra.mxu0 %v3475_v55  ;;  %v5013_v55 = vld [vmem:[%s7641_s5 + $0x28] sm:$0xff] }
 0x7c0   :  { %4605 = vmatmul.msk.bf16.vlgmr.msrb.gmra.mxu1 %vm3209_vm14, %v3235_v50  ;;  %4618 = vmatmul.msk.bf16.vlgmr.msra.gmra.mxu3 %vm3209_vm14, %v3274_v24  ;;  %v3385_v14 = vrot.slane %v3235_v50, 2  ;;  %v3311_v10 = vrot.slane %v3235_v50, 1  ;;  %v3459_v0 = vrot.slane %v3235_v50, 3 }
 0x7c1   :  { %3520 = vmatpush.bf16.msrb.mxu1 %v3512_v60  ;;  %3596 = vmatpush.bf16.msra.mxu3 %v3588_v25 }
 0x7c2   :  { %4657 = vmatmul.msk.bf16.vlgmr.msrb.gmra.mxu2 %vm3209_vm14, %v3385_v14  ;;  %v5011_v14 = vld [vmem:[%s7641_s5 + $0x18] sm:$0xff] }
 0x7c3   :  { %3484 = vmatpush.bf16.msra.mxu0 %v4990_v21  ;;  %3707 = vmatpush.bf16.msrb.mxu2 %v3699_v40  ;;  %v3188_v18 = vpop.f32.mrf.mxu2 }
 0x7c4   :  { %v3496_v26 = vpack.c.bf16 %v3188_v18, %v3188_v18  ;;  %v5008_v18 = vld [vmem:[%s7641_s5] sm:$0xff] }
 0x7c5   :  { %3521 = vmatpush.bf16.msrb.mxu1 %v4992_v47  ;;  %3597 = vmatpush.bf16.msra.mxu3 %v4996_v1  ;;  %v5010_v1 = vld [vmem:[%s7641_s5 + $0x10] sm:$0xff] }
 0x7c6   :  { %v3533_v59 = vshrl.u32 %v3496_v26, 16  ;;  %v3572_v30 = vrot.slane %v3496_v26, 1  ;;  %v3646_v41 = vrot.slane %v3496_v26, 2  ;;  %v3720_v57 = vrot.slane %v3496_v26, 3 }
 0x7c7   :  { %3708 = vmatpush.bf16.msrb.mxu2 %v5002_v12 }
 0x7c8   :  { %v3683_v44 = vrot.slane %v3533_v59, 2  ;;  %v3609_v62 = vrot.slane %v3533_v59, 1  ;;  %v3757_v27 = vrot.slane %v3533_v59, 3 }
 0x7ce   :  { %4631 = vmatmul.msk.bf16.vlgmr.msrb.gmra.mxu0 %vm3209_vm14, %v3311_v10 }
 0x7cf   :  { %3633 = vmatpush.bf16.msrb.mxu0 %v3625_v34  ;;  %v3942_v34 = vld [vmem:[#allocation3] sm:$0x1] }
 0x7d0   :  { %4644 = vmatmul.msk.bf16.vlgmr.msra.gmra.mxu1 %vm3209_vm14, %v3348_v36  ;;  %4670 = vmatmul.msk.bf16.vlgmr.msrb.gmra.mxu3 %vm3209_vm14, %v3422_v3 }
 0x7d1   :  { %3670 = vmatpush.bf16.msra.mxu1 %v3662_v28  ;;  %3744 = vmatpush.bf16.msrb.mxu3 %v3736_v42 }
 0x7d2   :  { %4709 = vmatmul.msk.bf16.vlgmr.msra.gmra.mxu2 %vm3209_vm14, %v3533_v59  ;;  %3947 = vperm.xlu1 %5126, %v3942_v34  }
 0x7d3   :  { %3634 = vmatpush.bf16.msrb.mxu0 %v4998_v54 }
 0x7d5   :  { %3671 = vmatpush.bf16.msra.mxu1 %v5000_v23  ;;  %3745 = vmatpush.bf16.msrb.mxu3 %v5004_v7  ;;  %v5019_v23 = vld [vmem:[%s7641_s5 + $0x60] sm:$0xff] }
 0x7de   :  { %4683 = vmatmul.msk.bf16.vlgmr.msra.gmra.mxu0 %vm3209_vm14, %v3459_v0  ;;  %v5018_v0 = vld [vmem:[%s7641_s5 + $0x58] sm:$0xff] }
 0x7df   :  { %3781 = vmatpush.bf16.msra.mxu0 %v3773_v4 }
 0x7e0   :  { %4696 = vmatmul.msk.bf16.vlgmr.msrb.gmra.mxu1 %vm3209_vm14, %v3496_v26  ;;  %4722 = vmatmul.msk.bf16.vlgmr.msra.gmra.mxu3 %vm3209_vm14, %v3572_v30  ;;  %v3884_v26 = vld [vmem:[%s7641_s5 + $0x68] sm:$0x3] }
 0x7e1   :  { %3860 = vmatpush.bf16.msrb.mxu1 %v3858_v2  ;;  %v3909_v28 = vunpack.c.l.b16 %v3884_v26  ;;  %v3944_v2 = vunpack.c.l.bf16 %v3943_v8 }
 0x7e2   :  { %4761 = vmatmul.msk.bf16.vlgmr.msrb.gmra.mxu2 %vm3209_vm14, %v3683_v44  ;;  %v5017_v44 = vld [vmem:[%s7641_s5 + $0x50] sm:$0xff] }
 0x7e3   :  { %3782 = vmatpush.bf16.msra.mxu0 %v5006_v17  ;;  %v3915_v3 = vpack.c.b16 %v3909_v28, %v3909_v28  ;;  %v3886_v28 = vld [vmem:[%s7641_s5 + $0xf0] sm:$0x1] }
 0x7e5   :  { %3861 = vmatpush.bf16.msrb.mxu1 %v5014_v45  ;;  %v3926_v59 = vsel %vm3924_vm2, %v3915_v3, 0 }
 0x7e6   :  { %3930 = vmatpush.bf16.msra.mxu2 %v3926_v59 }
 0x7e9   :  { %3862 = vmatpush.bf16.msrb.mxu1 %v5013_v55  ;;  %v5016_v55 = vld [vmem:[%s7641_s5 + $0x48] sm:$0xff] }
 0x7ea   :  { %3931 = vmatpush.bf16.msra.mxu2 %v5019_v23  ;;  %v5023_v23 = vld [vmem:[%s7641_s5 + $0x88] sm:$0xff] }
 0x7ed   :  { %3863 = vmatpush.bf16.msrb.mxu1 %v5012_v53  ;;  %v5020_v53 = vld [vmem:[%s7641_s5 + $0x70] sm:$0x10] }
 0x7ee   :  { %4735 = vmatmul.msk.bf16.vlgmr.msrb.gmra.mxu0 %vm3209_vm14, %v3609_v62  ;;  %3932 = vmatpush.bf16.msra.mxu2 %v5018_v0 }
 0x7f0   :  { %4748 = vmatmul.msk.bf16.vlgmr.msra.gmra.mxu1 %vm3209_vm14, %v3646_v41  ;;  %4774 = vmatmul.msk.bf16.vlgmr.msrb.gmra.mxu3 %vm3209_vm14, %v3720_v57 }
 0x7f1   :  { %3864 = vmatpush.bf16.msrb.mxu1 %v5011_v14 }
 0x7f2   :  { %3933 = vmatpush.bf16.msra.mxu2 %v5017_v44 }
 0x7f5   :  { %3865 = vmatpush.bf16.msrb.mxu1 %v5010_v1 }
 0x7f6   :  { %3934 = vmatpush.bf16.msra.mxu2 %v5016_v55 }
 0x7f9   :  { %3866 = vmatpush.bf16.msrb.mxu1 %v5009_v46 }
 0x7fd   :  { %3867 = vmatpush.bf16.msrb.mxu1 %v5008_v18 }
 0x7fe   :  { %4787 = vmatmul.msk.bf16.vlgmr.msra.gmra.mxu0 %vm3209_vm14, %v3757_v27 }
 0x83b   :  { %v3225_v52 = vpop.f32.mrf.mxu0 }
 0x83c   :  { %v3229_v5 = vadd.f32 %v3225_v52, %v3192_v11 }
 0x83d   :  { %v3263_v63 = vpop.f32.mrf.mxu1 }
 0x83e   :  { %v3267_v50 = vadd.f32 %v3263_v63, %v3229_v5  ;;  %v4840_v5 = vld [vmem:[%s7641_s5 + $0x70] sm:$0xf] }
 0x843   :  { %v3227_v49 = vpop.f32.mrf.mxu0  ;;  %v3301_v58 = vpop.f32.mrf.mxu3 }
 0x844   :  { %v3305_v40 = vadd.f32 %v3301_v58, %v3267_v50  ;;  %v3948_v37 = vpop.permute.xlu1 %3947 }
 0x845   :  { %v3265_v16 = vpop.f32.mrf.mxu1  ;;  %v3412_v56 = vpop.f32.mrf.mxu2  ;;  %v3950_v45 = vperm.slane %v3948_v37, 0 }
 0x847   :  { %v3951_v11 = vmul.f32 %v3950_v45, %v3944_v2 }
 0x84b   :  { %v3303_v13 = vpop.f32.mrf.mxu3  ;;  %v3338_v15 = vpop.f32.mrf.mxu0 }
 0x84c   :  { %v3342_v47 = vadd.f32 %v3338_v15, %v3305_v40  ;;  %v3952_v13 = vld [vmem:[%s7641_s5 + $0x100] sm:$0x1]  ;;  %v3806_v40 = vld [vmem:[%s7641_s5 + $0xe8] sm:$0x1] }
 0x84d   :  { %v3375_v29 = vpop.f32.mrf.mxu1  ;;  %v3414_v38 = vpop.f32.mrf.mxu2  ;;  %v3953_v15 = vunpack.c.l.bf16 %v3952_v13  ;;  %v3807_v14 = vunpack.c.l.bf16 %v3806_v40 }
 0x84e   :  { %v3379_v19 = vadd.f32 %v3375_v29, %v3342_v47 }
 0x84f   :  { %v3954_v29 = vadd.f32 %v3953_v15, %v3951_v11 }
 0x850   :  { %v3416_v32 = vadd.f32 %v3412_v56, %v3379_v19 }
 0x851   :  { %v3955_v38 = vmax.f32 %v3954_v29, 0.0 }
 0x853   :  { %v3340_v60 = vpop.f32.mrf.mxu0  ;;  %v3449_v25 = vpop.f32.mrf.mxu3 }
 0x854   :  { %v3453_v20 = vadd.f32 %v3449_v25, %v3416_v32  ;;  %v4841_v60 = vor.u32 %v5020_v53, %v4840_v5  ;;  %v5015_v25 = vld [vmem:[%s7641_s5 + $0x40] sm:$0xff]  ;;  %v3959_v32 = vld [vmem:[%s7641_s5 + $0x108] sm:$0x1] }
 0x855   :  { %v3377_v24 = vpop.f32.mrf.mxu1  ;;  %v3561_v21 = vpop.f32.mrf.mxu2  ;;  %3935 = vmatpush.bf16.msra.mxu2 %v5015_v25 }
 0x856   :  { %v3971_v50 = vand.u32 %v4841_v60, %v5927_v61  ;;  %v5021_v24 = vld [vmem:[%s7641_s5 + $0x78] sm:$0xff] }
 0x858   :  { %3980 = vmatpush.bf16.msra.mxu3 %v3971_v50 }
 0x859   :  { %4034 = vmatpush.bf16.msrb.mxu2 %v5021_v24 }
 0x85b   :  { %v3451_v12 = vpop.f32.mrf.mxu3  ;;  %v3486_v31 = vpop.f32.mrf.mxu0 }
 0x85c   :  { %v3490_v10 = vadd.f32 %v3486_v31, %v3453_v20  ;;  %v3960_v20 = vunpack.c.l.bf16 %v3959_v32  ;;  %4065 = vmatpush.bf16.msrb.mxu3 %v5023_v23 }
 0x85d   :  { %v3523_v48 = vpop.f32.mrf.mxu1  ;;  %v3563_v43 = vpop.f32.mrf.mxu2 }
 0x85e   :  { %v3527_v54 = vadd.f32 %v3523_v48, %v3490_v10  ;;  %v4845_v48 = vld [vmem:[%s7641_s5 + $0x80] sm:$0xf]  ;;  %v5022_v43 = vld [vmem:[%s7641_s5 + $0x80] sm:$0x10] }
 0x85f   :  { %v4846_v46 = vor.u32 %v5022_v43, %v4845_v48 }
 0x860   :  { %v3565_v6 = vadd.f32 %v3561_v21, %v3527_v54  ;;  %v3958_v21 = vpack.c.bf16 %v3955_v38, %v3955_v38 }
 0x862   :  { %4842 = vmatmul.msk.bf16.vlgmr.msra.gmra.mxu3 %vm3966_vm5, %v3958_v21 }
 0x863   :  { %v3488_v22 = vpop.f32.mrf.mxu0  ;;  %v3599_v33 = vpop.f32.mrf.mxu3 }
 0x864   :  { %v3603_v30 = vadd.f32 %v3599_v33, %v3565_v6  ;;  %v4002_v22 = vand.u32 %v4846_v46, %v5927_v61  ;;  %v4040_v6 = vld [vmem:[%s7641_s5 + $0x110] sm:$0x1] }
 0x865   :  { %v3525_v42 = vpop.f32.mrf.mxu1  ;;  %v3710_v36 = vpop.f32.mrf.mxu2 }
 0x866   :  { %4011 = vmatpush.bf16.msrb.mxu0 %v4002_v22  ;;  %v3887_v42 = vunpack.c.l.bf16 %v3886_v28 }
 0x86b   :  { %v3601_v7 = vpop.f32.mrf.mxu3  ;;  %v3636_v9 = vpop.f32.mrf.mxu0 }
 0x86c   :  { %v3640_v17 = vadd.f32 %v3636_v9, %v3603_v30 }
 0x86d   :  { %v3673_v35 = vpop.f32.mrf.mxu1  ;;  %v3712_v4 = vpop.f32.mrf.mxu2 }
 0x86e   :  { %v3677_v57 = vadd.f32 %v3673_v35, %v3640_v17  ;;  %v4041_v35 = vunpack.c.l.bf16 %v4040_v6 }
 0x870   :  { %v3714_v52 = vadd.f32 %v3710_v36, %v3677_v57 }
 0x873   :  { %v3638_v62 = vpop.f32.mrf.mxu0  ;;  %v3747_v41 = vpop.f32.mrf.mxu3 }
 0x874   :  { %v3751_v63 = vadd.f32 %v3747_v41, %v3714_v52  ;;  %v4047_v41 = vld [vmem:[%s7641_s5 + $0x118] sm:$0x1]  ;;  %s4089_s5 = sshll.u32 %s5198_s2, 4  ;;  %s4090_s5 = int_to_ptr.vmem [resolvable:$true] %s4089_s5 }
 0x875   :  { %v3675_v27 = vpop.f32.mrf.mxu1  ;;  %v4048_v57 = vunpack.c.l.bf16 %v4047_v41 }
 0x87b   :  { %v3749_v49 = vpop.f32.mrf.mxu3  ;;  %v3784_v58 = vpop.f32.mrf.mxu0 }
 0x87c   :  { %v3788_v39 = vadd.f32 %v3784_v58, %v3751_v63 }
 0x87e   :  { %v3789_v16 = vmax.f32 %v3788_v39, 0.0 }
 0x880   :  { %v3805_v56 = vpack.c.bf16 %v3789_v16, %v3789_v16 }
 0x882   :  { %4816 = vmatmul.msk.bf16.vlgmr.msrb.gmra.mxu1 %vm3853_vm10, %v3805_v56 }
 0x883   :  { %v3786_v51 = vpop.f32.mrf.mxu0 }
 0x8e5   :  { %v3982_v18 = vpop.f32.mrf.mxu3 }
 0x8e6   :  { %v3983_v33 = vadd.f32 %v3982_v18, %v3960_v20 }
 0x8e8   :  { %v3986_v34 = vmax.f32 %v3983_v33, 0.0 }
 0x8ea   :  { %v3992_v26 = vpack.c.bf16 %v3986_v34, %v3986_v34 }
 0x8ec   :  { %4847 = vmatmul.msk.bf16.vlgmr.msrb.gmra.mxu0 %vm3966_vm5, %v3992_v26 }
 0x8ed   :  { %v3984_v10 = vpop.f32.mrf.mxu3 }
 0x8ff   :  { %v3869_v47 = vpop.f32.mrf.mxu1 }
 0x900   :  { %v3870_v1 = vadd.f32 %v3869_v47, %v3807_v14 }
 0x902   :  { %v3873_v12 = vmax.f32 %v3870_v1, 0.0 }
 0x904   :  { %v3885_v31 = vpack.c.bf16 %v3873_v12, %v3873_v12 }
 0x906   :  { %4837 = vmatmul.msk.bf16.vlgmr.msra.gmra.mxu2 %vm2825_vm13, %v3885_v31  ;;  %vm4023_vm13 = vcmask 130048  }
 0x907   :  { %v3871_v19 = vpop.f32.mrf.mxu1 }
 0x969   :  { %v4013_v7 = vpop.f32.mrf.mxu0 }
 0x971   :  { %v4015_v9 = vpop.f32.mrf.mxu0 }
 0x989   :  { %v3937_v36 = vpop.f32.mrf.mxu2 }
 0x98a   :  { %v3938_v3 = vadd.f32 %v3937_v36, %v3887_v42 }
 0x98c   :  { %v3941_v54 = vmax.f32 %v3938_v3, 0.0 }
 0x98e   :  { %v3989_v59 = vpack.c.bf16 %v3941_v54, %v3941_v54 }
 0x990   :  { %4852 = vmatmul.msk.bf16.vlgmr.msrb.gmra.mxu2 %vm4023_vm13, %v3989_v59 }
 0x991   :  { %v3939_v61 = vpop.f32.mrf.mxu2 }
 0xa13   :  { %v4036_v4 = vpop.f32.mrf.mxu2 }
 0xa14   :  { %v4037_v0 = vadd.f32 %v4036_v4, %v4013_v7 }
 0xa16   :  { %v4042_v30 = vadd.f32 %v4041_v35, %v4037_v0 }
 0xa18   :  { %v4043_v17 = vmax.f32 %v4042_v30, 0.0 }
 0xa1a   :  { %v4046_v44 = vpack.c.bf16 %v4043_v17, %v4043_v17 }
 0xa1b   :  { %v4038_v62 = vpop.f32.mrf.mxu2 }
 0xa1c   :  { %4857 = vmatmul.msk.bf16.vlgmr.msrb.gmra.mxu3 %vm4023_vm13, %v4046_v44 }
 0xa9f   :  { %v4067_v27 = vpop.f32.mrf.mxu3 }
 0xaa0   :  { %v4068_v52 = vadd.f32 %v4067_v27, %v4048_v57 }
 0xaa2   :  { %v4072_v63 = vsel %vm4071_vm7, %v4068_v52, -inf }
 0xaa3   :  { %4073 = vmax.xlane.f32.xlu2 %v4072_v63 }
 0xaa7   :  { %v4069_v49 = vpop.f32.mrf.mxu3 }
 0xb16   :  { %v4074_v58 = vpop.xlane.xlu2 %4073 }
 0xb17   :  { %v4075_v39 = vsub.f32 %v4068_v52, %v4074_v58 }
 0xb19   :  { %v4076_v16 = vmul.f32 1.442695, %v4075_v39 }
 0xb1b   :  { %5128 = vpow2.f32 %v4076_v16 }
 0xb21   :  { %v5129_v56 = vpop.eup %5128 }
 0xb22   :  { %v4078_v51 = vsel %vm4071_vm7, %v5129_v56, 0.0 }
 0xb23   :  { %4079 = vadd.xlane.f32.xlu0 %v4078_v51 }
 0xb96   :  { %v4080_v8 = vpop.xlane.xlu0 %4079 }
 0xb97   :  { %5130 = vrcp.f32 %v4080_v8 }
 0xb9d   :  { %v5131_v37 = vpop.eup %5130 }
 0xb9e   :  { %v4082_v2 = vmul.f32 %v5131_v37, %v5129_v56 }
 0xba0   :  { %4083 = vst.msk [vmem:[#allocation4] sm:$0x1] %vm4071_vm7, %v4082_v2 }
 0xba1   :  { %4094 = dma.vmem_to_hbm [thread:$0]  %s4090_s5, 16, %s4092_s17, [#allocation5]  }
 0xba2   :  { %5156 = dma.done.wait [#allocation5], 16  }
 0xba3   :  { %5157 = vsyncadd [#allocation5], 4294967280 }
 0xba4   :  { %4099 = vsyncpa [#allocation5], 1 }

</bundles_post_ra>
